<compile_context>
chip_gen: v7x
topology: tpu7x:2x2x1
jax: 0.10.0
libtpu: 0.0.40
codegen_flags: <defaults>
</compile_context>

<pallas_src>
import functools

import jax
import jax.numpy as jnp
from jax import lax
from jax.experimental import pallas as pl
from jax.experimental.pallas import tpu as pltpu

HIDDEN = 32  # synthetic net hidden width

# Offsets into the packed per-step coefficient table (each slot has num_steps
# entries): sigma, then folded recombination / re-noising coefficients for the
# "mid" (j = i) and "last" (j = i+1) resample branches.
_SIG, _CX_MID, _CV_MID, _A_MID, _B_MID, _CX_LAST, _CV_LAST, _A_LAST, _B_LAST = range(9)
_NUM_COEF = 9


def _vinpaint_kernel(coef_ref,                      # SMEM: [9*S] f32 packed schedule
                     xinit_ref, src_ref, msk_ref,   # VMEM: [BC, Tb] f32
                     noise_ref,                     # VMEM: [S*R, BC, Tb] f32 (fully resident)
                     w1_ref, b1_ref, semb_ref,      # VMEM: [BH, BC], [BH, 1], [BH, 1]
                     w2_ref, b2_ref,                # VMEM: [BC, BH], [BC, 1]
                     out_ref,                       # VMEM: [BC, Tb] f32
                     *, num_steps, num_resamples):
    # Loop-invariant operands hoisted out of the sampler loop (all tiny).
    src = src_ref[...]
    msk = msk_ref[...]
    w1 = w1_ref[...]
    w2 = w2_ref[...]
    b1 = b1_ref[...]
    semb = semb_ref[...]
    b2 = b2_ref[...]

    def coef(k, i):
        return coef_ref[k * num_steps + i]

    def step(i, x):
        sig = coef(_SIG, i)
        bias1 = b1 + sig * semb                      # sigma embedding, shared by resamples
        for r in range(num_resamples):               # static & tiny -> unrolled
            # net(x_noisy, sigma): block-diagonal 1x1 convs (batch on sublanes,
            # T on lanes), MXU with f32 accumulation.
            h = jnp.dot(w1, x, preferred_element_type=jnp.float32) + bias1   # [BH, Tb]
            h = h * lax.logistic(h)                                          # SiLU (EUP)
            v = jnp.dot(w2, h, preferred_element_type=jnp.float32) + b2      # [BC, Tb]

            last = r == num_resamples - 1            # j = (r == num_resamples - 1)
            c_x = coef(_CX_LAST if last else _CX_MID, i)
            c_v = coef(_CV_LAST if last else _CV_MID, i)
            a_j = coef(_A_LAST if last else _A_MID, i)
            b_j = coef(_B_LAST if last else _B_MID, i)

            # Folded recombination: a_j*(a_i*x - b_i*v) + b_j*(b_i*x + a_i*v)
            x_new = c_x * x + c_v * v
            s_noisy = a_j * src + b_j * noise_ref[i * num_resamples + r]
            x = x_new + msk * (s_noisy - x_new)      # splice without (1 - mask)
        return x

    out_ref[...] = lax.fori_loop(0, num_steps, step, xinit_ref[...], unroll=True)


def vinpainter_forward(source, mask, x_noisy_init, noise_step,
                       num_steps, num_resamples, w1, b1, semb, w2, b2):
    """Pallas VInpainter.forward.

    source, mask, x_noisy_init : [B, C, T]
    noise_step                 : [num_steps, num_resamples, B, C, T]
    w1: [C, H], w2: [H, C] (1x1 conv weights), b1/semb: [H], b2: [C]
    Returns [B, C, T].
    """
    B, C, T = source.shape
    H = w1.shape[1]
    BC, BH = B * C, B * H
    SR = num_steps * num_resamples

    # Only free contiguous reshapes -- batch folds onto the sublane axis, T on lanes.
    src = source.reshape(BC, T).astype(jnp.float32)
    msk = mask.astype(jnp.float32).reshape(BC, T)
    x0 = x_noisy_init.reshape(BC, T).astype(jnp.float32)
    nz = noise_step.reshape(SR, BC, T).astype(jnp.float32)

    # Block-diagonal 1x1-conv weights: one [H,C]/[C,H] block per batch element so
    # the conv contracts over C while B rides the sublane axis (no in-kernel reshapes).
    w1t = jnp.transpose(w1).astype(jnp.float32)        # [H, C]
    w2t = jnp.transpose(w2).astype(jnp.float32)        # [C, H]
    eye_b = jnp.eye(B, dtype=jnp.float32)
    w1bd = jnp.einsum('ab,hc->ahbc', eye_b, w1t).reshape(BH, BC)
    w2bd = jnp.einsum('ab,ch->acbh', eye_b, w2t).reshape(BC, BH)
    b1t = jnp.tile(b1.astype(jnp.float32), B).reshape(BH, 1)
    sembt = jnp.tile(semb.astype(jnp.float32), B).reshape(BH, 1)
    b2t = jnp.tile(b2.astype(jnp.float32), B).reshape(BC, 1)

    # LinearSchedule(1.0 -> 0.0), alpha/beta, and folded per-step recombination
    # coefficients (scalar-only algebra), packed into one small SMEM table.
    sig_full = jnp.linspace(1.0, 0.0, num_steps + 1).astype(jnp.float32)
    al = jnp.cos(sig_full * (jnp.pi / 2)).astype(jnp.float32)
    be = jnp.sin(sig_full * (jnp.pi / 2)).astype(jnp.float32)
    a_i, b_i = al[:-1], be[:-1]
    a_n, b_n = al[1:], be[1:]
    coefs = jnp.concatenate([
        sig_full[:-1],                 # _SIG
        a_i * a_i + b_i * b_i,         # _CX_MID  (j = i)
        a_i * b_i - a_i * b_i,         # _CV_MID
        a_i,                           # _A_MID
        b_i,                           # _B_MID
        a_n * a_i + b_n * b_i,         # _CX_LAST (j = i + 1)
        a_i * b_n - a_n * b_i,         # _CV_LAST
        a_n,                           # _A_LAST
        b_n,                           # _B_LAST
    ]).astype(jnp.float32)

    # Lane split across TensorCores (v7x); harmless 2-step grid on single-TC chips.
    lane_splits = 2 if (T % 256 == 0) else 1
    Tb = T // lane_splits

    kernel = functools.partial(_vinpaint_kernel, num_steps=num_steps,
                               num_resamples=num_resamples)
    smem = pl.BlockSpec(memory_space=pltpu.MemorySpace.SMEM)

    # Cost hints.
    flops = SR * (2 * BH * BC * T + 2 * BC * BH * T + 2 * BH * T + 9 * BC * T)
    transc = SR * BH * T
    bytes_accessed = 4 * (SR * BC * T + 4 * BC * T + 2 * BH * BC + 2 * BH + BC
                          + _NUM_COEF * num_steps)

    # VMEM plan derived from footprint (keeps headroom under v7x's 64 MiB physical).
    per_block = 4 * (SR * BC * Tb + 3 * BC * Tb)           # noise + x_init/src/msk blocks
    weights = 4 * (2 * BH * BC + 2 * BH + BC)
    footprint = 2 * (per_block + weights) + 2 * 4 * BC * Tb  # double-buffered + output
    vmem_limit = int(min(48 * 1024 * 1024, max(8 * 1024 * 1024, 4 * footprint)))

    out = pl.pallas_call(
        kernel,
        out_shape=jax.ShapeDtypeStruct((BC, T), jnp.float32),
        grid_spec=pltpu.PrefetchScalarGridSpec(
            num_scalar_prefetch=0,
            grid=(lane_splits,),
            in_specs=[
                smem,                                                 # packed schedule
                pl.BlockSpec((BC, Tb), lambda c: (0, c)),             # x_init
                pl.BlockSpec((BC, Tb), lambda c: (0, c)),             # source
                pl.BlockSpec((BC, Tb), lambda c: (0, c)),             # mask
                pl.BlockSpec((SR, BC, Tb), lambda c: (0, 0, c)),      # full noise, resident
                pl.BlockSpec((BH, BC), lambda c: (0, 0)),             # w1 block-diag
                pl.BlockSpec((BH, 1), lambda c: (0, 0)),              # b1
                pl.BlockSpec((BH, 1), lambda c: (0, 0)),              # sigma embedding
                pl.BlockSpec((BC, BH), lambda c: (0, 0)),             # w2 block-diag
                pl.BlockSpec((BC, 1), lambda c: (0, 0)),              # b2
            ],
            out_specs=pl.BlockSpec((BC, Tb), lambda c: (0, c)),
        ),
        compiler_params=pltpu.CompilerParams(
            dimension_semantics=("parallel",),                        # independent lane halves
            vmem_limit_bytes=vmem_limit,
        ),
        cost_estimate=pl.CostEstimate(
            flops=flops, transcendentals=transc, bytes_accessed=bytes_accessed),
    )(coefs, x0, src, msk, nz, w1bd, b1t, sembt, w2bd, b2t)

    return out.reshape(B, C, T)   # free reshape back to the PyTorch layout


def vinpainter_reference(source, mask, x_init, noise_step, num_steps, num_resamples,
                         w1, b1, semb, w2, b2):
    """Pure-JAX mirror of the PyTorch VInpainter.forward in [B, C, T] layout."""
    sigmas = jnp.linspace(1.0, 0.0, num_steps + 1)
    alphas = jnp.cos(sigmas * jnp.pi / 2)
    betas = jnp.sin(sigmas * jnp.pi / 2)
    maskf = mask.astype(jnp.float32)

    def net(x_bct, sig):
        h = (jnp.einsum('bct,ch->bht', x_bct, w1)
             + b1[None, :, None] + sig * semb[None, :, None])
        h = jax.nn.silu(h)
        return jnp.einsum('bht,hc->bct', h, w2) + b2[None, :, None]

    x = x_init
    for i in range(num_steps):
        for r in range(num_resamples):
            v = net(x, sigmas[i])
            j = 1 if r == num_resamples - 1 else 0
            a_i, b_i = alphas[i], betas[i]
            a_j, b_j = alphas[i + j], betas[i + j]
            x_pred = a_i * x - b_i * v
            n_pred = b_i * x + a_i * v
            x = a_j * x_pred + b_j * n_pred
            s_noisy = a_j * source + b_j * noise_step[i, r]
            x = s_noisy * maskf + x * (1.0 - maskf)
    return x


if __name__ == "__main__":
    B, C, T = 2, 4, 256          # PyTorch audio layout [B, C, T]
    H = HIDDEN
    num_steps, num_resamples = 8, 2

    key = jax.random.PRNGKey(0)
    ks = jax.random.split(key, 7)

    source = jax.random.normal(ks[0], (B, C, T), jnp.float32)
    mask = jax.random.bernoulli(ks[1], 0.5, (B, C, T))                 # True = keep source
    # Stochastic pieces of the forward (torch.randn_like), generated
    # deterministically in JAX and fed to the kernel.
    x_init = jax.random.normal(ks[2], (B, C, T), jnp.float32)          # default x_noisy
    noise_step = jax.random.normal(
        ks[3], (num_steps, num_resamples, B, C, T), jnp.float32)

    # Deterministic synthetic-net parameters (1x1 conv -> +sigma-emb -> SiLU -> 1x1 conv).
    w1 = jax.random.normal(ks[4], (C, H), jnp.float32) * 0.2
    b1 = jnp.zeros((H,), jnp.float32)
    semb = jax.random.normal(ks[5], (H,), jnp.float32) * 0.1
    w2 = jax.random.normal(ks[6], (H, C), jnp.float32) * 0.2
    b2 = jnp.zeros((C,), jnp.float32)

    out = vinpainter_forward(source, mask, x_init, noise_step,
                             num_steps, num_resamples, w1, b1, semb, w2, b2)
    out = jax.block_until_ready(out)

    ref = vinpainter_reference(source, mask, x_init, noise_step,
                               num_steps, num_resamples, w1, b1, semb, w2, b2)
    assert out.shape == (B, C, T)
    assert jnp.allclose(out, ref, rtol=1e-3, atol=1e-3), float(jnp.max(jnp.abs(out - ref)))

    print("KERNEL_OK")
</pallas_src>

<mosaic_0001>
module attributes {stable_mosaic.version = 11 : i64} {
  func.func @_vinpaint_kernel(%arg0: i32, %arg1: memref<72xf32, #tpu.memory_space<smem>>, %arg2: memref<8x128xf32, #tpu.memory_space<vmem>>, %arg3: memref<8x128xf32, #tpu.memory_space<vmem>>, %arg4: memref<8x128xf32, #tpu.memory_space<vmem>>, %arg5: memref<16x8x128xf32, #tpu.memory_space<vmem>>, %arg6: memref<64x8xf32, #tpu.memory_space<vmem>>, %arg7: memref<64x1xf32, #tpu.memory_space<vmem>>, %arg8: memref<64x1xf32, #tpu.memory_space<vmem>>, %arg9: memref<8x64xf32, #tpu.memory_space<vmem>>, %arg10: memref<8x1xf32, #tpu.memory_space<vmem>>, %arg11: memref<8x128xf32, #tpu.memory_space<vmem>>) attributes {dimension_semantics = [#tpu.dimension_semantics<parallel>], iteration_bounds = array<i64: 2>, scalar_prefetch = 0 : i64, scratch_operands = 0 : i64, tpu.core_type = #tpu.core_type<tc>, window_params = [{transform_indices = @transform_0, window_bounds = array<i64: 72>}, {transform_indices = @transform_1, window_bounds = array<i64: 8, 128>}, {transform_indices = @transform_2, window_bounds = array<i64: 8, 128>}, {transform_indices = @transform_3, window_bounds = array<i64: 8, 128>}, {transform_indices = @transform_4, window_bounds = array<i64: 16, 8, 128>}, {pipeline_mode = #tpu.pipeline_mode<synchronous>, transform_indices = @transform_5, window_bounds = array<i64: 64, 8>}, {pipeline_mode = #tpu.pipeline_mode<synchronous>, transform_indices = @transform_6, window_bounds = array<i64: 64, 1>}, {pipeline_mode = #tpu.pipeline_mode<synchronous>, transform_indices = @transform_7, window_bounds = array<i64: 64, 1>}, {pipeline_mode = #tpu.pipeline_mode<synchronous>, transform_indices = @transform_8, window_bounds = array<i64: 8, 64>}, {pipeline_mode = #tpu.pipeline_mode<synchronous>, transform_indices = @transform_9, window_bounds = array<i64: 8, 1>}, {transform_indices = @transform_10, window_bounds = array<i64: 8, 128>}]} {
    %c0 = arith.constant 0 : index
    %c0_0 = arith.constant 0 : index
    %0 = vector.load %arg3[%c0, %c0_0] : memref<8x128xf32, #tpu.memory_space<vmem>>, vector<8x128xf32>
    %c0_1 = arith.constant 0 : index
    %c0_2 = arith.constant 0 : index
    %1 = vector.load %arg4[%c0_1, %c0_2] : memref<8x128xf32, #tpu.memory_space<vmem>>, vector<8x128xf32>
    %c0_3 = arith.constant 0 : index
    %c0_4 = arith.constant 0 : index
    %2 = vector.load %arg6[%c0_3, %c0_4] : memref<64x8xf32, #tpu.memory_space<vmem>>, vector<64x8xf32>
    %c0_5 = arith.constant 0 : index
    %c0_6 = arith.constant 0 : index
    %3 = vector.load %arg9[%c0_5, %c0_6] : memref<8x64xf32, #tpu.memory_space<vmem>>, vector<8x64xf32>
    %c0_7 = arith.constant 0 : index
    %c0_8 = arith.constant 0 : index
    %4 = vector.load %arg7[%c0_7, %c0_8] : memref<64x1xf32, #tpu.memory_space<vmem>>, vector<64x1xf32>
    %c0_9 = arith.constant 0 : index
    %c0_10 = arith.constant 0 : index
    %5 = vector.load %arg8[%c0_9, %c0_10] : memref<64x1xf32, #tpu.memory_space<vmem>>, vector<64x1xf32>
    %c0_11 = arith.constant 0 : index
    %c0_12 = arith.constant 0 : index
    %6 = vector.load %arg10[%c0_11, %c0_12] : memref<8x1xf32, #tpu.memory_space<vmem>>, vector<8x1xf32>
    %c0_13 = arith.constant 0 : index
    %c0_14 = arith.constant 0 : index
    %7 = vector.load %arg2[%c0_13, %c0_14] : memref<8x128xf32, #tpu.memory_space<vmem>>, vector<8x128xf32>
    %c0_i32 = arith.constant 0 : i32
    %c0_i32_15 = arith.constant 0 : i32
    %8 = arith.addi %c0_i32_15, %c0_i32 : i32
    %9 = arith.index_cast %8 : i32 to index
    %10 = memref.load %arg1[%9] : memref<72xf32, #tpu.memory_space<smem>>
    %11 = vector.broadcast %10 : f32 to vector<64x1xf32>
    %12 = arith.mulf %11, %5 : vector<64x1xf32>
    %13 = arith.addf %4, %12 : vector<64x1xf32>
    %cst = arith.constant dense<0.000000e+00> : vector<64x128xf32>
    %14 = tpu.matmul %2, %7, %cst {dimension_numbers = #tpu.dot_dimension_numbers<[1], [0], [0], [1], [0, 0, 1, 1], [], []>} : vector<64x8xf32>, vector<8x128xf32>, vector<64x128xf32> -> vector<64x128xf32>
    %15 = vector.broadcast %13 : vector<64x1xf32> to vector<64x128xf32>
    %16 = arith.addf %14, %15 : vector<64x128xf32>
    %17 = arith.negf %16 : vector<64x128xf32>
    %18 = math.exp %17 : vector<64x128xf32>
    %cst_16 = arith.constant 1.000000e+00 : f32
    %19 = vector.broadcast %cst_16 : f32 to vector<64x128xf32>
    %20 = arith.addf %19, %18 : vector<64x128xf32>
    %21 = arith.divf %19, %20 : vector<64x128xf32>
    %22 = arith.mulf %16, %21 : vector<64x128xf32>
    %cst_17 = arith.constant dense<0.000000e+00> : vector<8x128xf32>
    %23 = tpu.matmul %3, %22, %cst_17 {dimension_numbers = #tpu.dot_dimension_numbers<[1], [0], [0], [1], [0, 0, 1, 1], [], []>} : vector<8x64xf32>, vector<64x128xf32>, vector<8x128xf32> -> vector<8x128xf32>
    %24 = vector.broadcast %6 : vector<8x1xf32> to vector<8x128xf32>
    %25 = arith.addf %23, %24 : vector<8x128xf32>
    %c8_i32 = arith.constant 8 : i32
    %26 = arith.addi %c8_i32, %c0_i32 : i32
    %27 = arith.index_cast %26 : i32 to index
    %28 = memref.load %arg1[%27] : memref<72xf32, #tpu.memory_space<smem>>
    %c16_i32 = arith.constant 16 : i32
    %29 = arith.addi %c16_i32, %c0_i32 : i32
    %30 = arith.index_cast %29 : i32 to index
    %31 = memref.load %arg1[%30] : memref<72xf32, #tpu.memory_space<smem>>
    %c24_i32 = arith.constant 24 : i32
    %32 = arith.addi %c24_i32, %c0_i32 : i32
    %33 = arith.index_cast %32 : i32 to index
    %34 = memref.load %arg1[%33] : memref<72xf32, #tpu.memory_space<smem>>
    %c32_i32 = arith.constant 32 : i32
    %35 = arith.addi %c32_i32, %c0_i32 : i32
    %36 = arith.index_cast %35 : i32 to index
    %37 = memref.load %arg1[%36] : memref<72xf32, #tpu.memory_space<smem>>
    %38 = vector.broadcast %28 : f32 to vector<8x128xf32>
    %39 = arith.mulf %38, %7 : vector<8x128xf32>
    %40 = vector.broadcast %31 : f32 to vector<8x128xf32>
    %41 = arith.mulf %40, %25 : vector<8x128xf32>
    %42 = arith.addf %39, %41 : vector<8x128xf32>
    %43 = vector.broadcast %34 : f32 to vector<8x128xf32>
    %44 = arith.mulf %43, %0 : vector<8x128xf32>
    %c2_i32 = arith.constant 2 : i32
    %45 = arith.muli %c0_i32, %c2_i32 : i32
    %c0_i32_18 = arith.constant 0 : i32
    %46 = arith.addi %45, %c0_i32_18 : i32
    %47 = arith.index_cast %46 : i32 to index
    %c0_19 = arith.constant 0 : index
    %c0_20 = arith.constant 0 : index
    %48 = vector.load %arg5[%47, %c0_19, %c0_20] : memref<16x8x128xf32, #tpu.memory_space<vmem>>, vector<1x8x128xf32>
    %49 = vector.shape_cast %48 : vector<1x8x128xf32> to vector<8x128xf32>
    %50 = vector.broadcast %37 : f32 to vector<8x128xf32>
    %51 = arith.mulf %50, %49 : vector<8x128xf32>
    %52 = arith.addf %44, %51 : vector<8x128xf32>
    %53 = arith.subf %52, %42 : vector<8x128xf32>
    %54 = arith.mulf %1, %53 : vector<8x128xf32>
    %55 = arith.addf %42, %54 : vector<8x128xf32>
    %cst_21 = arith.constant dense<0.000000e+00> : vector<64x128xf32>
    %56 = tpu.matmul %2, %55, %cst_21 {dimension_numbers = #tpu.dot_dimension_numbers<[1], [0], [0], [1], [0, 0, 1, 1], [], []>} : vector<64x8xf32>, vector<8x128xf32>, vector<64x128xf32> -> vector<64x128xf32>
    %57 = vector.broadcast %13 : vector<64x1xf32> to vector<64x128xf32>
    %58 = arith.addf %56, %57 : vector<64x128xf32>
    %59 = arith.negf %58 : vector<64x128xf32>
    %60 = math.exp %59 : vector<64x128xf32>
    %cst_22 = arith.constant 1.000000e+00 : f32
    %61 = vector.broadcast %cst_22 : f32 to vector<64x128xf32>
    %62 = arith.addf %61, %60 : vector<64x128xf32>
    %63 = arith.divf %61, %62 : vector<64x128xf32>
    %64 = arith.mulf %58, %63 : vector<64x128xf32>
    %cst_23 = arith.constant dense<0.000000e+00> : vector<8x128xf32>
    %65 = tpu.matmul %3, %64, %cst_23 {dimension_numbers = #tpu.dot_dimension_numbers<[1], [0], [0], [1], [0, 0, 1, 1], [], []>} : vector<8x64xf32>, vector<64x128xf32>, vector<8x128xf32> -> vector<8x128xf32>
    %66 = vector.broadcast %6 : vector<8x1xf32> to vector<8x128xf32>
    %67 = arith.addf %65, %66 : vector<8x128xf32>
    %c40_i32 = arith.constant 40 : i32
    %68 = arith.addi %c40_i32, %c0_i32 : i32
    %69 = arith.index_cast %68 : i32 to index
    %70 = memref.load %arg1[%69] : memref<72xf32, #tpu.memory_space<smem>>
    %c48_i32 = arith.constant 48 : i32
    %71 = arith.addi %c48_i32, %c0_i32 : i32
    %72 = arith.index_cast %71 : i32 to index
    %73 = memref.load %arg1[%72] : memref<72xf32, #tpu.memory_space<smem>>
    %c56_i32 = arith.constant 56 : i32
    %74 = arith.addi %c56_i32, %c0_i32 : i32
    %75 = arith.index_cast %74 : i32 to index
    %76 = memref.load %arg1[%75] : memref<72xf32, #tpu.memory_space<smem>>
    %c64_i32 = arith.constant 64 : i32
    %77 = arith.addi %c64_i32, %c0_i32 : i32
    %78 = arith.index_cast %77 : i32 to index
    %79 = memref.load %arg1[%78] : memref<72xf32, #tpu.memory_space<smem>>
    %80 = vector.broadcast %70 : f32 to vector<8x128xf32>
    %81 = arith.mulf %80, %55 : vector<8x128xf32>
    %82 = vector.broadcast %73 : f32 to vector<8x128xf32>
    %83 = arith.mulf %82, %67 : vector<8x128xf32>
    %84 = arith.addf %81, %83 : vector<8x128xf32>
    %85 = vector.broadcast %76 : f32 to vector<8x128xf32>
    %86 = arith.mulf %85, %0 : vector<8x128xf32>
    %c2_i32_24 = arith.constant 2 : i32
    %87 = arith.muli %c0_i32, %c2_i32_24 : i32
    %c1_i32 = arith.constant 1 : i32
    %88 = arith.addi %87, %c1_i32 : i32
    %89 = arith.index_cast %88 : i32 to index
    %c0_25 = arith.constant 0 : index
    %c0_26 = arith.constant 0 : index
    %90 = vector.load %arg5[%89, %c0_25, %c0_26] : memref<16x8x128xf32, #tpu.memory_space<vmem>>, vector<1x8x128xf32>
    %91 = vector.shape_cast %90 : vector<1x8x128xf32> to vector<8x128xf32>
    %92 = vector.broadcast %79 : f32 to vector<8x128xf32>
    %93 = arith.mulf %92, %91 : vector<8x128xf32>
    %94 = arith.addf %86, %93 : vector<8x128xf32>
    %95 = arith.subf %94, %84 : vector<8x128xf32>
    %96 = arith.mulf %1, %95 : vector<8x128xf32>
    %97 = arith.addf %84, %96 : vector<8x128xf32>
    %c1_i32_27 = arith.constant 1 : i32
    %c0_i32_28 = arith.constant 0 : i32
    %98 = arith.addi %c0_i32_28, %c1_i32_27 : i32
    %99 = arith.index_cast %98 : i32 to index
    %100 = memref.load %arg1[%99] : memref<72xf32, #tpu.memory_space<smem>>
    %101 = vector.broadcast %100 : f32 to vector<64x1xf32>
    %102 = arith.mulf %101, %5 : vector<64x1xf32>
    %103 = arith.addf %4, %102 : vector<64x1xf32>
    %cst_29 = arith.constant dense<0.000000e+00> : vector<64x128xf32>
    %104 = tpu.matmul %2, %97, %cst_29 {dimension_numbers = #tpu.dot_dimension_numbers<[1], [0], [0], [1], [0, 0, 1, 1], [], []>} : vector<64x8xf32>, vector<8x128xf32>, vector<64x128xf32> -> vector<64x128xf32>
    %105 = vector.broadcast %103 : vector<64x1xf32> to vector<64x128xf32>
    %106 = arith.addf %104, %105 : vector<64x128xf32>
    %107 = arith.negf %106 : vector<64x128xf32>
    %108 = math.exp %107 : vector<64x128xf32>
    %cst_30 = arith.constant 1.000000e+00 : f32
    %109 = vector.broadcast %cst_30 : f32 to vector<64x128xf32>
    %110 = arith.addf %109, %108 : vector<64x128xf32>
    %111 = arith.divf %109, %110 : vector<64x128xf32>
    %112 = arith.mulf %106, %111 : vector<64x128xf32>
    %cst_31 = arith.constant dense<0.000000e+00> : vector<8x128xf32>
    %113 = tpu.matmul %3, %112, %cst_31 {dimension_numbers = #tpu.dot_dimension_numbers<[1], [0], [0], [1], [0, 0, 1, 1], [], []>} : vector<8x64xf32>, vector<64x128xf32>, vector<8x128xf32> -> vector<8x128xf32>
    %114 = vector.broadcast %6 : vector<8x1xf32> to vector<8x128xf32>
    %115 = arith.addf %113, %114 : vector<8x128xf32>
    %c8_i32_32 = arith.constant 8 : i32
    %116 = arith.addi %c8_i32_32, %c1_i32_27 : i32
    %117 = arith.index_cast %116 : i32 to index
    %118 = memref.load %arg1[%117] : memref<72xf32, #tpu.memory_space<smem>>
    %c16_i32_33 = arith.constant 16 : i32
    %119 = arith.addi %c16_i32_33, %c1_i32_27 : i32
    %120 = arith.index_cast %119 : i32 to index
    %121 = memref.load %arg1[%120] : memref<72xf32, #tpu.memory_space<smem>>
    %c24_i32_34 = arith.constant 24 : i32
    %122 = arith.addi %c24_i32_34, %c1_i32_27 : i32
    %123 = arith.index_cast %122 : i32 to index
    %124 = memref.load %arg1[%123] : memref<72xf32, #tpu.memory_space<smem>>
    %c32_i32_35 = arith.constant 32 : i32
    %125 = arith.addi %c32_i32_35, %c1_i32_27 : i32
    %126 = arith.index_cast %125 : i32 to index
    %127 = memref.load %arg1[%126] : memref<72xf32, #tpu.memory_space<smem>>
    %128 = vector.broadcast %118 : f32 to vector<8x128xf32>
    %129 = arith.mulf %128, %97 : vector<8x128xf32>
    %130 = vector.broadcast %121 : f32 to vector<8x128xf32>
    %131 = arith.mulf %130, %115 : vector<8x128xf32>
    %132 = arith.addf %129, %131 : vector<8x128xf32>
    %133 = vector.broadcast %124 : f32 to vector<8x128xf32>
    %134 = arith.mulf %133, %0 : vector<8x128xf32>
    %c2_i32_36 = arith.constant 2 : i32
    %135 = arith.muli %c1_i32_27, %c2_i32_36 : i32
    %c0_i32_37 = arith.constant 0 : i32
    %136 = arith.addi %135, %c0_i32_37 : i32
    %137 = arith.index_cast %136 : i32 to index
    %c0_38 = arith.constant 0 : index
    %c0_39 = arith.constant 0 : index
    %138 = vector.load %arg5[%137, %c0_38, %c0_39] : memref<16x8x128xf32, #tpu.memory_space<vmem>>, vector<1x8x128xf32>
    %139 = vector.shape_cast %138 : vector<1x8x128xf32> to vector<8x128xf32>
    %140 = vector.broadcast %127 : f32 to vector<8x128xf32>
    %141 = arith.mulf %140, %139 : vector<8x128xf32>
    %142 = arith.addf %134, %141 : vector<8x128xf32>
    %143 = arith.subf %142, %132 : vector<8x128xf32>
    %144 = arith.mulf %1, %143 : vector<8x128xf32>
    %145 = arith.addf %132, %144 : vector<8x128xf32>
    %cst_40 = arith.constant dense<0.000000e+00> : vector<64x128xf32>
    %146 = tpu.matmul %2, %145, %cst_40 {dimension_numbers = #tpu.dot_dimension_numbers<[1], [0], [0], [1], [0, 0, 1, 1], [], []>} : vector<64x8xf32>, vector<8x128xf32>, vector<64x128xf32> -> vector<64x128xf32>
    %147 = vector.broadcast %103 : vector<64x1xf32> to vector<64x128xf32>
    %148 = arith.addf %146, %147 : vector<64x128xf32>
    %149 = arith.negf %148 : vector<64x128xf32>
    %150 = math.exp %149 : vector<64x128xf32>
    %cst_41 = arith.constant 1.000000e+00 : f32
    %151 = vector.broadcast %cst_41 : f32 to vector<64x128xf32>
    %152 = arith.addf %151, %150 : vector<64x128xf32>
    %153 = arith.divf %151, %152 : vector<64x128xf32>
    %154 = arith.mulf %148, %153 : vector<64x128xf32>
    %cst_42 = arith.constant dense<0.000000e+00> : vector<8x128xf32>
    %155 = tpu.matmul %3, %154, %cst_42 {dimension_numbers = #tpu.dot_dimension_numbers<[1], [0], [0], [1], [0, 0, 1, 1], [], []>} : vector<8x64xf32>, vector<64x128xf32>, vector<8x128xf32> -> vector<8x128xf32>
    %156 = vector.broadcast %6 : vector<8x1xf32> to vector<8x128xf32>
    %157 = arith.addf %155, %156 : vector<8x128xf32>
    %c40_i32_43 = arith.constant 40 : i32
    %158 = arith.addi %c40_i32_43, %c1_i32_27 : i32
    %159 = arith.index_cast %158 : i32 to index
    %160 = memref.load %arg1[%159] : memref<72xf32, #tpu.memory_space<smem>>
    %c48_i32_44 = arith.constant 48 : i32
    %161 = arith.addi %c48_i32_44, %c1_i32_27 : i32
    %162 = arith.index_cast %161 : i32 to index
    %163 = memref.load %arg1[%162] : memref<72xf32, #tpu.memory_space<smem>>
    %c56_i32_45 = arith.constant 56 : i32
    %164 = arith.addi %c56_i32_45, %c1_i32_27 : i32
    %165 = arith.index_cast %164 : i32 to index
    %166 = memref.load %arg1[%165] : memref<72xf32, #tpu.memory_space<smem>>
    %c64_i32_46 = arith.constant 64 : i32
    %167 = arith.addi %c64_i32_46, %c1_i32_27 : i32
    %168 = arith.index_cast %167 : i32 to index
    %169 = memref.load %arg1[%168] : memref<72xf32, #tpu.memory_space<smem>>
    %170 = vector.broadcast %160 : f32 to vector<8x128xf32>
    %171 = arith.mulf %170, %145 : vector<8x128xf32>
    %172 = vector.broadcast %163 : f32 to vector<8x128xf32>
    %173 = arith.mulf %172, %157 : vector<8x128xf32>
    %174 = arith.addf %171, %173 : vector<8x128xf32>
    %175 = vector.broadcast %166 : f32 to vector<8x128xf32>
    %176 = arith.mulf %175, %0 : vector<8x128xf32>
    %c2_i32_47 = arith.constant 2 : i32
    %177 = arith.muli %c1_i32_27, %c2_i32_47 : i32
    %c1_i32_48 = arith.constant 1 : i32
    %178 = arith.addi %177, %c1_i32_48 : i32
    %179 = arith.index_cast %178 : i32 to index
    %c0_49 = arith.constant 0 : index
    %c0_50 = arith.constant 0 : index
    %180 = vector.load %arg5[%179, %c0_49, %c0_50] : memref<16x8x128xf32, #tpu.memory_space<vmem>>, vector<1x8x128xf32>
    %181 = vector.shape_cast %180 : vector<1x8x128xf32> to vector<8x128xf32>
    %182 = vector.broadcast %169 : f32 to vector<8x128xf32>
    %183 = arith.mulf %182, %181 : vector<8x128xf32>
    %184 = arith.addf %176, %183 : vector<8x128xf32>
    %185 = arith.subf %184, %174 : vector<8x128xf32>
    %186 = arith.mulf %1, %185 : vector<8x128xf32>
    %187 = arith.addf %174, %186 : vector<8x128xf32>
    %c2_i32_51 = arith.constant 2 : i32
    %c0_i32_52 = arith.constant 0 : i32
    %188 = arith.addi %c0_i32_52, %c2_i32_51 : i32
    %189 = arith.index_cast %188 : i32 to index
    %190 = memref.load %arg1[%189] : memref<72xf32, #tpu.memory_space<smem>>
    %191 = vector.broadcast %190 : f32 to vector<64x1xf32>
    %192 = arith.mulf %191, %5 : vector<64x1xf32>
    %193 = arith.addf %4, %192 : vector<64x1xf32>
    %cst_53 = arith.constant dense<0.000000e+00> : vector<64x128xf32>
    %194 = tpu.matmul %2, %187, %cst_53 {dimension_numbers = #tpu.dot_dimension_numbers<[1], [0], [0], [1], [0, 0, 1, 1], [], []>} : vector<64x8xf32>, vector<8x128xf32>, vector<64x128xf32> -> vector<64x128xf32>
    %195 = vector.broadcast %193 : vector<64x1xf32> to vector<64x128xf32>
    %196 = arith.addf %194, %195 : vector<64x128xf32>
    %197 = arith.negf %196 : vector<64x128xf32>
    %198 = math.exp %197 : vector<64x128xf32>
    %cst_54 = arith.constant 1.000000e+00 : f32
    %199 = vector.broadcast %cst_54 : f32 to vector<64x128xf32>
    %200 = arith.addf %199, %198 : vector<64x128xf32>
    %201 = arith.divf %199, %200 : vector<64x128xf32>
    %202 = arith.mulf %196, %201 : vector<64x128xf32>
    %cst_55 = arith.constant dense<0.000000e+00> : vector<8x128xf32>
    %203 = tpu.matmul %3, %202, %cst_55 {dimension_numbers = #tpu.dot_dimension_numbers<[1], [0], [0], [1], [0, 0, 1, 1], [], []>} : vector<8x64xf32>, vector<64x128xf32>, vector<8x128xf32> -> vector<8x128xf32>
    %204 = vector.broadcast %6 : vector<8x1xf32> to vector<8x128xf32>
    %205 = arith.addf %203, %204 : vector<8x128xf32>
    %c8_i32_56 = arith.constant 8 : i32
    %206 = arith.addi %c8_i32_56, %c2_i32_51 : i32
    %207 = arith.index_cast %206 : i32 to index
    %208 = memref.load %arg1[%207] : memref<72xf32, #tpu.memory_space<smem>>
    %c16_i32_57 = arith.constant 16 : i32
    %209 = arith.addi %c16_i32_57, %c2_i32_51 : i32
    %210 = arith.index_cast %209 : i32 to index
    %211 = memref.load %arg1[%210] : memref<72xf32, #tpu.memory_space<smem>>
    %c24_i32_58 = arith.constant 24 : i32
    %212 = arith.addi %c24_i32_58, %c2_i32_51 : i32
    %213 = arith.index_cast %212 : i32 to index
    %214 = memref.load %arg1[%213] : memref<72xf32, #tpu.memory_space<smem>>
    %c32_i32_59 = arith.constant 32 : i32
    %215 = arith.addi %c32_i32_59, %c2_i32_51 : i32
    %216 = arith.index_cast %215 : i32 to index
    %217 = memref.load %arg1[%216] : memref<72xf32, #tpu.memory_space<smem>>
    %218 = vector.broadcast %208 : f32 to vector<8x128xf32>
    %219 = arith.mulf %218, %187 : vector<8x128xf32>
    %220 = vector.broadcast %211 : f32 to vector<8x128xf32>
    %221 = arith.mulf %220, %205 : vector<8x128xf32>
    %222 = arith.addf %219, %221 : vector<8x128xf32>
    %223 = vector.broadcast %214 : f32 to vector<8x128xf32>
    %224 = arith.mulf %223, %0 : vector<8x128xf32>
    %c2_i32_60 = arith.constant 2 : i32
    %225 = arith.muli %c2_i32_51, %c2_i32_60 : i32
    %c0_i32_61 = arith.constant 0 : i32
    %226 = arith.addi %225, %c0_i32_61 : i32
    %227 = arith.index_cast %226 : i32 to index
    %c0_62 = arith.constant 0 : index
    %c0_63 = arith.constant 0 : index
    %228 = vector.load %arg5[%227, %c0_62, %c0_63] : memref<16x8x128xf32, #tpu.memory_space<vmem>>, vector<1x8x128xf32>
    %229 = vector.shape_cast %228 : vector<1x8x128xf32> to vector<8x128xf32>
    %230 = vector.broadcast %217 : f32 to vector<8x128xf32>
    %231 = arith.mulf %230, %229 : vector<8x128xf32>
    %232 = arith.addf %224, %231 : vector<8x128xf32>
    %233 = arith.subf %232, %222 : vector<8x128xf32>
    %234 = arith.mulf %1, %233 : vector<8x128xf32>
    %235 = arith.addf %222, %234 : vector<8x128xf32>
    %cst_64 = arith.constant dense<0.000000e+00> : vector<64x128xf32>
    %236 = tpu.matmul %2, %235, %cst_64 {dimension_numbers = #tpu.dot_dimension_numbers<[1], [0], [0], [1], [0, 0, 1, 1], [], []>} : vector<64x8xf32>, vector<8x128xf32>, vector<64x128xf32> -> vector<64x128xf32>
    %237 = vector.broadcast %193 : vector<64x1xf32> to vector<64x128xf32>
    %238 = arith.addf %236, %237 : vector<64x128xf32>
    %239 = arith.negf %238 : vector<64x128xf32>
    %240 = math.exp %239 : vector<64x128xf32>
    %cst_65 = arith.constant 1.000000e+00 : f32
    %241 = vector.broadcast %cst_65 : f32 to vector<64x128xf32>
    %242 = arith.addf %241, %240 : vector<64x128xf32>
    %243 = arith.divf %241, %242 : vector<64x128xf32>
    %244 = arith.mulf %238, %243 : vector<64x128xf32>
    %cst_66 = arith.constant dense<0.000000e+00> : vector<8x128xf32>
    %245 = tpu.matmul %3, %244, %cst_66 {dimension_numbers = #tpu.dot_dimension_numbers<[1], [0], [0], [1], [0, 0, 1, 1], [], []>} : vector<8x64xf32>, vector<64x128xf32>, vector<8x128xf32> -> vector<8x128xf32>
    %246 = vector.broadcast %6 : vector<8x1xf32> to vector<8x128xf32>
    %247 = arith.addf %245, %246 : vector<8x128xf32>
    %c40_i32_67 = arith.constant 40 : i32
    %248 = arith.addi %c40_i32_67, %c2_i32_51 : i32
    %249 = arith.index_cast %248 : i32 to index
    %250 = memref.load %arg1[%249] : memref<72xf32, #tpu.memory_space<smem>>
    %c48_i32_68 = arith.constant 48 : i32
    %251 = arith.addi %c48_i32_68, %c2_i32_51 : i32
    %252 = arith.index_cast %251 : i32 to index
    %253 = memref.load %arg1[%252] : memref<72xf32, #tpu.memory_space<smem>>
    %c56_i32_69 = arith.constant 56 : i32
    %254 = arith.addi %c56_i32_69, %c2_i32_51 : i32
    %255 = arith.index_cast %254 : i32 to index
    %256 = memref.load %arg1[%255] : memref<72xf32, #tpu.memory_space<smem>>
    %c64_i32_70 = arith.constant 64 : i32
    %257 = arith.addi %c64_i32_70, %c2_i32_51 : i32
    %258 = arith.index_cast %257 : i32 to index
    %259 = memref.load %arg1[%258] : memref<72xf32, #tpu.memory_space<smem>>
    %260 = vector.broadcast %250 : f32 to vector<8x128xf32>
    %261 = arith.mulf %260, %235 : vector<8x128xf32>
    %262 = vector.broadcast %253 : f32 to vector<8x128xf32>
    %263 = arith.mulf %262, %247 : vector<8x128xf32>
    %264 = arith.addf %261, %263 : vector<8x128xf32>
    %265 = vector.broadcast %256 : f32 to vector<8x128xf32>
    %266 = arith.mulf %265, %0 : vector<8x128xf32>
    %c2_i32_71 = arith.constant 2 : i32
    %267 = arith.muli %c2_i32_51, %c2_i32_71 : i32
    %c1_i32_72 = arith.constant 1 : i32
    %268 = arith.addi %267, %c1_i32_72 : i32
    %269 = arith.index_cast %268 : i32 to index
    %c0_73 = arith.constant 0 : index
    %c0_74 = arith.constant 0 : index
    %270 = vector.load %arg5[%269, %c0_73, %c0_74] : memref<16x8x128xf32, #tpu.memory_space<vmem>>, vector<1x8x128xf32>
    %271 = vector.shape_cast %270 : vector<1x8x128xf32> to vector<8x128xf32>
    %272 = vector.broadcast %259 : f32 to vector<8x128xf32>
    %273 = arith.mulf %272, %271 : vector<8x128xf32>
    %274 = arith.addf %266, %273 : vector<8x128xf32>
    %275 = arith.subf %274, %264 : vector<8x128xf32>
    %276 = arith.mulf %1, %275 : vector<8x128xf32>
    %277 = arith.addf %264, %276 : vector<8x128xf32>
    %c3_i32 = arith.constant 3 : i32
    %c0_i32_75 = arith.constant 0 : i32
    %278 = arith.addi %c0_i32_75, %c3_i32 : i32
    %279 = arith.index_cast %278 : i32 to index
    %280 = memref.load %arg1[%279] : memref<72xf32, #tpu.memory_space<smem>>
    %281 = vector.broadcast %280 : f32 to vector<64x1xf32>
    %282 = arith.mulf %281, %5 : vector<64x1xf32>
    %283 = arith.addf %4, %282 : vector<64x1xf32>
    %cst_76 = arith.constant dense<0.000000e+00> : vector<64x128xf32>
    %284 = tpu.matmul %2, %277, %cst_76 {dimension_numbers = #tpu.dot_dimension_numbers<[1], [0], [0], [1], [0, 0, 1, 1], [], []>} : vector<64x8xf32>, vector<8x128xf32>, vector<64x128xf32> -> vector<64x128xf32>
    %285 = vector.broadcast %283 : vector<64x1xf32> to vector<64x128xf32>
    %286 = arith.addf %284, %285 : vector<64x128xf32>
    %287 = arith.negf %286 : vector<64x128xf32>
    %288 = math.exp %287 : vector<64x128xf32>
    %cst_77 = arith.constant 1.000000e+00 : f32
    %289 = vector.broadcast %cst_77 : f32 to vector<64x128xf32>
    %290 = arith.addf %289, %288 : vector<64x128xf32>
    %291 = arith.divf %289, %290 : vector<64x128xf32>
    %292 = arith.mulf %286, %291 : vector<64x128xf32>
    %cst_78 = arith.constant dense<0.000000e+00> : vector<8x128xf32>
    %293 = tpu.matmul %3, %292, %cst_78 {dimension_numbers = #tpu.dot_dimension_numbers<[1], [0], [0], [1], [0, 0, 1, 1], [], []>} : vector<8x64xf32>, vector<64x128xf32>, vector<8x128xf32> -> vector<8x128xf32>
    %294 = vector.broadcast %6 : vector<8x1xf32> to vector<8x128xf32>
    %295 = arith.addf %293, %294 : vector<8x128xf32>
    %c8_i32_79 = arith.constant 8 : i32
    %296 = arith.addi %c8_i32_79, %c3_i32 : i32
    %297 = arith.index_cast %296 : i32 to index
    %298 = memref.load %arg1[%297] : memref<72xf32, #tpu.memory_space<smem>>
    %c16_i32_80 = arith.constant 16 : i32
    %299 = arith.addi %c16_i32_80, %c3_i32 : i32
    %300 = arith.index_cast %299 : i32 to index
    %301 = memref.load %arg1[%300] : memref<72xf32, #tpu.memory_space<smem>>
    %c24_i32_81 = arith.constant 24 : i32
    %302 = arith.addi %c24_i32_81, %c3_i32 : i32
    %303 = arith.index_cast %302 : i32 to index
    %304 = memref.load %arg1[%303] : memref<72xf32, #tpu.memory_space<smem>>
    %c32_i32_82 = arith.constant 32 : i32
    %305 = arith.addi %c32_i32_82, %c3_i32 : i32
    %306 = arith.index_cast %305 : i32 to index
    %307 = memref.load %arg1[%306] : memref<72xf32, #tpu.memory_space<smem>>
    %308 = vector.broadcast %298 : f32 to vector<8x128xf32>
    %309 = arith.mulf %308, %277 : vector<8x128xf32>
    %310 = vector.broadcast %301 : f32 to vector<8x128xf32>
    %311 = arith.mulf %310, %295 : vector<8x128xf32>
    %312 = arith.addf %309, %311 : vector<8x128xf32>
    %313 = vector.broadcast %304 : f32 to vector<8x128xf32>
    %314 = arith.mulf %313, %0 : vector<8x128xf32>
    %c2_i32_83 = arith.constant 2 : i32
    %315 = arith.muli %c3_i32, %c2_i32_83 : i32
    %c0_i32_84 = arith.constant 0 : i32
    %316 = arith.addi %315, %c0_i32_84 : i32
    %317 = arith.index_cast %316 : i32 to index
    %c0_85 = arith.constant 0 : index
    %c0_86 = arith.constant 0 : index
    %318 = vector.load %arg5[%317, %c0_85, %c0_86] : memref<16x8x128xf32, #tpu.memory_space<vmem>>, vector<1x8x128xf32>
    %319 = vector.shape_cast %318 : vector<1x8x128xf32> to vector<8x128xf32>
    %320 = vector.broadcast %307 : f32 to vector<8x128xf32>
    %321 = arith.mulf %320, %319 : vector<8x128xf32>
    %322 = arith.addf %314, %321 : vector<8x128xf32>
    %323 = arith.subf %322, %312 : vector<8x128xf32>
    %324 = arith.mulf %1, %323 : vector<8x128xf32>
    %325 = arith.addf %312, %324 : vector<8x128xf32>
    %cst_87 = arith.constant dense<0.000000e+00> : vector<64x128xf32>
    %326 = tpu.matmul %2, %325, %cst_87 {dimension_numbers = #tpu.dot_dimension_numbers<[1], [0], [0], [1], [0, 0, 1, 1], [], []>} : vector<64x8xf32>, vector<8x128xf32>, vector<64x128xf32> -> vector<64x128xf32>
    %327 = vector.broadcast %283 : vector<64x1xf32> to vector<64x128xf32>
    %328 = arith.addf %326, %327 : vector<64x128xf32>
    %329 = arith.negf %328 : vector<64x128xf32>
    %330 = math.exp %329 : vector<64x128xf32>
    %cst_88 = arith.constant 1.000000e+00 : f32
    %331 = vector.broadcast %cst_88 : f32 to vector<64x128xf32>
    %332 = arith.addf %331, %330 : vector<64x128xf32>
    %333 = arith.divf %331, %332 : vector<64x128xf32>
    %334 = arith.mulf %328, %333 : vector<64x128xf32>
    %cst_89 = arith.constant dense<0.000000e+00> : vector<8x128xf32>
    %335 = tpu.matmul %3, %334, %cst_89 {dimension_numbers = #tpu.dot_dimension_numbers<[1], [0], [0], [1], [0, 0, 1, 1], [], []>} : vector<8x64xf32>, vector<64x128xf32>, vector<8x128xf32> -> vector<8x128xf32>
    %336 = vector.broadcast %6 : vector<8x1xf32> to vector<8x128xf32>
    %337 = arith.addf %335, %336 : vector<8x128xf32>
    %c40_i32_90 = arith.constant 40 : i32
    %338 = arith.addi %c40_i32_90, %c3_i32 : i32
    %339 = arith.index_cast %338 : i32 to index
    %340 = memref.load %arg1[%339] : memref<72xf32, #tpu.memory_space<smem>>
    %c48_i32_91 = arith.constant 48 : i32
    %341 = arith.addi %c48_i32_91, %c3_i32 : i32
    %342 = arith.index_cast %341 : i32 to index
    %343 = memref.load %arg1[%342] : memref<72xf32, #tpu.memory_space<smem>>
    %c56_i32_92 = arith.constant 56 : i32
    %344 = arith.addi %c56_i32_92, %c3_i32 : i32
    %345 = arith.index_cast %344 : i32 to index
    %346 = memref.load %arg1[%345] : memref<72xf32, #tpu.memory_space<smem>>
    %c64_i32_93 = arith.constant 64 : i32
    %347 = arith.addi %c64_i32_93, %c3_i32 : i32
    %348 = arith.index_cast %347 : i32 to index
    %349 = memref.load %arg1[%348] : memref<72xf32, #tpu.memory_space<smem>>
    %350 = vector.broadcast %340 : f32 to vector<8x128xf32>
    %351 = arith.mulf %350, %325 : vector<8x128xf32>
    %352 = vector.broadcast %343 : f32 to vector<8x128xf32>
    %353 = arith.mulf %352, %337 : vector<8x128xf32>
    %354 = arith.addf %351, %353 : vector<8x128xf32>
    %355 = vector.broadcast %346 : f32 to vector<8x128xf32>
    %356 = arith.mulf %355, %0 : vector<8x128xf32>
    %c2_i32_94 = arith.constant 2 : i32
    %357 = arith.muli %c3_i32, %c2_i32_94 : i32
    %c1_i32_95 = arith.constant 1 : i32
    %358 = arith.addi %357, %c1_i32_95 : i32
    %359 = arith.index_cast %358 : i32 to index
    %c0_96 = arith.constant 0 : index
    %c0_97 = arith.constant 0 : index
    %360 = vector.load %arg5[%359, %c0_96, %c0_97] : memref<16x8x128xf32, #tpu.memory_space<vmem>>, vector<1x8x128xf32>
    %361 = vector.shape_cast %360 : vector<1x8x128xf32> to vector<8x128xf32>
    %362 = vector.broadcast %349 : f32 to vector<8x128xf32>
    %363 = arith.mulf %362, %361 : vector<8x128xf32>
    %364 = arith.addf %356, %363 : vector<8x128xf32>
    %365 = arith.subf %364, %354 : vector<8x128xf32>
    %366 = arith.mulf %1, %365 : vector<8x128xf32>
    %367 = arith.addf %354, %366 : vector<8x128xf32>
    %c4_i32 = arith.constant 4 : i32
    %c0_i32_98 = arith.constant 0 : i32
    %368 = arith.addi %c0_i32_98, %c4_i32 : i32
    %369 = arith.index_cast %368 : i32 to index
    %370 = memref.load %arg1[%369] : memref<72xf32, #tpu.memory_space<smem>>
    %371 = vector.broadcast %370 : f32 to vector<64x1xf32>
    %372 = arith.mulf %371, %5 : vector<64x1xf32>
    %373 = arith.addf %4, %372 : vector<64x1xf32>
    %cst_99 = arith.constant dense<0.000000e+00> : vector<64x128xf32>
    %374 = tpu.matmul %2, %367, %cst_99 {dimension_numbers = #tpu.dot_dimension_numbers<[1], [0], [0], [1], [0, 0, 1, 1], [], []>} : vector<64x8xf32>, vector<8x128xf32>, vector<64x128xf32> -> vector<64x128xf32>
    %375 = vector.broadcast %373 : vector<64x1xf32> to vector<64x128xf32>
    %376 = arith.addf %374, %375 : vector<64x128xf32>
    %377 = arith.negf %376 : vector<64x128xf32>
    %378 = math.exp %377 : vector<64x128xf32>
    %cst_100 = arith.constant 1.000000e+00 : f32
    %379 = vector.broadcast %cst_100 : f32 to vector<64x128xf32>
    %380 = arith.addf %379, %378 : vector<64x128xf32>
    %381 = arith.divf %379, %380 : vector<64x128xf32>
    %382 = arith.mulf %376, %381 : vector<64x128xf32>
    %cst_101 = arith.constant dense<0.000000e+00> : vector<8x128xf32>
    %383 = tpu.matmul %3, %382, %cst_101 {dimension_numbers = #tpu.dot_dimension_numbers<[1], [0], [0], [1], [0, 0, 1, 1], [], []>} : vector<8x64xf32>, vector<64x128xf32>, vector<8x128xf32> -> vector<8x128xf32>
    %384 = vector.broadcast %6 : vector<8x1xf32> to vector<8x128xf32>
    %385 = arith.addf %383, %384 : vector<8x128xf32>
    %c8_i32_102 = arith.constant 8 : i32
    %386 = arith.addi %c8_i32_102, %c4_i32 : i32
    %387 = arith.index_cast %386 : i32 to index
    %388 = memref.load %arg1[%387] : memref<72xf32, #tpu.memory_space<smem>>
    %c16_i32_103 = arith.constant 16 : i32
    %389 = arith.addi %c16_i32_103, %c4_i32 : i32
    %390 = arith.index_cast %389 : i32 to index
    %391 = memref.load %arg1[%390] : memref<72xf32, #tpu.memory_space<smem>>
    %c24_i32_104 = arith.constant 24 : i32
    %392 = arith.addi %c24_i32_104, %c4_i32 : i32
    %393 = arith.index_cast %392 : i32 to index
    %394 = memref.load %arg1[%393] : memref<72xf32, #tpu.memory_space<smem>>
    %c32_i32_105 = arith.constant 32 : i32
    %395 = arith.addi %c32_i32_105, %c4_i32 : i32
    %396 = arith.index_cast %395 : i32 to index
    %397 = memref.load %arg1[%396] : memref<72xf32, #tpu.memory_space<smem>>
    %398 = vector.broadcast %388 : f32 to vector<8x128xf32>
    %399 = arith.mulf %398, %367 : vector<8x128xf32>
    %400 = vector.broadcast %391 : f32 to vector<8x128xf32>
    %401 = arith.mulf %400, %385 : vector<8x128xf32>
    %402 = arith.addf %399, %401 : vector<8x128xf32>
    %403 = vector.broadcast %394 : f32 to vector<8x128xf32>
    %404 = arith.mulf %403, %0 : vector<8x128xf32>
    %c2_i32_106 = arith.constant 2 : i32
    %405 = arith.muli %c4_i32, %c2_i32_106 : i32
    %c0_i32_107 = arith.constant 0 : i32
    %406 = arith.addi %405, %c0_i32_107 : i32
    %407 = arith.index_cast %406 : i32 to index
    %c0_108 = arith.constant 0 : index
    %c0_109 = arith.constant 0 : index
    %408 = vector.load %arg5[%407, %c0_108, %c0_109] : memref<16x8x128xf32, #tpu.memory_space<vmem>>, vector<1x8x128xf32>
    %409 = vector.shape_cast %408 : vector<1x8x128xf32> to vector<8x128xf32>
    %410 = vector.broadcast %397 : f32 to vector<8x128xf32>
    %411 = arith.mulf %410, %409 : vector<8x128xf32>
    %412 = arith.addf %404, %411 : vector<8x128xf32>
    %413 = arith.subf %412, %402 : vector<8x128xf32>
    %414 = arith.mulf %1, %413 : vector<8x128xf32>
    %415 = arith.addf %402, %414 : vector<8x128xf32>
    %cst_110 = arith.constant dense<0.000000e+00> : vector<64x128xf32>
    %416 = tpu.matmul %2, %415, %cst_110 {dimension_numbers = #tpu.dot_dimension_numbers<[1], [0], [0], [1], [0, 0, 1, 1], [], []>} : vector<64x8xf32>, vector<8x128xf32>, vector<64x128xf32> -> vector<64x128xf32>
    %417 = vector.broadcast %373 : vector<64x1xf32> to vector<64x128xf32>
    %418 = arith.addf %416, %417 : vector<64x128xf32>
    %419 = arith.negf %418 : vector<64x128xf32>
    %420 = math.exp %419 : vector<64x128xf32>
    %cst_111 = arith.constant 1.000000e+00 : f32
    %421 = vector.broadcast %cst_111 : f32 to vector<64x128xf32>
    %422 = arith.addf %421, %420 : vector<64x128xf32>
    %423 = arith.divf %421, %422 : vector<64x128xf32>
    %424 = arith.mulf %418, %423 : vector<64x128xf32>
    %cst_112 = arith.constant dense<0.000000e+00> : vector<8x128xf32>
    %425 = tpu.matmul %3, %424, %cst_112 {dimension_numbers = #tpu.dot_dimension_numbers<[1], [0], [0], [1], [0, 0, 1, 1], [], []>} : vector<8x64xf32>, vector<64x128xf32>, vector<8x128xf32> -> vector<8x128xf32>
    %426 = vector.broadcast %6 : vector<8x1xf32> to vector<8x128xf32>
    %427 = arith.addf %425, %426 : vector<8x128xf32>
    %c40_i32_113 = arith.constant 40 : i32
    %428 = arith.addi %c40_i32_113, %c4_i32 : i32
    %429 = arith.index_cast %428 : i32 to index
    %430 = memref.load %arg1[%429] : memref<72xf32, #tpu.memory_space<smem>>
    %c48_i32_114 = arith.constant 48 : i32
    %431 = arith.addi %c48_i32_114, %c4_i32 : i32
    %432 = arith.index_cast %431 : i32 to index
    %433 = memref.load %arg1[%432] : memref<72xf32, #tpu.memory_space<smem>>
    %c56_i32_115 = arith.constant 56 : i32
    %434 = arith.addi %c56_i32_115, %c4_i32 : i32
    %435 = arith.index_cast %434 : i32 to index
    %436 = memref.load %arg1[%435] : memref<72xf32, #tpu.memory_space<smem>>
    %c64_i32_116 = arith.constant 64 : i32
    %437 = arith.addi %c64_i32_116, %c4_i32 : i32
    %438 = arith.index_cast %437 : i32 to index
    %439 = memref.load %arg1[%438] : memref<72xf32, #tpu.memory_space<smem>>
    %440 = vector.broadcast %430 : f32 to vector<8x128xf32>
    %441 = arith.mulf %440, %415 : vector<8x128xf32>
    %442 = vector.broadcast %433 : f32 to vector<8x128xf32>
    %443 = arith.mulf %442, %427 : vector<8x128xf32>
    %444 = arith.addf %441, %443 : vector<8x128xf32>
    %445 = vector.broadcast %436 : f32 to vector<8x128xf32>
    %446 = arith.mulf %445, %0 : vector<8x128xf32>
    %c2_i32_117 = arith.constant 2 : i32
    %447 = arith.muli %c4_i32, %c2_i32_117 : i32
    %c1_i32_118 = arith.constant 1 : i32
    %448 = arith.addi %447, %c1_i32_118 : i32
    %449 = arith.index_cast %448 : i32 to index
    %c0_119 = arith.constant 0 : index
    %c0_120 = arith.constant 0 : index
    %450 = vector.load %arg5[%449, %c0_119, %c0_120] : memref<16x8x128xf32, #tpu.memory_space<vmem>>, vector<1x8x128xf32>
    %451 = vector.shape_cast %450 : vector<1x8x128xf32> to vector<8x128xf32>
    %452 = vector.broadcast %439 : f32 to vector<8x128xf32>
    %453 = arith.mulf %452, %451 : vector<8x128xf32>
    %454 = arith.addf %446, %453 : vector<8x128xf32>
    %455 = arith.subf %454, %444 : vector<8x128xf32>
    %456 = arith.mulf %1, %455 : vector<8x128xf32>
    %457 = arith.addf %444, %456 : vector<8x128xf32>
    %c5_i32 = arith.constant 5 : i32
    %c0_i32_121 = arith.constant 0 : i32
    %458 = arith.addi %c0_i32_121, %c5_i32 : i32
    %459 = arith.index_cast %458 : i32 to index
    %460 = memref.load %arg1[%459] : memref<72xf32, #tpu.memory_space<smem>>
    %461 = vector.broadcast %460 : f32 to vector<64x1xf32>
    %462 = arith.mulf %461, %5 : vector<64x1xf32>
    %463 = arith.addf %4, %462 : vector<64x1xf32>
    %cst_122 = arith.constant dense<0.000000e+00> : vector<64x128xf32>
    %464 = tpu.matmul %2, %457, %cst_122 {dimension_numbers = #tpu.dot_dimension_numbers<[1], [0], [0], [1], [0, 0, 1, 1], [], []>} : vector<64x8xf32>, vector<8x128xf32>, vector<64x128xf32> -> vector<64x128xf32>
    %465 = vector.broadcast %463 : vector<64x1xf32> to vector<64x128xf32>
    %466 = arith.addf %464, %465 : vector<64x128xf32>
    %467 = arith.negf %466 : vector<64x128xf32>
    %468 = math.exp %467 : vector<64x128xf32>
    %cst_123 = arith.constant 1.000000e+00 : f32
    %469 = vector.broadcast %cst_123 : f32 to vector<64x128xf32>
    %470 = arith.addf %469, %468 : vector<64x128xf32>
    %471 = arith.divf %469, %470 : vector<64x128xf32>
    %472 = arith.mulf %466, %471 : vector<64x128xf32>
    %cst_124 = arith.constant dense<0.000000e+00> : vector<8x128xf32>
    %473 = tpu.matmul %3, %472, %cst_124 {dimension_numbers = #tpu.dot_dimension_numbers<[1], [0], [0], [1], [0, 0, 1, 1], [], []>} : vector<8x64xf32>, vector<64x128xf32>, vector<8x128xf32> -> vector<8x128xf32>
    %474 = vector.broadcast %6 : vector<8x1xf32> to vector<8x128xf32>
    %475 = arith.addf %473, %474 : vector<8x128xf32>
    %c8_i32_125 = arith.constant 8 : i32
    %476 = arith.addi %c8_i32_125, %c5_i32 : i32
    %477 = arith.index_cast %476 : i32 to index
    %478 = memref.load %arg1[%477] : memref<72xf32, #tpu.memory_space<smem>>
    %c16_i32_126 = arith.constant 16 : i32
    %479 = arith.addi %c16_i32_126, %c5_i32 : i32
    %480 = arith.index_cast %479 : i32 to index
    %481 = memref.load %arg1[%480] : memref<72xf32, #tpu.memory_space<smem>>
    %c24_i32_127 = arith.constant 24 : i32
    %482 = arith.addi %c24_i32_127, %c5_i32 : i32
    %483 = arith.index_cast %482 : i32 to index
    %484 = memref.load %arg1[%483] : memref<72xf32, #tpu.memory_space<smem>>
    %c32_i32_128 = arith.constant 32 : i32
    %485 = arith.addi %c32_i32_128, %c5_i32 : i32
    %486 = arith.index_cast %485 : i32 to index
    %487 = memref.load %arg1[%486] : memref<72xf32, #tpu.memory_space<smem>>
    %488 = vector.broadcast %478 : f32 to vector<8x128xf32>
    %489 = arith.mulf %488, %457 : vector<8x128xf32>
    %490 = vector.broadcast %481 : f32 to vector<8x128xf32>
    %491 = arith.mulf %490, %475 : vector<8x128xf32>
    %492 = arith.addf %489, %491 : vector<8x128xf32>
    %493 = vector.broadcast %484 : f32 to vector<8x128xf32>
    %494 = arith.mulf %493, %0 : vector<8x128xf32>
    %c2_i32_129 = arith.constant 2 : i32
    %495 = arith.muli %c5_i32, %c2_i32_129 : i32
    %c0_i32_130 = arith.constant 0 : i32
    %496 = arith.addi %495, %c0_i32_130 : i32
    %497 = arith.index_cast %496 : i32 to index
    %c0_131 = arith.constant 0 : index
    %c0_132 = arith.constant 0 : index
    %498 = vector.load %arg5[%497, %c0_131, %c0_132] : memref<16x8x128xf32, #tpu.memory_space<vmem>>, vector<1x8x128xf32>
    %499 = vector.shape_cast %498 : vector<1x8x128xf32> to vector<8x128xf32>
    %500 = vector.broadcast %487 : f32 to vector<8x128xf32>
    %501 = arith.mulf %500, %499 : vector<8x128xf32>
    %502 = arith.addf %494, %501 : vector<8x128xf32>
    %503 = arith.subf %502, %492 : vector<8x128xf32>
    %504 = arith.mulf %1, %503 : vector<8x128xf32>
    %505 = arith.addf %492, %504 : vector<8x128xf32>
    %cst_133 = arith.constant dense<0.000000e+00> : vector<64x128xf32>
    %506 = tpu.matmul %2, %505, %cst_133 {dimension_numbers = #tpu.dot_dimension_numbers<[1], [0], [0], [1], [0, 0, 1, 1], [], []>} : vector<64x8xf32>, vector<8x128xf32>, vector<64x128xf32> -> vector<64x128xf32>
    %507 = vector.broadcast %463 : vector<64x1xf32> to vector<64x128xf32>
    %508 = arith.addf %506, %507 : vector<64x128xf32>
    %509 = arith.negf %508 : vector<64x128xf32>
    %510 = math.exp %509 : vector<64x128xf32>
    %cst_134 = arith.constant 1.000000e+00 : f32
    %511 = vector.broadcast %cst_134 : f32 to vector<64x128xf32>
    %512 = arith.addf %511, %510 : vector<64x128xf32>
    %513 = arith.divf %511, %512 : vector<64x128xf32>
    %514 = arith.mulf %508, %513 : vector<64x128xf32>
    %cst_135 = arith.constant dense<0.000000e+00> : vector<8x128xf32>
    %515 = tpu.matmul %3, %514, %cst_135 {dimension_numbers = #tpu.dot_dimension_numbers<[1], [0], [0], [1], [0, 0, 1, 1], [], []>} : vector<8x64xf32>, vector<64x128xf32>, vector<8x128xf32> -> vector<8x128xf32>
    %516 = vector.broadcast %6 : vector<8x1xf32> to vector<8x128xf32>
    %517 = arith.addf %515, %516 : vector<8x128xf32>
    %c40_i32_136 = arith.constant 40 : i32
    %518 = arith.addi %c40_i32_136, %c5_i32 : i32
    %519 = arith.index_cast %518 : i32 to index
    %520 = memref.load %arg1[%519] : memref<72xf32, #tpu.memory_space<smem>>
    %c48_i32_137 = arith.constant 48 : i32
    %521 = arith.addi %c48_i32_137, %c5_i32 : i32
    %522 = arith.index_cast %521 : i32 to index
    %523 = memref.load %arg1[%522] : memref<72xf32, #tpu.memory_space<smem>>
    %c56_i32_138 = arith.constant 56 : i32
    %524 = arith.addi %c56_i32_138, %c5_i32 : i32
    %525 = arith.index_cast %524 : i32 to index
    %526 = memref.load %arg1[%525] : memref<72xf32, #tpu.memory_space<smem>>
    %c64_i32_139 = arith.constant 64 : i32
    %527 = arith.addi %c64_i32_139, %c5_i32 : i32
    %528 = arith.index_cast %527 : i32 to index
    %529 = memref.load %arg1[%528] : memref<72xf32, #tpu.memory_space<smem>>
    %530 = vector.broadcast %520 : f32 to vector<8x128xf32>
    %531 = arith.mulf %530, %505 : vector<8x128xf32>
    %532 = vector.broadcast %523 : f32 to vector<8x128xf32>
    %533 = arith.mulf %532, %517 : vector<8x128xf32>
    %534 = arith.addf %531, %533 : vector<8x128xf32>
    %535 = vector.broadcast %526 : f32 to vector<8x128xf32>
    %536 = arith.mulf %535, %0 : vector<8x128xf32>
    %c2_i32_140 = arith.constant 2 : i32
    %537 = arith.muli %c5_i32, %c2_i32_140 : i32
    %c1_i32_141 = arith.constant 1 : i32
    %538 = arith.addi %537, %c1_i32_141 : i32
    %539 = arith.index_cast %538 : i32 to index
    %c0_142 = arith.constant 0 : index
    %c0_143 = arith.constant 0 : index
    %540 = vector.load %arg5[%539, %c0_142, %c0_143] : memref<16x8x128xf32, #tpu.memory_space<vmem>>, vector<1x8x128xf32>
    %541 = vector.shape_cast %540 : vector<1x8x128xf32> to vector<8x128xf32>
    %542 = vector.broadcast %529 : f32 to vector<8x128xf32>
    %543 = arith.mulf %542, %541 : vector<8x128xf32>
    %544 = arith.addf %536, %543 : vector<8x128xf32>
    %545 = arith.subf %544, %534 : vector<8x128xf32>
    %546 = arith.mulf %1, %545 : vector<8x128xf32>
    %547 = arith.addf %534, %546 : vector<8x128xf32>
    %c6_i32 = arith.constant 6 : i32
    %c0_i32_144 = arith.constant 0 : i32
    %548 = arith.addi %c0_i32_144, %c6_i32 : i32
    %549 = arith.index_cast %548 : i32 to index
    %550 = memref.load %arg1[%549] : memref<72xf32, #tpu.memory_space<smem>>
    %551 = vector.broadcast %550 : f32 to vector<64x1xf32>
    %552 = arith.mulf %551, %5 : vector<64x1xf32>
    %553 = arith.addf %4, %552 : vector<64x1xf32>
    %cst_145 = arith.constant dense<0.000000e+00> : vector<64x128xf32>
    %554 = tpu.matmul %2, %547, %cst_145 {dimension_numbers = #tpu.dot_dimension_numbers<[1], [0], [0], [1], [0, 0, 1, 1], [], []>} : vector<64x8xf32>, vector<8x128xf32>, vector<64x128xf32> -> vector<64x128xf32>
    %555 = vector.broadcast %553 : vector<64x1xf32> to vector<64x128xf32>
    %556 = arith.addf %554, %555 : vector<64x128xf32>
    %557 = arith.negf %556 : vector<64x128xf32>
    %558 = math.exp %557 : vector<64x128xf32>
    %cst_146 = arith.constant 1.000000e+00 : f32
    %559 = vector.broadcast %cst_146 : f32 to vector<64x128xf32>
    %560 = arith.addf %559, %558 : vector<64x128xf32>
    %561 = arith.divf %559, %560 : vector<64x128xf32>
    %562 = arith.mulf %556, %561 : vector<64x128xf32>
    %cst_147 = arith.constant dense<0.000000e+00> : vector<8x128xf32>
    %563 = tpu.matmul %3, %562, %cst_147 {dimension_numbers = #tpu.dot_dimension_numbers<[1], [0], [0], [1], [0, 0, 1, 1], [], []>} : vector<8x64xf32>, vector<64x128xf32>, vector<8x128xf32> -> vector<8x128xf32>
    %564 = vector.broadcast %6 : vector<8x1xf32> to vector<8x128xf32>
    %565 = arith.addf %563, %564 : vector<8x128xf32>
    %c8_i32_148 = arith.constant 8 : i32
    %566 = arith.addi %c8_i32_148, %c6_i32 : i32
    %567 = arith.index_cast %566 : i32 to index
    %568 = memref.load %arg1[%567] : memref<72xf32, #tpu.memory_space<smem>>
    %c16_i32_149 = arith.constant 16 : i32
    %569 = arith.addi %c16_i32_149, %c6_i32 : i32
    %570 = arith.index_cast %569 : i32 to index
    %571 = memref.load %arg1[%570] : memref<72xf32, #tpu.memory_space<smem>>
    %c24_i32_150 = arith.constant 24 : i32
    %572 = arith.addi %c24_i32_150, %c6_i32 : i32
    %573 = arith.index_cast %572 : i32 to index
    %574 = memref.load %arg1[%573] : memref<72xf32, #tpu.memory_space<smem>>
    %c32_i32_151 = arith.constant 32 : i32
    %575 = arith.addi %c32_i32_151, %c6_i32 : i32
    %576 = arith.index_cast %575 : i32 to index
    %577 = memref.load %arg1[%576] : memref<72xf32, #tpu.memory_space<smem>>
    %578 = vector.broadcast %568 : f32 to vector<8x128xf32>
    %579 = arith.mulf %578, %547 : vector<8x128xf32>
    %580 = vector.broadcast %571 : f32 to vector<8x128xf32>
    %581 = arith.mulf %580, %565 : vector<8x128xf32>
    %582 = arith.addf %579, %581 : vector<8x128xf32>
    %583 = vector.broadcast %574 : f32 to vector<8x128xf32>
    %584 = arith.mulf %583, %0 : vector<8x128xf32>
    %c2_i32_152 = arith.constant 2 : i32
    %585 = arith.muli %c6_i32, %c2_i32_152 : i32
    %c0_i32_153 = arith.constant 0 : i32
    %586 = arith.addi %585, %c0_i32_153 : i32
    %587 = arith.index_cast %586 : i32 to index
    %c0_154 = arith.constant 0 : index
    %c0_155 = arith.constant 0 : index
    %588 = vector.load %arg5[%587, %c0_154, %c0_155] : memref<16x8x128xf32, #tpu.memory_space<vmem>>, vector<1x8x128xf32>
    %589 = vector.shape_cast %588 : vector<1x8x128xf32> to vector<8x128xf32>
    %590 = vector.broadcast %577 : f32 to vector<8x128xf32>
    %591 = arith.mulf %590, %589 : vector<8x128xf32>
    %592 = arith.addf %584, %591 : vector<8x128xf32>
    %593 = arith.subf %592, %582 : vector<8x128xf32>
    %594 = arith.mulf %1, %593 : vector<8x128xf32>
    %595 = arith.addf %582, %594 : vector<8x128xf32>
    %cst_156 = arith.constant dense<0.000000e+00> : vector<64x128xf32>
    %596 = tpu.matmul %2, %595, %cst_156 {dimension_numbers = #tpu.dot_dimension_numbers<[1], [0], [0], [1], [0, 0, 1, 1], [], []>} : vector<64x8xf32>, vector<8x128xf32>, vector<64x128xf32> -> vector<64x128xf32>
    %597 = vector.broadcast %553 : vector<64x1xf32> to vector<64x128xf32>
    %598 = arith.addf %596, %597 : vector<64x128xf32>
    %599 = arith.negf %598 : vector<64x128xf32>
    %600 = math.exp %599 : vector<64x128xf32>
    %cst_157 = arith.constant 1.000000e+00 : f32
    %601 = vector.broadcast %cst_157 : f32 to vector<64x128xf32>
    %602 = arith.addf %601, %600 : vector<64x128xf32>
    %603 = arith.divf %601, %602 : vector<64x128xf32>
    %604 = arith.mulf %598, %603 : vector<64x128xf32>
    %cst_158 = arith.constant dense<0.000000e+00> : vector<8x128xf32>
    %605 = tpu.matmul %3, %604, %cst_158 {dimension_numbers = #tpu.dot_dimension_numbers<[1], [0], [0], [1], [0, 0, 1, 1], [], []>} : vector<8x64xf32>, vector<64x128xf32>, vector<8x128xf32> -> vector<8x128xf32>
    %606 = vector.broadcast %6 : vector<8x1xf32> to vector<8x128xf32>
    %607 = arith.addf %605, %606 : vector<8x128xf32>
    %c40_i32_159 = arith.constant 40 : i32
    %608 = arith.addi %c40_i32_159, %c6_i32 : i32
    %609 = arith.index_cast %608 : i32 to index
    %610 = memref.load %arg1[%609] : memref<72xf32, #tpu.memory_space<smem>>
    %c48_i32_160 = arith.constant 48 : i32
    %611 = arith.addi %c48_i32_160, %c6_i32 : i32
    %612 = arith.index_cast %611 : i32 to index
    %613 = memref.load %arg1[%612] : memref<72xf32, #tpu.memory_space<smem>>
    %c56_i32_161 = arith.constant 56 : i32
    %614 = arith.addi %c56_i32_161, %c6_i32 : i32
    %615 = arith.index_cast %614 : i32 to index
    %616 = memref.load %arg1[%615] : memref<72xf32, #tpu.memory_space<smem>>
    %c64_i32_162 = arith.constant 64 : i32
    %617 = arith.addi %c64_i32_162, %c6_i32 : i32
    %618 = arith.index_cast %617 : i32 to index
    %619 = memref.load %arg1[%618] : memref<72xf32, #tpu.memory_space<smem>>
    %620 = vector.broadcast %610 : f32 to vector<8x128xf32>
    %621 = arith.mulf %620, %595 : vector<8x128xf32>
    %622 = vector.broadcast %613 : f32 to vector<8x128xf32>
    %623 = arith.mulf %622, %607 : vector<8x128xf32>
    %624 = arith.addf %621, %623 : vector<8x128xf32>
    %625 = vector.broadcast %616 : f32 to vector<8x128xf32>
    %626 = arith.mulf %625, %0 : vector<8x128xf32>
    %c2_i32_163 = arith.constant 2 : i32
    %627 = arith.muli %c6_i32, %c2_i32_163 : i32
    %c1_i32_164 = arith.constant 1 : i32
    %628 = arith.addi %627, %c1_i32_164 : i32
    %629 = arith.index_cast %628 : i32 to index
    %c0_165 = arith.constant 0 : index
    %c0_166 = arith.constant 0 : index
    %630 = vector.load %arg5[%629, %c0_165, %c0_166] : memref<16x8x128xf32, #tpu.memory_space<vmem>>, vector<1x8x128xf32>
    %631 = vector.shape_cast %630 : vector<1x8x128xf32> to vector<8x128xf32>
    %632 = vector.broadcast %619 : f32 to vector<8x128xf32>
    %633 = arith.mulf %632, %631 : vector<8x128xf32>
    %634 = arith.addf %626, %633 : vector<8x128xf32>
    %635 = arith.subf %634, %624 : vector<8x128xf32>
    %636 = arith.mulf %1, %635 : vector<8x128xf32>
    %637 = arith.addf %624, %636 : vector<8x128xf32>
    %c7_i32 = arith.constant 7 : i32
    %c0_i32_167 = arith.constant 0 : i32
    %638 = arith.addi %c0_i32_167, %c7_i32 : i32
    %639 = arith.index_cast %638 : i32 to index
    %640 = memref.load %arg1[%639] : memref<72xf32, #tpu.memory_space<smem>>
    %641 = vector.broadcast %640 : f32 to vector<64x1xf32>
    %642 = arith.mulf %641, %5 : vector<64x1xf32>
    %643 = arith.addf %4, %642 : vector<64x1xf32>
    %cst_168 = arith.constant dense<0.000000e+00> : vector<64x128xf32>
    %644 = tpu.matmul %2, %637, %cst_168 {dimension_numbers = #tpu.dot_dimension_numbers<[1], [0], [0], [1], [0, 0, 1, 1], [], []>} : vector<64x8xf32>, vector<8x128xf32>, vector<64x128xf32> -> vector<64x128xf32>
    %645 = vector.broadcast %643 : vector<64x1xf32> to vector<64x128xf32>
    %646 = arith.addf %644, %645 : vector<64x128xf32>
    %647 = arith.negf %646 : vector<64x128xf32>
    %648 = math.exp %647 : vector<64x128xf32>
    %cst_169 = arith.constant 1.000000e+00 : f32
    %649 = vector.broadcast %cst_169 : f32 to vector<64x128xf32>
    %650 = arith.addf %649, %648 : vector<64x128xf32>
    %651 = arith.divf %649, %650 : vector<64x128xf32>
    %652 = arith.mulf %646, %651 : vector<64x128xf32>
    %cst_170 = arith.constant dense<0.000000e+00> : vector<8x128xf32>
    %653 = tpu.matmul %3, %652, %cst_170 {dimension_numbers = #tpu.dot_dimension_numbers<[1], [0], [0], [1], [0, 0, 1, 1], [], []>} : vector<8x64xf32>, vector<64x128xf32>, vector<8x128xf32> -> vector<8x128xf32>
    %654 = vector.broadcast %6 : vector<8x1xf32> to vector<8x128xf32>
    %655 = arith.addf %653, %654 : vector<8x128xf32>
    %c8_i32_171 = arith.constant 8 : i32
    %656 = arith.addi %c8_i32_171, %c7_i32 : i32
    %657 = arith.index_cast %656 : i32 to index
    %658 = memref.load %arg1[%657] : memref<72xf32, #tpu.memory_space<smem>>
    %c16_i32_172 = arith.constant 16 : i32
    %659 = arith.addi %c16_i32_172, %c7_i32 : i32
    %660 = arith.index_cast %659 : i32 to index
    %661 = memref.load %arg1[%660] : memref<72xf32, #tpu.memory_space<smem>>
    %c24_i32_173 = arith.constant 24 : i32
    %662 = arith.addi %c24_i32_173, %c7_i32 : i32
    %663 = arith.index_cast %662 : i32 to index
    %664 = memref.load %arg1[%663] : memref<72xf32, #tpu.memory_space<smem>>
    %c32_i32_174 = arith.constant 32 : i32
    %665 = arith.addi %c32_i32_174, %c7_i32 : i32
    %666 = arith.index_cast %665 : i32 to index
    %667 = memref.load %arg1[%666] : memref<72xf32, #tpu.memory_space<smem>>
    %668 = vector.broadcast %658 : f32 to vector<8x128xf32>
    %669 = arith.mulf %668, %637 : vector<8x128xf32>
    %670 = vector.broadcast %661 : f32 to vector<8x128xf32>
    %671 = arith.mulf %670, %655 : vector<8x128xf32>
    %672 = arith.addf %669, %671 : vector<8x128xf32>
    %673 = vector.broadcast %664 : f32 to vector<8x128xf32>
    %674 = arith.mulf %673, %0 : vector<8x128xf32>
    %c2_i32_175 = arith.constant 2 : i32
    %675 = arith.muli %c7_i32, %c2_i32_175 : i32
    %c0_i32_176 = arith.constant 0 : i32
    %676 = arith.addi %675, %c0_i32_176 : i32
    %677 = arith.index_cast %676 : i32 to index
    %c0_177 = arith.constant 0 : index
    %c0_178 = arith.constant 0 : index
    %678 = vector.load %arg5[%677, %c0_177, %c0_178] : memref<16x8x128xf32, #tpu.memory_space<vmem>>, vector<1x8x128xf32>
    %679 = vector.shape_cast %678 : vector<1x8x128xf32> to vector<8x128xf32>
    %680 = vector.broadcast %667 : f32 to vector<8x128xf32>
    %681 = arith.mulf %680, %679 : vector<8x128xf32>
    %682 = arith.addf %674, %681 : vector<8x128xf32>
    %683 = arith.subf %682, %672 : vector<8x128xf32>
    %684 = arith.mulf %1, %683 : vector<8x128xf32>
    %685 = arith.addf %672, %684 : vector<8x128xf32>
    %cst_179 = arith.constant dense<0.000000e+00> : vector<64x128xf32>
    %686 = tpu.matmul %2, %685, %cst_179 {dimension_numbers = #tpu.dot_dimension_numbers<[1], [0], [0], [1], [0, 0, 1, 1], [], []>} : vector<64x8xf32>, vector<8x128xf32>, vector<64x128xf32> -> vector<64x128xf32>
    %687 = vector.broadcast %643 : vector<64x1xf32> to vector<64x128xf32>
    %688 = arith.addf %686, %687 : vector<64x128xf32>
    %689 = arith.negf %688 : vector<64x128xf32>
    %690 = math.exp %689 : vector<64x128xf32>
    %cst_180 = arith.constant 1.000000e+00 : f32
    %691 = vector.broadcast %cst_180 : f32 to vector<64x128xf32>
    %692 = arith.addf %691, %690 : vector<64x128xf32>
    %693 = arith.divf %691, %692 : vector<64x128xf32>
    %694 = arith.mulf %688, %693 : vector<64x128xf32>
    %cst_181 = arith.constant dense<0.000000e+00> : vector<8x128xf32>
    %695 = tpu.matmul %3, %694, %cst_181 {dimension_numbers = #tpu.dot_dimension_numbers<[1], [0], [0], [1], [0, 0, 1, 1], [], []>} : vector<8x64xf32>, vector<64x128xf32>, vector<8x128xf32> -> vector<8x128xf32>
    %696 = vector.broadcast %6 : vector<8x1xf32> to vector<8x128xf32>
    %697 = arith.addf %695, %696 : vector<8x128xf32>
    %c40_i32_182 = arith.constant 40 : i32
    %698 = arith.addi %c40_i32_182, %c7_i32 : i32
    %699 = arith.index_cast %698 : i32 to index
    %700 = memref.load %arg1[%699] : memref<72xf32, #tpu.memory_space<smem>>
    %c48_i32_183 = arith.constant 48 : i32
    %701 = arith.addi %c48_i32_183, %c7_i32 : i32
    %702 = arith.index_cast %701 : i32 to index
    %703 = memref.load %arg1[%702] : memref<72xf32, #tpu.memory_space<smem>>
    %c56_i32_184 = arith.constant 56 : i32
    %704 = arith.addi %c56_i32_184, %c7_i32 : i32
    %705 = arith.index_cast %704 : i32 to index
    %706 = memref.load %arg1[%705] : memref<72xf32, #tpu.memory_space<smem>>
    %c64_i32_185 = arith.constant 64 : i32
    %707 = arith.addi %c64_i32_185, %c7_i32 : i32
    %708 = arith.index_cast %707 : i32 to index
    %709 = memref.load %arg1[%708] : memref<72xf32, #tpu.memory_space<smem>>
    %710 = vector.broadcast %700 : f32 to vector<8x128xf32>
    %711 = arith.mulf %710, %685 : vector<8x128xf32>
    %712 = vector.broadcast %703 : f32 to vector<8x128xf32>
    %713 = arith.mulf %712, %697 : vector<8x128xf32>
    %714 = arith.addf %711, %713 : vector<8x128xf32>
    %715 = vector.broadcast %706 : f32 to vector<8x128xf32>
    %716 = arith.mulf %715, %0 : vector<8x128xf32>
    %c2_i32_186 = arith.constant 2 : i32
    %717 = arith.muli %c7_i32, %c2_i32_186 : i32
    %c1_i32_187 = arith.constant 1 : i32
    %718 = arith.addi %717, %c1_i32_187 : i32
    %719 = arith.index_cast %718 : i32 to index
    %c0_188 = arith.constant 0 : index
    %c0_189 = arith.constant 0 : index
    %720 = vector.load %arg5[%719, %c0_188, %c0_189] : memref<16x8x128xf32, #tpu.memory_space<vmem>>, vector<1x8x128xf32>
    %721 = vector.shape_cast %720 : vector<1x8x128xf32> to vector<8x128xf32>
    %722 = vector.broadcast %709 : f32 to vector<8x128xf32>
    %723 = arith.mulf %722, %721 : vector<8x128xf32>
    %724 = arith.addf %716, %723 : vector<8x128xf32>
    %725 = arith.subf %724, %714 : vector<8x128xf32>
    %726 = arith.mulf %1, %725 : vector<8x128xf32>
    %727 = arith.addf %714, %726 : vector<8x128xf32>
    %c8_i32_190 = arith.constant 8 : i32
    %c0_191 = arith.constant 0 : index
    %c0_192 = arith.constant 0 : index
    %728 = vector.load %arg11[%c0_191, %c0_192] : memref<8x128xf32, #tpu.memory_space<vmem>>, vector<8x128xf32>
    tpu.vector_store %arg11[%c0_191, %c0_192], %727 {strides = array<i32>} : memref<8x128xf32, #tpu.memory_space<vmem>>, vector<8x128xf32>,
    return
  }
  func.func @transform_0(%arg0: i32) -> i32 {
    %c0_i32 = arith.constant 0 : i32
    %c0_i32_0 = arith.constant 0 : i32
    return %c0_i32 : i32
  }
  func.func @transform_1(%arg0: i32) -> (i32, i32) {
    %c0_i32 = arith.constant 0 : i32
    %c0_i32_0 = arith.constant 0 : i32
    return %c0_i32, %arg0 : i32, i32
  }
  func.func @transform_2(%arg0: i32) -> (i32, i32) {
    %c0_i32 = arith.constant 0 : i32
    %c0_i32_0 = arith.constant 0 : i32
    return %c0_i32, %arg0 : i32, i32
  }
  func.func @transform_3(%arg0: i32) -> (i32, i32) {
    %c0_i32 = arith.constant 0 : i32
    %c0_i32_0 = arith.constant 0 : i32
    return %c0_i32, %arg0 : i32, i32
  }
  func.func @transform_4(%arg0: i32) -> (i32, i32, i32) {
    %c0_i32 = arith.constant 0 : i32
    %c0_i32_0 = arith.constant 0 : i32
    %c0_i32_1 = arith.constant 0 : i32
    return %c0_i32, %c0_i32_0, %arg0 : i32, i32, i32
  }
  func.func @transform_5(%arg0: i32) -> (i32, i32) {
    %c0_i32 = arith.constant 0 : i32
    %c0_i32_0 = arith.constant 0 : i32
    %c0_i32_1 = arith.constant 0 : i32
    return %c0_i32, %c0_i32_0 : i32, i32
  }
  func.func @transform_6(%arg0: i32) -> (i32, i32) {
    %c0_i32 = arith.constant 0 : i32
    %c0_i32_0 = arith.constant 0 : i32
    %c0_i32_1 = arith.constant 0 : i32
    return %c0_i32, %c0_i32_0 : i32, i32
  }
  func.func @transform_7(%arg0: i32) -> (i32, i32) {
    %c0_i32 = arith.constant 0 : i32
    %c0_i32_0 = arith.constant 0 : i32
    %c0_i32_1 = arith.constant 0 : i32
    return %c0_i32, %c0_i32_0 : i32, i32
  }
  func.func @transform_8(%arg0: i32) -> (i32, i32) {
    %c0_i32 = arith.constant 0 : i32
    %c0_i32_0 = arith.constant 0 : i32
    %c0_i32_1 = arith.constant 0 : i32
    return %c0_i32, %c0_i32_0 : i32, i32
  }
  func.func @transform_9(%arg0: i32) -> (i32, i32) {
    %c0_i32 = arith.constant 0 : i32
    %c0_i32_0 = arith.constant 0 : i32
    %c0_i32_1 = arith.constant 0 : i32
    return %c0_i32, %c0_i32_0 : i32, i32
  }
  func.func @transform_10(%arg0: i32) -> (i32, i32) {
    %c0_i32 = arith.constant 0 : i32
    %c0_i32_0 = arith.constant 0 : i32
    return %c0_i32, %arg0 : i32, i32
  }
}

</mosaic_0001>

<bundles_post_ra>
// kernel: tpu_custom_call.1
= control target key start
LH: loop header
LB: loop body
LE: loop exit
PB: predicated region body
PF: predicated region fallthrough
CT: control target
= control target key end

     0   :  { %s8821_s0 = inlined_call_operand.vmem [shape: f32[72], index: 0, kind: input, shape index: {}]   ;;  %s8822_s1 = inlined_call_operand.vmem [shape: f32[8,256], index: 1, kind: input, shape index: {}]   ;;  %s8823_s2 = inlined_call_operand.vmem [shape: f32[8,256], index: 2, kind: input, shape index: {}]   ;;  %s8824_s3 = inlined_call_operand.vmem [shape: f32[8,256], index: 3, kind: input, shape index: {}]   ;;  %s8825_s4 = inlined_call_operand.hbm [shape: f32[16,8,256], index: 4, kind: input, shape index: {}]   ;;  %s8826_s5 = inlined_call_operand.vmem [shape: f32[64,8], index: 5, kind: input, shape index: {}]   ;;  %s8827_s6 = inlined_call_operand.vmem [shape: f32[64,1], index: 6, kind: input, shape index: {}]   ;;  %s8828_s7 = inlined_call_operand.vmem [shape: f32[64,1], index: 7, kind: input, shape index: {}]   ;;  %s8829_s8 = inlined_call_operand.vmem [shape: f32[8,64], index: 8, kind: input, shape index: {}]   ;;  %s8830_s9 = inlined_call_operand.vmem [shape: f32[8,1], index: 9, kind: input, shape index: {}]   ;;  %s8831_s10 = inlined_call_operand.hbm [shape: f32[8,256], index: 10, kind: output, shape index: {}]  }
   0x1   :  { %8852 = sst [smem:[#allocation21_spill]] %s8821_s0 }
   0x2   :  { %15 = vsyncpa [#allocation5], 0 }
   0x3   :  { %16 = vsyncpa [#allocation3], 0 }
   0x4   :  { %18 = vsyncpa [#allocation3 + $0x1], 0 }
   0x5   :  { %19 = vsyncpa [#allocation4], 0 }
   0x6   :  { %21 = vsyncpa [#allocation4 + $0x1], 0  ;;  %s7277_s13 = smov 0   ;;  %s7279_s14 = smov 0  }
   0x7   :  { %s7281_s15 = smov 0   ;;  %s7283_s16 = smov 0  }
   0x8 LB: > { %8853 = sst [smem:[#allocation11_spill]] %s7206_s15  ;;  %s7298_s17 = sadd.s32 4294967295, %s7210_s16   ;;  %s7210_s16 = sphi %s7283_s16, %s8884_s16   ;;  %s7206_s15 = sphi %s7281_s15, %s8886_s15   ;;  %s7202_s14 = sphi %s7279_s14, %s8888_s14   ;;  %s7198_s13 = sphi %s7277_s13, %s8887_s13  }
   0x9   : > { %s5101_s18 = sadd.s32 4294967294, %s7210_s16   ;;  %s7302_s19 = sadd.s32 1, %s7210_s16  }
   0xa   : > { %8854 = sst [smem:[#allocation12_spill]] %s7302_s19  ;;  %s133_s20 = sadd.s32 1, %s7206_s15 }
   0xb   : > { %s130_s21 = ssub.s32 %s7210_s16, %s7302_s19  ;;  %p140_p0 = scmp.ne.s32.totalorder %s7206_s15, %s7202_s14 }
   0xc   : > { %p131_p1 = scmp.eq.s32.totalorder %s130_s21, 0  ;;  %p141_p2 = scmp.eq.s32.totalorder %s7210_s16, 0 }
   0xd   : > { %p146_p3 = scmp.ne.s32.totalorder %s7202_s14, %s7198_s13  ;;  %p8833_p4 = scmp.eq.s32.totalorder %s7298_s17, 0 }
   0xe   : > { %s7314_s22 = scalar_select %p131_p1, %s7206_s15, %s133_s20  }
   0xf   : > { %p7316_p5 = por %p141_p2, %p140_p0  ;;  %p7322_p6 = por %p8833_p4, %p146_p3 }
  0x10   : > { %8855 = sst [smem:[#allocation13_spill]] %s7314_s22  ;;  %p275_p7 = scmp.eq.s32.totalorder %s7298_s17, 1 }
  0x11   : > { %s8857_s24 = scalar_select %p7322_p6, 1, 0 }
  0x12   : > { %p281_p8 = scmp.eq.s32.totalorder %s5101_s18, 1  ;;  %p5102_p9 = scmp.ge.s32.totalorder %s7210_s16, 1 }
  0x13   : > { %p288_p10 = scmp.lt.s32.totalorder %s7210_s16, 3  ;;  %p7329_p11 = por %p275_p7, %p140_p0 }
  0x14   : > { %p7333_p12 = por %p281_p8, %p146_p3  ;;  %s8861_s0 = sld [smem:[#allocation21_spill]] }
  0x15   : > { %s8858_s25 = scalar_select %p7329_p11, 1, 0 }
  0x16   : > { %s8859_s26 = scalar_select %p7333_p12, 1, 0 }
  0x17   : > { %p7337_p13 = pnand %p5102_p9, %p288_p10  ;;  %p6505_p2 = scmp.lt.s32.totalorder %s7210_s16, 2 }
  0x18   : > { %s348_s12 = sand.u32 1, %s7206_s15  }
  0x19   : > { %p6492_p1 = pneg %p7337_p13  ;;  %p7357_p3 = pnand %p6505_p2, %p7316_p5 }
  0x1a   : > { %s301_s30 = sshll.u32 %s8861_s0, 4  ;;  %s5105_s20 = sshll.u32 %s348_s12, 7  ;;  %s302_s30 = int_to_ptr.vmem [resolvable:$true] %s301_s30 }
  0x1b   : > { %p7350_p7 = pnand %p6492_p1, %p8833_p4  ;;  %s7095_s21 = scalar_lea.vmem %s302_s30, 16 }
  0x1c   : > { %p7096_p8 = scmp.ne.s32.totalorder %s302_s30, %s7095_s21  ;;  %p7103_p12 = scmp.lt.s32.totalorder %s302_s30, %s302_s30 }
  0x1d   : > { %p7097_p9 = pneg %p7350_p7  ;;  %p7104_p11 = scmp.lt.s32.totalorder %s7095_s21, %s7095_s21 }
  0x1f   : > { %p7098_p10 = pnand %p7097_p9, %p7096_p8  ;;  %p7105_p1 = por %p7104_p11, %p7103_p12 }
  0x21   : > { %p7099_p0 = pneg %p7098_p10 }
  0x23   : > { %p7106_p4 = pnand %p7105_p1, %p7099_p0 }
  0x25   : > { %7109 = shalt.err (!%p7106_p4)
}
  0x26   : > { %s7212_s28 = smov [#allocation2]   ;;  %s5106_s23 = sshll.u32 %s7210_s16, 7 }
  0x27   : > { %6495 = dma.vmem_to_smem (!%p7350_p7), %s302_s30, 16, %s7212_s28, [#allocation5]  }
  0x28   : > { %s352_s29 = scalar_lea.vmem [#allocation6], %s5105_s20  ;;  %s7369_s19 = scalar_lea.hbm %s8825_s4, %s5106_s23 }
  0x29   : > { %s358_s0 = sshll.u32 %s352_s29, 4  ;;  %s7373_s21 = scalar_lea.sflag [#allocation3], %s348_s12  ;;  %s7371_s0 = int_to_ptr.vmem [resolvable:$true] %s358_s0 }
  0x2a   : > { %s7110_s11 = scalar_lea.hbm %s7369_s19, 2048  ;;  %p7112_p5 = pneg %p7357_p3 }
  0x2b   : > { %p7111_p4 = scmp.ne.s32.totalorder %s7369_s19, %s7110_s11  ;;  %s7115_s22 = scalar_lea.hbm %s8825_s4, 4096 }
  0x2c   : > { %p7116_p0 = scmp.lt.u32.totalorder %s7369_s19, %s8825_s4  ;;  %p7117_p2 = scmp.lt.u32.totalorder %s7115_s22, %s7110_s11 }
  0x2d   : > { %p7113_p11 = pnand %p7112_p5, %p7111_p4  ;;  %p7119_p8 = scmp.lt.u32.totalorder %s7110_s11, %s7369_s19 }
  0x2e   : > { %p7118_p7 = por %p7117_p2, %p7116_p0 }
  0x2f   : > { %p7114_p12 = pneg %p7113_p11 }
  0x30   : > { %p7120_p9 = por %p7119_p8, %p7118_p7 }
  0x32   : > { %p7121_p10 = pnand %p7120_p9, %p7114_p12 }
  0x34   : > { %7124 = shalt.err (!%p7121_p10)
}
  0x35   : > { %s7125_s12 = scalar_lea.vmem %s7371_s0, 2048  ;;  %s7213_s23 = smov [#allocation6]  }
  0x36   : > { %p7126_p1 = scmp.ne.s32.totalorder %s7371_s0, %s7125_s12  ;;  %s7130_s29 = sshll.u32 %s7213_s23, 4  ;;  %s7131_s29 = int_to_ptr.vmem [resolvable:$false] %s7130_s29 }
  0x37   : > { %s7132_s30 = scalar_lea.vmem %s7131_s29, 4096  ;;  %p7133_p6 = scmp.lt.s32.totalorder %s7371_s0, %s7131_s29 }
  0x38   : > { %p7128_p4 = pnand %p7126_p1, %p7112_p5  ;;  %p7134_p0 = scmp.lt.s32.totalorder %s7132_s30, %s7125_s12 }
  0x3a   : > { %p7129_p11 = pneg %p7128_p4  ;;  %p7135_p2 = por %p7134_p0, %p7133_p6 }
  0x3c   : > { %p7136_p7 = pnand %p7135_p2, %p7129_p11 }
  0x3e   : > { %7139 = shalt.err (!%p7136_p7)
}
  0x3f   : > { %s7214_s11 = smov 256   ;;  %s7215_s15 = smov 128  }
  0x40   : > { %s7216_s22 = smov 8   ;;  %370 = sbr.rel (%p7337_p13) target bundleno = 7909 (0x1ee5), region = 60 }
  0x41   : > { %6499 = dma.hbm_to_vmem [thread:$0]  (!%p7357_p3), %s7369_s19, 2048, %s7371_s0, %s7373_s21, %s7214_s11, %s7215_s15, %s7216_s22  }
  0x47   : > { %p8864_p5 = scmp.eq.s32.totalorder %s7298_s17, 0 }
  0x49   : > { %7185 = dma.done.wait (%p8864_p5), [#allocation5], 16   ;;  %p8865_p12 = pmov %p8864_p5 }
  0x4a   : > { %s7408_s20 = sand.u32 1, %s7202_s14   ;;  %p8866_p6 = scmp.ne.s32.totalorder %s8857_s24, 0 }
  0x4b   : > { %7187 = vsyncadd (%p8865_p12), [#allocation5], 4294967280  ;;  %s5109_s28 = sshll.u32 %s7408_s20, 7  ;;  %s377_s12 = scalar_lea.sflag [#allocation3], %s7408_s20 }
  0x4c   : > { %s7412_s23 = scalar_lea.vmem [#allocation6], %s5109_s28 }
  0x4d   : > { %7189 = dma.done.wait (%p8866_p6), %s377_s12, 2048  }
  0x4e   : > { %7191 = vsyncadd (%p8866_p6), %s377_s12, 4294965248 }
  0x4f   : > { %385 = sfence }
  0x50   : > { %p430_p13 = scmp.lt.s32.totalorder %s7298_s17, 1  ;;  %v7422_v0 = vld [vmem:[%s8826_s5] sm:$0xff]  ;;  %vm529_vm0 = vcmask 64512   ;;  %s471_s27 = sld [smem:[#allocation2]]  ;;  %v7217_v1 = vmov 0   ;;  %v7432_v2 = vld [vmem:[%s8828_s7 + $0x10] sm:$0xff] }
  0x51   : > { %8867 = vst [vmem:[#allocation14_spill] sm:$0xff] %v7422_v0  ;;  %5766 = vmatprep.mubr.msk.f32.mxu0 %vm529_vm0, %v7422_v0  ;;  %6549 = vset.pattern.permute.xlu1 %v7217_v1  ;;  %v7441_v3 = vld [vmem:[%s8828_s7] sm:$0xff]  ;;  %v7446_v4 = vld [vmem:[%s8828_s7 + $0x18] sm:$0xff]  ;;  %v7451_v5 = vld [vmem:[%s8828_s7 + $0x8] sm:$0xff]  ;;  %s7476_s0 = sld [smem:[#allocation2 + $0x1]]  ;;  %s7505_s28 = sld [smem:[#allocation2 + $0x2]] }
  0x52   : > { %s431_s18 = scalar_select %p430_p13, %s7298_s17, 1  ;;  %6548 = vset.pattern.permute.xlu0 %v7217_v1  ;;  %v7458_v7 = vld [vmem:[%s8826_s5 + $0x8] sm:$0xff]  ;;  %v7464_v8 = vld [vmem:[%s8827_s6 + $0x10] sm:$0xff]  ;;  %v7469_v10 = vld [vmem:[%s8827_s6] sm:$0xff]  ;;  %vm7219_vm1 = vmmov 0   ;;  %vm720_vm2 = vcmask 523264  }
  0x53   : > { %v7474_v11 = vld [vmem:[%s8826_s5 + $0x10] sm:$0xff]  ;;  %v7486_v16 = vld [vmem:[%s8828_s7 + $0x28] sm:$0xff]  ;;  %v7493_v17 = vld [vmem:[%s8827_s6 + $0x18] sm:$0xff]  ;;  %s7530_s29 = sld [smem:[#allocation2 + $0x4]]  ;;  %s5247_s30 = sld [smem:[#allocation2 + $0x3]] }
  0x54   : > { %s7427_s24 = sshll.u32 %s431_s18, 3  ;;  %8868 = vst [vmem:[#allocation15_spill] sm:$0xff] %v7474_v11  ;;  %v7498_v18 = vld [vmem:[%s8827_s6 + $0x8] sm:$0xff]  ;;  %v7503_v19 = vld [vmem:[%s8828_s7 + $0x20] sm:$0xff]  ;;  %v7514_v22 = vld [vmem:[%s8826_s5 + $0x18] sm:$0xff]  ;;  %s5134_s12 = sld [smem:[#allocation2 + $0x20]] }
  0x55   : > { %s433_s15 = scalar_lea.vmem %s8822_s1, %s7427_s24  ;;  %8869 = vst [vmem:[#allocation16_spill] sm:$0xff] %v7514_v22  ;;  %v7519_v23 = vld [vmem:[%s8826_s5 + $0x20] sm:$0xff]  ;;  %v7528_v28 = vld [vmem:[%s8828_s7 + $0x38] sm:$0xff]  ;;  %v7537_v29 = vld [vmem:[%s8827_s6 + $0x28] sm:$0xff]  ;;  %s5155_s11 = sld [smem:[#allocation2 + $0x40]] }
  0x56   : > { %v7453_v6 = vld [vmem:[%s433_s15] sm:$0xff]  ;;  %v472_v9 = vstv %s471_s27  ;;  %8870 = vst [vmem:[#allocation17_spill] sm:$0xff] %v7519_v23  ;;  %v7547_v31 = vld [vmem:[%s8828_s7 + $0x30] sm:$0xff]  ;;  %v7554_v32 = vld [vmem:[%s8826_s5 + $0x28] sm:$0xff]  ;;  %s7571_s15 = sld [smem:[#allocation2 + $0x5]]  ;;  %s5132_s27 = sld [smem:[#allocation2 + $0x10]] }
  0x57   : > { %5764 = vmatprep.subr.mxu0 %v7453_v6  ;;  %v475_v12 = vmul.f32 %v472_v9, %v7432_v2  ;;  %v473_v13 = vmul.f32 %v472_v9, %v7441_v3  ;;  %v476_v14 = vmul.f32 %v472_v9, %v7446_v4  ;;  %v474_v15 = vmul.f32 %v472_v9, %v7451_v5  ;;  %v7542_v30 = vld [vmem:[%s8827_s6 + $0x20] sm:$0xff]  ;;  %v7559_v33 = vld [vmem:[%s8826_s5 + $0x30] sm:$0xff]  ;;  %v7568_v38 = vld [vmem:[%s8827_s6 + $0x38] sm:$0xff]  ;;  %s5152_s22 = sld [smem:[#allocation2 + $0x28]]  ;;  %s5176_s19 = sld [smem:[#allocation2 + $0x11]] }
  0x58   : > { %5765 = vmatpush3.msra.mxu0 %v7453_v6  ;;  %v478_v24 = vmul.f32 %v472_v9, %v7486_v16  ;;  %v477_v27 = vmul.f32 %v472_v9, %v7503_v19  ;;  %8871 = vst [vmem:[#allocation18_spill] sm:$0xff] %v7554_v32  ;;  %8872 = vst [vmem:[#allocation19_spill] sm:$0xff] %v7559_v33  ;;  %v480_v34 = vmul.f32 %v472_v9, %v7528_v28  ;;  %v7578_v40 = vld [vmem:[%s8827_s6 + $0x30] sm:$0xff]  ;;  %v7588_v42 = vld [vmem:[%s8826_s5 + $0x38] sm:$0xff]  ;;  %s5221_s18 = sld [smem:[#allocation2 + $0x12]]  ;;  %s5290_s21 = sld [smem:[#allocation2 + $0x43]] }
  0x59   : > { %5767 = vmatmul.mubr.msk.f32.vlgmr.msra.gmra.mrb[0].mxu0 %vm529_vm0, %v7458_v7  ;;  %v483_v20 = vadd.f32 %v475_v12, %v7464_v8  ;;  %v481_v21 = vadd.f32 %v473_v13, %v7469_v10  ;;  %v484_v25 = vadd.f32 %v476_v14, %v7493_v17  ;;  %v482_v26 = vadd.f32 %v474_v15, %v7498_v18  ;;  %v469_v12 = vld [vmem:[%s8830_s9] sm:$0xff]  ;;  %p8881_p8 = scmp.ne.s32.totalorder %s8858_s25, 0 }
  0x5a   : > { %5769 = vmatprep.mubr.msk.f32.mxu0 %vm529_vm0, %v7474_v11  ;;  %v1063_v35 = vstv %s7476_s0  ;;  %v486_v36 = vadd.f32 %v478_v24, %v7537_v29  ;;  %v485_v37 = vadd.f32 %v477_v27, %v7542_v30  ;;  %v479_v39 = vmul.f32 %v472_v9, %v7547_v31  ;;  %8873 = vst [vmem:[#allocation20_spill] sm:$0xff] %v7588_v42  ;;  %s5131_s0 = sld [smem:[#allocation2 + $0x8]] }
  0x5b   : > { %501 = vperm.xlu1 %6549, %v483_v20   ;;  %491 = vperm.xlu0 %6548, %v481_v21   ;;  %v7581_v41 = vstv %s7505_s28  ;;  %v1064_v43 = vmul.f32 %v1063_v35, %v7441_v3  ;;  %v1066_v44 = vmul.f32 %v1063_v35, %v7432_v2  ;;  %v1065_v45 = vmul.f32 %v1063_v35, %v7451_v5  ;;  %s7602_s28 = sld [smem:[#allocation2 + $0x6]] }
  0x5c   : > { %v1068_v46 = vmul.f32 %v1063_v35, %v7503_v19  ;;  %v488_v47 = vadd.f32 %v480_v34, %v7568_v38  ;;  %v1067_v48 = vmul.f32 %v1063_v35, %v7446_v4  ;;  %v1070_v49 = vmul.f32 %v1063_v35, %v7547_v31 }
  0x5d   : > { %5770 = vmatmul.mubr.msk.f32.gmra.mrb[2].mxu0 %vm529_vm0, %v7514_v22  ;;  %v487_v50 = vadd.f32 %v479_v39, %v7578_v40  ;;  %v1069_v51 = vmul.f32 %v1063_v35, %v7486_v16  ;;  %v1622_v52 = vmul.f32 %v7581_v41, %v7441_v3  ;;  %v2737_v53 = vstv %s7530_s29  ;;  %s7629_s29 = sld [smem:[#allocation2 + $0x7]] }
  0x5e   : > { %5772 = vmatprep.mubr.msk.f32.mxu0 %vm529_vm0, %v7519_v23  ;;  %v1072_v54 = vadd.f32 %v1064_v43, %v7469_v10  ;;  %v1074_v55 = vadd.f32 %v1066_v44, %v7464_v8  ;;  %v1073_v56 = vadd.f32 %v1065_v45, %v7498_v18  ;;  %v1076_v57 = vadd.f32 %v1068_v46, %v7542_v30 }
  0x5f   : > { %506 = vperm.xlu1 %6549, %v484_v25   ;;  %496 = vperm.xlu0 %6548, %v482_v26   ;;  %v1075_v58 = vadd.f32 %v1067_v48, %v7493_v17  ;;  %v7614_v59 = vadd.f32 %v1070_v49, %v7578_v40  ;;  %v1071_v60 = vmul.f32 %v1063_v35, %v7528_v28  ;;  %v3295_v9 = vstv %s7571_s15  ;;  %s5133_s15 = sld [smem:[#allocation2 + $0x18]] }
  0x60   : > { %v2738_v61 = vmul.f32 %v2737_v53, %v7441_v3  ;;  %v7619_v62 = vadd.f32 %v1069_v51, %v7537_v29  ;;  %v7622_v63 = vadd.f32 %v1622_v52, %v7469_v10  ;;  %v7626_v1 = vmul.f32 %v7581_v41, %v7432_v2 }
  0x61   : > { %5773 = vmatmul.mubr.msk.f32.gmra.mrb[4].mxu0 %vm529_vm0, %v7554_v32  ;;  %v7636_v13 = vmul.f32 %v7581_v41, %v7451_v5  ;;  %v2740_v15 = vmul.f32 %v2737_v53, %v7432_v2  ;;  %v2739_v20 = vmul.f32 %v2737_v53, %v7451_v5  ;;  %v2742_v21 = vmul.f32 %v2737_v53, %v7503_v19 }
  0x62   : > { %5775 = vmatprep.mubr.msk.f32.mxu0 %vm529_vm0, %v7559_v33  ;;  %v7639_v14 = vadd.f32 %v2738_v61, %v7469_v10  ;;  %v2741_v24 = vmul.f32 %v2737_v53, %v7446_v4  ;;  %v2744_v25 = vmul.f32 %v2737_v53, %v7547_v31  ;;  %v2743_v26 = vmul.f32 %v2737_v53, %v7486_v16 }
  0x63   : > { %516 = vperm.xlu1 %6549, %v486_v36   ;;  %511 = vperm.xlu0 %6548, %v485_v37   ;;  %v7648_v27 = vadd.f32 %v1071_v60, %v7568_v38  ;;  %v7651_v34 = vadd.f32 %v2740_v15, %v7464_v8  ;;  %v7654_v35 = vadd.f32 %v2739_v20, %v7498_v18  ;;  %v3853_v44 = vstv %s7602_s28  ;;  %s5220_s28 = sld [smem:[#allocation2 + $0xa]] }
  0x64   : > { %v3296_v36 = vmul.f32 %v3295_v9, %v7441_v3  ;;  %v7658_v37 = vadd.f32 %v2742_v21, %v7542_v30  ;;  %v7661_v39 = vadd.f32 %v2741_v24, %v7493_v17  ;;  %v7664_v43 = vadd.f32 %v2744_v25, %v7578_v40 }
  0x65   : > { %5776 = vmatmul.mubr.msk.f32.gmra.mrb[6].mxu0 %vm529_vm0, %v7588_v42  ;;  %v7668_v45 = vadd.f32 %v2743_v26, %v7537_v29  ;;  %v3298_v48 = vmul.f32 %v3295_v9, %v7432_v2  ;;  %v3297_v49 = vmul.f32 %v3295_v9, %v7451_v5  ;;  %v3299_v51 = vmul.f32 %v3295_v9, %v7446_v4 }
  0x66   : > { %5799 = vmatprep.mubr.msk.f32.mxu0 %vm529_vm0, %v7422_v0  ;;  %v7671_v46 = vadd.f32 %v3296_v36, %v7469_v10  ;;  %v3302_v52 = vmul.f32 %v3295_v9, %v7547_v31  ;;  %v3301_v61 = vmul.f32 %v3295_v9, %v7486_v16  ;;  %v4411_v21 = vstv %s7629_s29  ;;  %s7885_s29 = scalar_lea.vmem %s8823_s2, %s7427_s24 }
  0x67   : > { %526 = vperm.xlu1 %6549, %v488_v47   ;;  %521 = vperm.xlu0 %6548, %v487_v50   ;;  %v2745_v47 = vmul.f32 %v2737_v53, %v7528_v28  ;;  %v3300_v50 = vmul.f32 %v3295_v9, %v7503_v19  ;;  %v7683_v60 = vadd.f32 %v3298_v48, %v7464_v8 }
  0x68   : > { %v3854_v53 = vmul.f32 %v3853_v44, %v7441_v3  ;;  %v7694_v20 = vadd.f32 %v3299_v51, %v7493_v17  ;;  %v7698_v24 = vadd.f32 %v3302_v52, %v7578_v40  ;;  %v7701_v25 = vadd.f32 %v3301_v61, %v7537_v29 }
  0x69   : > { %v7691_v15 = vadd.f32 %v3300_v50, %v7542_v30  ;;  %v3855_v36 = vmul.f32 %v3853_v44, %v7451_v5  ;;  %v3857_v48 = vmul.f32 %v3853_v44, %v7446_v4  ;;  %v3860_v50 = vmul.f32 %v3853_v44, %v7547_v31 }
  0x6a   : > { %v7704_v26 = vadd.f32 %v3854_v53, %v7469_v10  ;;  %v3859_v51 = vmul.f32 %v3853_v44, %v7486_v16  ;;  %v4412_v52 = vmul.f32 %v4411_v21, %v7441_v3  ;;  %v4418_v33 = vmul.f32 %v4411_v21, %v7547_v31 }
  0x6b   : > { %1082 = vperm.xlu1 %6549, %v1072_v54   ;;  %717 = vperm.xlu0 %6548, %v469_v12   ;;  %v7680_v54 = vadd.f32 %v2745_v47, %v7568_v38  ;;  %v7688_v12 = vadd.f32 %v3297_v49, %v7498_v18  ;;  %v3858_v47 = vmul.f32 %v3853_v44, %v7503_v19 }
  0x6c   : > { %v7721_v61 = vadd.f32 %v3855_v36, %v7498_v18  ;;  %v7730_v0 = vadd.f32 %v3860_v50, %v7578_v40  ;;  %v7733_v42 = vadd.f32 %v3859_v51, %v7537_v29  ;;  %v4413_v36 = vmul.f32 %v4411_v21, %v7451_v5 }
  0x6d   : > { %v7724_v53 = vadd.f32 %v3858_v47, %v7542_v30  ;;  %v4416_v47 = vmul.f32 %v4411_v21, %v7503_v19  ;;  %v4417_v50 = vmul.f32 %v4411_v21, %v7486_v16  ;;  %v4419_v51 = vmul.f32 %v4411_v21, %v7528_v28 }
  0x6e   : > { %v7755_v32 = vadd.f32 %v4413_v36, %v7498_v18  ;;  %v1625_v36 = vmul.f32 %v7581_v41, %v7446_v4 }
  0x6f   : > { %1092 = vperm.xlu1 %6549, %v1074_v55   ;;  %1087 = vperm.xlu0 %6548, %v1073_v56   ;;  %v3303_v55 = vmul.f32 %v3295_v9, %v7528_v28  ;;  %v3856_v56 = vmul.f32 %v3853_v44, %v7432_v2  ;;  %v7758_v23 = vadd.f32 %v4416_v47, %v7542_v30 }
  0x70   : > { %v1628_v47 = vmul.f32 %v7581_v41, %v7547_v31 }
  0x71   : > { %v7712_v49 = vadd.f32 %v3303_v55, %v7568_v38  ;;  %v7718_v9 = vadd.f32 %v3856_v56, %v7464_v8  ;;  %v7727_v55 = vadd.f32 %v3857_v48, %v7493_v17  ;;  %v4414_v56 = vmul.f32 %v4411_v21, %v7432_v2 }
  0x72   : > { %v4415_v48 = vmul.f32 %v4411_v21, %v7446_v4  ;;  %v7770_v21 = vadd.f32 %v4419_v51, %v7568_v38 }
  0x73   : > { %1102 = vperm.xlu1 %6549, %v1076_v57   ;;  %1097 = vperm.xlu0 %6548, %v1075_v58   ;;  %v7736_v57 = vadd.f32 %v4412_v52, %v7469_v10  ;;  %v3861_v58 = vmul.f32 %v3853_v44, %v7528_v28  ;;  %v7752_v52 = vadd.f32 %v4414_v56, %v7464_v8 }
  0x74   : > { %v7761_v22 = vadd.f32 %v4415_v48, %v7493_v17  ;;  %v1632_v56 = vadd.f32 %v7626_v1, %v7464_v8 }
  0x75   : > { %v7749_v44 = vadd.f32 %v3861_v58, %v7568_v38  ;;  %v1626_v58 = vmul.f32 %v7581_v41, %v7503_v19 }
  0x77   : > { %1112 = vperm.xlu1 %6549, %v7614_v59   ;;  %1107 = vperm.xlu0 %6548, %v7619_v62   ;;  %v7764_v59 = vadd.f32 %v4418_v33, %v7578_v40  ;;  %v7767_v62 = vadd.f32 %v4417_v50, %v7537_v29  ;;  %v1631_v33 = vadd.f32 %v7636_v13, %v7498_v18  ;;  %v2179_v50 = vstv %s5247_s30  ;;  %s7900_s30 = scalar_lea.vmem %s8824_s3, %s7427_s24  ;;  %s5154_s24 = sld [smem:[#allocation2 + $0x38]] }
  0x78   : > { %v1634_v48 = vadd.f32 %v1626_v58, %v7542_v30  ;;  %v2180_v1 = vmul.f32 %v2179_v50, %v7441_v3  ;;  %v1636_v13 = vadd.f32 %v1628_v47, %v7578_v40  ;;  %v2181_v11 = vmul.f32 %v2179_v50, %v7451_v5 }
  0x79   : > { %v2184_v3 = vmul.f32 %v2179_v50, %v7503_v19  ;;  %v2185_v5 = vmul.f32 %v2179_v50, %v7486_v16 }
  0x7b   : > { %1640 = vperm.xlu1 %6549, %v7622_v63   ;;  %1117 = vperm.xlu0 %6548, %v7648_v27   ;;  %v1633_v63 = vadd.f32 %v1625_v36, %v7493_v17  ;;  %v1627_v27 = vmul.f32 %v7581_v41, %v7486_v16  ;;  %v2182_v36 = vmul.f32 %v2179_v50, %v7432_v2  ;;  %v7218_v16 = vmov 0.0|0.0  }
  0x7c   : > { %6292 = vmatprep.subr.bf16.mxu1 %v7218_v16 }
  0x7d   : > { %v1635_v51 = vadd.f32 %v1627_v27, %v7537_v29  ;;  %v2190_v47 = vadd.f32 %v2182_v36, %v7464_v8  ;;  %v2193_v8 = vadd.f32 %v2185_v5, %v7537_v29 }
  0x7f   : > { %1650 = vperm.xlu1 %6549, %v1632_v56   ;;  %1645 = vperm.xlu0 %6548, %v1631_v33   ;;  %v1629_v56 = vmul.f32 %v7581_v41, %v7528_v28  ;;  %v2188_v33 = vadd.f32 %v2180_v1, %v7469_v10  ;;  %v2183_v41 = vmul.f32 %v2179_v50, %v7446_v4 }
  0x80   : > { %v2186_v10 = vmul.f32 %v2179_v50, %v7547_v31 }
  0x81   : > { %v1637_v58 = vadd.f32 %v1629_v56, %v7568_v38  ;;  %v2191_v2 = vadd.f32 %v2183_v41, %v7493_v17 }
  0x82   : > { %v2194_v19 = vadd.f32 %v2186_v10, %v7578_v40 }
  0x83   : > { %1660 = vperm.xlu1 %6549, %v1634_v48   ;;  %1655 = vperm.xlu0 %6548, %v1633_v63   ;;  %v2189_v48 = vadd.f32 %v2181_v11, %v7498_v18  ;;  %v2192_v63 = vadd.f32 %v2184_v3, %v7542_v30  ;;  %v2187_v11 = vmul.f32 %v2179_v50, %v7528_v28 }
  0x85   : > { %v2195_v4 = vadd.f32 %v2187_v11, %v7568_v38 }
  0x87   : > { %1670 = vperm.xlu1 %6549, %v1636_v13   ;;  %1665 = vperm.xlu0 %6548, %v1635_v51  }
  0x8b   : > { %2198 = vperm.xlu1 %6549, %v2188_v33   ;;  %1675 = vperm.xlu0 %6548, %v1637_v58  }
  0x8f   : > { %2208 = vperm.xlu1 %6549, %v2190_v47   ;;  %2203 = vperm.xlu0 %6548, %v2189_v48  }
  0x93   : > { %2218 = vperm.xlu1 %6549, %v2192_v63   ;;  %2213 = vperm.xlu0 %6548, %v2191_v2  }
  0x97   : > { %2228 = vperm.xlu1 %6549, %v2194_v19   ;;  %2223 = vperm.xlu0 %6548, %v2193_v8  }
  0x9b   : > { %2756 = vperm.xlu1 %6549, %v7639_v14   ;;  %2233 = vperm.xlu0 %6548, %v2195_v4  }
  0x9f   : > { %2766 = vperm.xlu1 %6549, %v7651_v34   ;;  %2761 = vperm.xlu0 %6548, %v7654_v35  }
  0xa3   : > { %2776 = vperm.xlu1 %6549, %v7658_v37   ;;  %2771 = vperm.xlu0 %6548, %v7661_v39  }
  0xa7   : > { %2786 = vperm.xlu1 %6549, %v7664_v43   ;;  %2781 = vperm.xlu0 %6548, %v7668_v45  }
  0xab   : > { %3314 = vperm.xlu1 %6549, %v7671_v46   ;;  %2791 = vperm.xlu0 %6548, %v7680_v54  }
  0xaf   : > { %3324 = vperm.xlu1 %6549, %v7683_v60   ;;  %3319 = vperm.xlu0 %6548, %v7688_v12  }
  0xb3   : > { %3334 = vperm.xlu1 %6549, %v7691_v15   ;;  %3329 = vperm.xlu0 %6548, %v7694_v20  }
  0xb7   : > { %3344 = vperm.xlu1 %6549, %v7698_v24   ;;  %3339 = vperm.xlu0 %6548, %v7701_v25  }
  0xbb   : > { %3872 = vperm.xlu1 %6549, %v7704_v26   ;;  %3349 = vperm.xlu0 %6548, %v7712_v49  }
  0xbf   : > { %3882 = vperm.xlu1 %6549, %v7718_v9   ;;  %3877 = vperm.xlu0 %6548, %v7721_v61  }
  0xc3   : > { %3892 = vperm.xlu1 %6549, %v7724_v53   ;;  %3887 = vperm.xlu0 %6548, %v7727_v55  }
  0xc7   : > { %3902 = vperm.xlu1 %6549, %v7730_v0   ;;  %3897 = vperm.xlu0 %6548, %v7733_v42   ;;  %v7220_v0 = vmov 0.0  }
  0xc8   : > { %5794 = vmatprep.mubr.msk.f32.mxu1 %vm7219_vm1, %v7220_v0 }
  0xcb   : > { %4430 = vperm.xlu1 %6549, %v7736_v57   ;;  %3907 = vperm.xlu0 %6548, %v7749_v44  }
  0xcf   : > { %4440 = vperm.xlu1 %6549, %v7752_v52   ;;  %4435 = vperm.xlu0 %6548, %v7755_v32  }
  0xd3   : > { %4450 = vperm.xlu1 %6549, %v7758_v23   ;;  %4445 = vperm.xlu0 %6548, %v7761_v22  }
  0xd7   : > { %4460 = vperm.xlu1 %6549, %v7764_v59   ;;  %4455 = vperm.xlu0 %6548, %v7767_v62  }
  0xda   : > { %v7844_v17 = vpop.permute.xlu1 %501  ;;  %v7846_v18 = vpop.permute.xlu0 %491 }
  0xdb   : > { %4465 = vperm.xlu0 %6548, %v7770_v21  }
  0xde   : > { %v7848_v28 = vpop.permute.xlu1 %506  ;;  %v7850_v23 = vpop.permute.xlu0 %496 }
  0xe2   : > { %v7855_v34 = vpop.permute.xlu1 %516  ;;  %v7858_v37 = vpop.permute.xlu0 %511 }
  0xe6   : > { %v7862_v15 = vpop.permute.xlu1 %526  ;;  %v7864_v25 = vpop.permute.xlu0 %521 }
 0x12c   : > { %v5768_v22 = vpop.f32.mrb[0].mxu0 }
 0x12d   : > { %v626_v29 = vadd.f32 %v5768_v22, %v7850_v23  ;;  %v620_v30 = vpop.f32.mrb[1].mxu0 }
 0x12e   : > { %v621_v31 = vadd.f32 %v620_v30, %v7846_v18 }
 0x12f   : > { %v5123_v32 = vmul.f32 -1.442695, %v626_v29 }
 0x130   : > { %v5122_v38 = vmul.f32 -1.442695, %v621_v31  ;;  %v5771_v40 = vpop.f32.mrb[2].mxu0 }
 0x131   : > { %6550 = vpow2.f32 %v5123_v32  ;;  %v636_v42 = vadd.f32 %v5771_v40, %v7848_v28  ;;  %v630_v14 = vpop.f32.mrb[3].mxu0 }
 0x132   : > { %6552 = vpow2.f32 %v5122_v38  ;;  %v631_v35 = vadd.f32 %v630_v14, %v7844_v17  ;;  %v7874_v14 = vld [vmem:[%s8829_s8] sm:$0xff] }
 0x133   : > { %v5125_v39 = vmul.f32 -1.442695, %v636_v42 }
 0x134   : > { %v5124_v43 = vmul.f32 -1.442695, %v631_v35  ;;  %v5774_v45 = vpop.f32.mrb[4].mxu0 }
 0x135   : > { %6554 = vpow2.f32 %v5125_v39  ;;  %v646_v46 = vadd.f32 %v5774_v45, %v7855_v34  ;;  %v640_v54 = vpop.f32.mrb[5].mxu0  ;;  %v803_v39 = vstv %s5133_s15  ;;  %v806_v45 = vstv %s5134_s12  ;;  %s5153_s15 = sld [smem:[#allocation2 + $0x30]]  ;;  %s5177_s12 = sld [smem:[#allocation2 + $0x19]] }
 0x136   : > { %6556 = vpow2.f32 %v5124_v43  ;;  %v641_v60 = vadd.f32 %v640_v54, %v7858_v37  ;;  %v805_v43 = vld [vmem:[%s7412_s23] sm:$0xff] }
 0x137   : > { %v5127_v12 = vmul.f32 -1.442695, %v646_v46 }
 0x138   : > { %v5126_v20 = vmul.f32 -1.442695, %v641_v60  ;;  %v5777_v24 = vpop.f32.mrb[6].mxu0 }
 0x139   : > { %6558 = vpow2.f32 %v5127_v12  ;;  %v656_v26 = vadd.f32 %v5777_v24, %v7862_v15  ;;  %v650_v49 = vpop.f32.mrb[7].mxu0  ;;  %v7892_v12 = vpop.permute.xlu0 %717  ;;  %v800_v24 = vstv %s5132_s27  ;;  %s5175_s27 = sld [smem:[#allocation2 + $0x9]] }
 0x13a   : > { %6560 = vpow2.f32 %v5126_v20  ;;  %v651_v9 = vadd.f32 %v650_v49, %v7864_v25 }
 0x13b   : > { %v6551_v61 = vpop.eup %6550  ;;  %v5129_v53 = vmul.f32 -1.442695, %v656_v26 }
 0x13c   : > { %v6553_v55 = vpop.eup %6552  ;;  %v684_v57 = vadd.f32 1.0, %v6551_v61  ;;  %v5128_v44 = vmul.f32 -1.442695, %v651_v9 }
 0x13d   : > { %v683_v52 = vadd.f32 1.0, %v6553_v55  ;;  %6562 = vpow2.f32 %v5129_v53 }
 0x13e   : > { %6564 = vrcp.f32 %v684_v57  ;;  %v7903_v57 = vld [vmem:[%s7900_s30] sm:$0xff] }
 0x13f   : > { %v6555_v59 = vpop.eup %6554  ;;  %6566 = vrcp.f32 %v683_v52 }
 0x140   : > { %v6557_v62 = vpop.eup %6556  ;;  %v686_v21 = vadd.f32 1.0, %v6555_v59  ;;  %6568 = vpow2.f32 %v5128_v44 }
 0x141   : > { %v685_v27 = vadd.f32 1.0, %v6557_v62  ;;  %v8875_v62 = vld [vmem:[#allocation16_spill] sm:$0xff] }
 0x142   : > { %6570 = vrcp.f32 %v686_v21  ;;  %v8876_v21 = vld [vmem:[#allocation17_spill] sm:$0xff] }
 0x143   : > { %v6559_v50 = vpop.eup %6558  ;;  %6572 = vrcp.f32 %v685_v27  ;;  %v8877_v27 = vld [vmem:[#allocation18_spill] sm:$0xff] }
 0x144   : > { %v6561_v1 = vpop.eup %6560  ;;  %v688_v13 = vadd.f32 1.0, %v6559_v50  ;;  %v8878_v50 = vld [vmem:[#allocation19_spill] sm:$0xff] }
 0x145   : > { %v687_v51 = vadd.f32 1.0, %v6561_v1  ;;  %v8879_v1 = vld [vmem:[#allocation20_spill] sm:$0xff] }
 0x146   : > { %6574 = vrcp.f32 %v688_v13  ;;  %v8880_v13 = vld [vmem:[#allocation14_spill] sm:$0xff] }
 0x147   : > { %v6563_v56 = vpop.eup %6562  ;;  %6576 = vrcp.f32 %v687_v51 }
 0x148   : > { %v6565_v33 = vpop.eup %6564  ;;  %v690_v58 = vadd.f32 1.0, %v6563_v56 }
 0x149   : > { %v6567_v36 = vpop.eup %6566  ;;  %v708_v3 = vmul.f32 %v6565_v33, %v626_v29 }
 0x14a   : > { %v6569_v47 = vpop.eup %6568  ;;  %v707_v48 = vmul.f32 %v6567_v36, %v621_v31  ;;  %6578 = vrcp.f32 %v690_v58 }
 0x14b   : > { %v689_v41 = vadd.f32 1.0, %v6569_v47 }
 0x14c   : > { %v6571_v10 = vpop.eup %6570  ;;  %v6293_v63 = vpack.c.bf16 %v708_v3, %v707_v48 }
 0x14d   : > { %v6573_v2 = vpop.eup %6572  ;;  %v710_v5 = vmul.f32 %v6571_v10, %v636_v42  ;;  %6580 = vrcp.f32 %v689_v41 }
 0x14e   : > { %v709_v19 = vmul.f32 %v6573_v2, %v631_v35  ;;  %6294 = vmatpush3.bf16.msra.mxu1 %v6293_v63  ;;  %v7888_v35 = vld [vmem:[%s7885_s29] sm:$0xff] }
 0x14f   : > { %6295 = vmatprep.subr.bf16.mxu1 %v7218_v16  ;;  %v804_v54 = vmul.f32 %v803_v39, %v7888_v35 }
 0x150   : > { %v6575_v8 = vpop.eup %6574  ;;  %v6296_v11 = vpack.c.bf16 %v710_v5, %v709_v19 }
 0x151   : > { %v6577_v4 = vpop.eup %6576  ;;  %v712_v22 = vmul.f32 %v6575_v8, %v646_v46  ;;  %v798_v46 = vstv %s5131_s0  ;;  %s5178_s0 = sld [smem:[#allocation2 + $0x21]] }
 0x152   : > { %v711_v30 = vmul.f32 %v6577_v4, %v641_v60  ;;  %6297 = vmatpush3.bf16.msra.mxu1 %v6296_v11  ;;  %v807_v60 = vmul.f32 %v806_v45, %v805_v43 }
 0x153   : > { %6298 = vmatprep.subr.bf16.mxu1 %v7218_v16 }
 0x154   : > { %v6579_v29 = vpop.eup %6578  ;;  %v6299_v31 = vpack.c.bf16 %v712_v22, %v711_v30  ;;  %v808_v53 = vadd.f32 %v807_v60, %v804_v54 }
 0x155   : > { %v714_v32 = vmul.f32 %v6579_v29, %v656_v26  ;;  %v799_v26 = vmul.f32 %v798_v46, %v7453_v6  ;;  %v8874_v6 = vld [vmem:[#allocation15_spill] sm:$0xff] }
 0x156   : > { %6300 = vmatpush3.bf16.msra.mxu1 %v6299_v31 }
 0x157   : > { %v6581_v38 = vpop.eup %6580  ;;  %6301 = vmatprep.subr.bf16.mxu1 %v7218_v16 }
 0x158   : > { %v713_v40 = vmul.f32 %v6581_v38, %v651_v9 }
 0x15a   : > { %v6302_v42 = vpack.c.bf16 %v714_v32, %v713_v40 }
 0x15c   : > { %6303 = vmatpush3.bf16.msra.mxu1 %v6302_v42 }
 0x15d   : > { %6304 = vmatprep.subr.bf16.mxu1 %v7218_v16 }
 0x15f   : > { %5795 = vmatmul.mubr.msk.f32.vlgmr.msra.gmra.mrb[0].mxu1 %vm720_vm2, %v7874_v14 }
 0x160   : > { %5827 = vmatprep.mubr.msk.f32.mxu1 %vm7219_vm1, %v7220_v0 }
 0x232   : > { %v790_v20 = vpop.f32.mrb[0].mxu1 }
 0x233   : > { %v791_v49 = vadd.f32 %v790_v20, %v7892_v12  ;;  %v5796_v9 = vpop.f32.mrb[1].mxu1 }
 0x235   : > { %v801_v61 = vmul.f32 %v800_v24, %v791_v49 }
 0x237   : > { %v802_v55 = vadd.f32 %v801_v61, %v799_v26 }
 0x239   : > { %v809_v44 = vsub.f32 %v808_v53, %v802_v55 }
 0x23b   : > { %v810_v52 = vmul.f32 %v809_v44, %v7903_v57 }
 0x23d   : > { %v7906_v59 = vadd.f32 %v810_v52, %v802_v55 }
 0x23f   : > { %5797 = vmatprep.subr.mxu0 %v7906_v59 }
 0x240   : > { %5798 = vmatpush3.msra.mxu0 %v7906_v59 }
 0x241   : > { %5800 = vmatmul.mubr.msk.f32.vlgmr.msra.gmra.mrb[8].mxu0 %vm529_vm0, %v7458_v7 }
 0x242   : > { %5802 = vmatprep.mubr.msk.f32.mxu0 %vm529_vm0, %v8874_v6 }
 0x245   : > { %5803 = vmatmul.mubr.msk.f32.gmra.mrb[10].mxu0 %vm529_vm0, %v8875_v62 }
 0x246   : > { %5805 = vmatprep.mubr.msk.f32.mxu0 %vm529_vm0, %v8876_v21 }
 0x249   : > { %5806 = vmatmul.mubr.msk.f32.gmra.mrb[12].mxu0 %vm529_vm0, %v8877_v27 }
 0x24a   : > { %5808 = vmatprep.mubr.msk.f32.mxu0 %vm529_vm0, %v8878_v50 }
 0x24d   : > { %5809 = vmatmul.mubr.msk.f32.gmra.mrb[14].mxu0 %vm529_vm0, %v8879_v1 }
 0x24e   : > { %5832 = vmatprep.mubr.msk.f32.mxu0 %vm529_vm0, %v8880_v13 }
 0x314   : > { %v5801_v51 = vpop.f32.mrb[8].mxu0 }
 0x315   : > { %v884_v56 = vadd.f32 %v5801_v51, %v7850_v23  ;;  %v878_v33 = vpop.f32.mrb[9].mxu0 }
 0x316   : > { %v879_v58 = vadd.f32 %v878_v33, %v7846_v18 }
 0x317   : > { %v5144_v36 = vmul.f32 -1.442695, %v884_v56 }
 0x318   : > { %v5143_v3 = vmul.f32 -1.442695, %v879_v58  ;;  %v5804_v47 = vpop.f32.mrb[10].mxu0 }
 0x319   : > { %6582 = vpow2.f32 %v5144_v36  ;;  %v894_v48 = vadd.f32 %v5804_v47, %v7848_v28  ;;  %v888_v41 = vpop.f32.mrb[11].mxu0 }
 0x31a   : > { %6584 = vpow2.f32 %v5143_v3  ;;  %v889_v10 = vadd.f32 %v888_v41, %v7844_v17 }
 0x31b   : > { %v5146_v63 = vmul.f32 -1.442695, %v894_v48 }
 0x31c   : > { %v5145_v2 = vmul.f32 -1.442695, %v889_v10  ;;  %v5807_v5 = vpop.f32.mrb[12].mxu0 }
 0x31d   : > { %6586 = vpow2.f32 %v5146_v63  ;;  %v904_v19 = vadd.f32 %v5807_v5, %v7855_v34  ;;  %v898_v23 = vpop.f32.mrb[13].mxu0  ;;  %v5156_v5 = vld [vmem:[%s7412_s23 + $0x8] sm:$0xff] }
 0x31e   : > { %6588 = vpow2.f32 %v5145_v2  ;;  %v899_v18 = vadd.f32 %v898_v23, %v7858_v37  ;;  %v1052_v2 = vstv %s5154_s24  ;;  %s5287_s24 = sld [smem:[#allocation2 + $0x2b]] }
 0x31f   : > { %v5148_v8 = vmul.f32 -1.442695, %v904_v19  ;;  %v1053_v23 = vmul.f32 %v1052_v2, %v7888_v35 }
 0x320   : > { %v5147_v11 = vmul.f32 -1.442695, %v899_v18  ;;  %v5810_v4 = vpop.f32.mrb[14].mxu0 }
 0x321   : > { %6590 = vpow2.f32 %v5148_v8  ;;  %v914_v28 = vadd.f32 %v5810_v4, %v7862_v15  ;;  %v908_v22 = vpop.f32.mrb[15].mxu0  ;;  %v1049_v4 = vstv %s5153_s15  ;;  %s5200_s15 = sld [smem:[#allocation2 + $0x41]] }
 0x322   : > { %6592 = vpow2.f32 %v5147_v11  ;;  %v909_v17 = vadd.f32 %v908_v22, %v7864_v25  ;;  %v1047_v11 = vstv %s5152_s22  ;;  %s5199_s22 = sld [smem:[#allocation2 + $0x39]] }
 0x323   : > { %v6583_v30 = vpop.eup %6582  ;;  %v5150_v29 = vmul.f32 -1.442695, %v914_v28 }
 0x324   : > { %v6585_v31 = vpop.eup %6584  ;;  %v942_v32 = vadd.f32 1.0, %v6583_v30  ;;  %v5149_v38 = vmul.f32 -1.442695, %v909_v17 }
 0x325   : > { %v941_v34 = vadd.f32 1.0, %v6585_v31  ;;  %6594 = vpow2.f32 %v5150_v29 }
 0x326   : > { %6596 = vrcp.f32 %v942_v32 }
 0x327   : > { %v6587_v40 = vpop.eup %6586  ;;  %6598 = vrcp.f32 %v941_v34 }
 0x328   : > { %v6589_v37 = vpop.eup %6588  ;;  %v944_v42 = vadd.f32 1.0, %v6587_v40  ;;  %6600 = vpow2.f32 %v5149_v38 }
 0x329   : > { %v943_v39 = vadd.f32 1.0, %v6589_v37 }
 0x32a   : > { %6602 = vrcp.f32 %v944_v42 }
 0x32b   : > { %v6591_v15 = vpop.eup %6590  ;;  %6604 = vrcp.f32 %v943_v39 }
 0x32c   : > { %v6593_v43 = vpop.eup %6592  ;;  %v946_v45 = vadd.f32 1.0, %v6591_v15 }
 0x32d   : > { %v945_v25 = vadd.f32 1.0, %v6593_v43 }
 0x32e   : > { %6606 = vrcp.f32 %v946_v45 }
 0x32f   : > { %v6595_v46 = vpop.eup %6594  ;;  %6608 = vrcp.f32 %v945_v25 }
 0x330   : > { %v6597_v54 = vpop.eup %6596  ;;  %v948_v60 = vadd.f32 1.0, %v6595_v46 }
 0x331   : > { %v6599_v20 = vpop.eup %6598  ;;  %v966_v24 = vmul.f32 %v6597_v54, %v884_v56 }
 0x332   : > { %v6601_v26 = vpop.eup %6600  ;;  %v965_v49 = vmul.f32 %v6599_v20, %v879_v58  ;;  %6610 = vrcp.f32 %v948_v60 }
 0x333   : > { %v947_v9 = vadd.f32 1.0, %v6601_v26 }
 0x334   : > { %v6603_v61 = vpop.eup %6602  ;;  %v6305_v53 = vpack.c.bf16 %v966_v24, %v965_v49 }
 0x335   : > { %v6605_v55 = vpop.eup %6604  ;;  %v968_v44 = vmul.f32 %v6603_v61, %v894_v48  ;;  %6612 = vrcp.f32 %v947_v9 }
 0x336   : > { %v967_v52 = vmul.f32 %v6605_v55, %v889_v10  ;;  %6306 = vmatpush3.bf16.msra.mxu1 %v6305_v53 }
 0x337   : > { %6307 = vmatprep.subr.bf16.mxu1 %v7218_v16 }
 0x338   : > { %v6607_v51 = vpop.eup %6606  ;;  %v6308_v33 = vpack.c.bf16 %v968_v44, %v967_v52 }
 0x339   : > { %v6609_v36 = vpop.eup %6608  ;;  %v970_v3 = vmul.f32 %v6607_v51, %v904_v19  ;;  %v1056_v19 = vstv %s5155_s11  ;;  %s5244_s11 = sld [smem:[#allocation2 + $0x3a]] }
 0x33a   : > { %v969_v47 = vmul.f32 %v6609_v36, %v899_v18  ;;  %6309 = vmatpush3.bf16.msra.mxu1 %v6308_v33  ;;  %v1057_v18 = vmul.f32 %v5156_v5, %v1056_v19 }
 0x33b   : > { %6310 = vmatprep.subr.bf16.mxu1 %v7218_v16 }
 0x33c   : > { %v6611_v56 = vpop.eup %6610  ;;  %v6311_v58 = vpack.c.bf16 %v970_v3, %v969_v47  ;;  %v1058_v29 = vadd.f32 %v1057_v18, %v1053_v23 }
 0x33d   : > { %v972_v41 = vmul.f32 %v6611_v56, %v914_v28 }
 0x33e   : > { %6312 = vmatpush3.bf16.msra.mxu1 %v6311_v58 }
 0x33f   : > { %v6613_v63 = vpop.eup %6612  ;;  %6313 = vmatprep.subr.bf16.mxu1 %v7218_v16 }
 0x340   : > { %v971_v48 = vmul.f32 %v6613_v63, %v909_v17  ;;  %v1048_v17 = vmul.f32 %v1047_v11, %v7906_v59  ;;  %v7969_v59 = vpop.permute.xlu1 %1082 }
 0x342   : > { %v6314_v10 = vpack.c.bf16 %v972_v41, %v971_v48 }
 0x344   : > { %6315 = vmatpush3.bf16.msra.mxu1 %v6314_v10 }
 0x345   : > { %6316 = vmatprep.subr.bf16.mxu1 %v7218_v16 }
 0x347   : > { %5828 = vmatmul.mubr.msk.f32.vlgmr.msra.gmra.mrb[2].mxu1 %vm720_vm2, %v7874_v14 }
 0x348   : > { %5860 = vmatprep.mubr.msk.f32.mxu1 %vm7219_vm1, %v7220_v0 }
 0x41a   : > { %v1039_v8 = vpop.f32.mrb[2].mxu1 }
 0x41b   : > { %v1040_v28 = vadd.f32 %v1039_v8, %v7892_v12  ;;  %v5829_v22 = vpop.f32.mrb[3].mxu1 }
 0x41d   : > { %v1050_v30 = vmul.f32 %v1049_v4, %v1040_v28 }
 0x41f   : > { %v1051_v31 = vadd.f32 %v1050_v30, %v1048_v17 }
 0x421   : > { %v1059_v32 = vsub.f32 %v1058_v29, %v1051_v31 }
 0x423   : > { %v1060_v38 = vmul.f32 %v1059_v32, %v7903_v57 }
 0x425   : > { %v7947_v34 = vadd.f32 %v1060_v38, %v1051_v31 }
 0x427   : > { %5830 = vmatprep.subr.mxu0 %v7947_v34 }
 0x428   : > { %5831 = vmatpush3.msra.mxu0 %v7947_v34 }
 0x429   : > { %5833 = vmatmul.mubr.msk.f32.vlgmr.msra.gmra.mrb[16].mxu0 %vm529_vm0, %v7458_v7  ;;  %v7967_v7 = vpop.permute.xlu0 %1087 }
 0x42a   : > { %5835 = vmatprep.mubr.msk.f32.mxu0 %vm529_vm0, %v8874_v6 }
 0x42d   : > { %5836 = vmatmul.mubr.msk.f32.gmra.mrb[18].mxu0 %vm529_vm0, %v8875_v62  ;;  %v7971_v6 = vpop.permute.xlu0 %1097 }
 0x42e   : > { %5838 = vmatprep.mubr.msk.f32.mxu0 %vm529_vm0, %v8876_v21  ;;  %v7973_v21 = vpop.permute.xlu1 %1092 }
 0x431   : > { %5839 = vmatmul.mubr.msk.f32.gmra.mrb[20].mxu0 %vm529_vm0, %v8877_v27  ;;  %v7978_v15 = vpop.permute.xlu0 %1107 }
 0x432   : > { %5841 = vmatprep.mubr.msk.f32.mxu0 %vm529_vm0, %v8878_v50  ;;  %v7981_v45 = vpop.permute.xlu1 %1102 }
 0x435   : > { %5842 = vmatmul.mubr.msk.f32.gmra.mrb[22].mxu0 %vm529_vm0, %v8879_v1  ;;  %v7985_v49 = vpop.permute.xlu0 %1117 }
 0x436   : > { %5865 = vmatprep.mubr.msk.f32.mxu0 %vm529_vm0, %v8880_v13  ;;  %v7987_v53 = vpop.permute.xlu1 %1112 }
 0x4fc   : > { %v5834_v62 = vpop.f32.mrb[16].mxu0 }
 0x4fd   : > { %v1192_v27 = vadd.f32 %v5834_v62, %v7967_v7  ;;  %v1186_v40 = vpop.f32.mrb[17].mxu0 }
 0x4fe   : > { %v1187_v50 = vadd.f32 %v1186_v40, %v7969_v59 }
 0x4ff   : > { %v5167_v37 = vmul.f32 -1.442695, %v1192_v27 }
 0x500   : > { %v5166_v42 = vmul.f32 -1.442695, %v1187_v50  ;;  %v5837_v1 = vpop.f32.mrb[18].mxu0 }
 0x501   : > { %6614 = vpow2.f32 %v5167_v37  ;;  %v1202_v13 = vadd.f32 %v5837_v1, %v7971_v6  ;;  %v1196_v39 = vpop.f32.mrb[19].mxu0 }
 0x502   : > { %6616 = vpow2.f32 %v5166_v42  ;;  %v1197_v43 = vadd.f32 %v1196_v39, %v7973_v21 }
 0x503   : > { %v5169_v25 = vmul.f32 -1.442695, %v1202_v13 }
 0x504   : > { %v5168_v46 = vmul.f32 -1.442695, %v1197_v43  ;;  %v5840_v54 = vpop.f32.mrb[20].mxu0 }
 0x505   : > { %6618 = vpow2.f32 %v5169_v25  ;;  %v1212_v60 = vadd.f32 %v5840_v54, %v7978_v15  ;;  %v1206_v20 = vpop.f32.mrb[21].mxu0  ;;  %v5179_v54 = vld [vmem:[%s7412_s23 + $0x10] sm:$0xff] }
 0x506   : > { %6620 = vpow2.f32 %v5168_v46  ;;  %v1207_v24 = vadd.f32 %v1206_v20, %v7981_v45  ;;  %v1360_v46 = vstv %s5177_s12  ;;  %s5197_s12 = sld [smem:[#allocation2 + $0x29]] }
 0x507   : > { %v5171_v26 = vmul.f32 -1.442695, %v1212_v60  ;;  %v1361_v20 = vmul.f32 %v1360_v46, %v7888_v35 }
 0x508   : > { %v5170_v9 = vmul.f32 -1.442695, %v1207_v24  ;;  %v5843_v61 = vpop.f32.mrb[22].mxu0 }
 0x509   : > { %6622 = vpow2.f32 %v5171_v26  ;;  %v1222_v55 = vadd.f32 %v5843_v61, %v7985_v49  ;;  %v1216_v44 = vpop.f32.mrb[23].mxu0  ;;  %v1357_v61 = vstv %s5176_s19  ;;  %s5223_s19 = sld [smem:[#allocation2 + $0x22]] }
 0x50a   : > { %6624 = vpow2.f32 %v5170_v9  ;;  %v1217_v52 = vadd.f32 %v1216_v44, %v7987_v53  ;;  %v1355_v9 = vstv %s5175_s27  ;;  %s5222_s27 = sld [smem:[#allocation2 + $0x1a]] }
 0x50b   : > { %v6615_v51 = vpop.eup %6614  ;;  %v5173_v33 = vmul.f32 -1.442695, %v1222_v55 }
 0x50c   : > { %v6617_v36 = vpop.eup %6616  ;;  %v1250_v3 = vadd.f32 1.0, %v6615_v51  ;;  %v5172_v47 = vmul.f32 -1.442695, %v1217_v52 }
 0x50d   : > { %v1249_v56 = vadd.f32 1.0, %v6617_v36  ;;  %6626 = vpow2.f32 %v5173_v33 }
 0x50e   : > { %6628 = vrcp.f32 %v1250_v3 }
 0x50f   : > { %v6619_v58 = vpop.eup %6618  ;;  %6630 = vrcp.f32 %v1249_v56 }
 0x510   : > { %v6621_v41 = vpop.eup %6620  ;;  %v1252_v63 = vadd.f32 1.0, %v6619_v58  ;;  %6632 = vpow2.f32 %v5172_v47  ;;  %v8011_v58 = vld [vmem:[%s8826_s5 + $0x8] sm:$0xff] }
 0x511   : > { %v1251_v48 = vadd.f32 1.0, %v6621_v41  ;;  %v8025_v41 = vld [vmem:[%s8826_s5 + $0x18] sm:$0xff] }
 0x512   : > { %6634 = vrcp.f32 %v1252_v63  ;;  %v8032_v63 = vld [vmem:[%s8826_s5 + $0x20] sm:$0xff] }
 0x513   : > { %v6623_v10 = vpop.eup %6622  ;;  %6636 = vrcp.f32 %v1251_v48  ;;  %v8039_v48 = vld [vmem:[%s8826_s5 + $0x28] sm:$0xff] }
 0x514   : > { %v6625_v2 = vpop.eup %6624  ;;  %v1254_v5 = vadd.f32 1.0, %v6623_v10  ;;  %v8046_v10 = vld [vmem:[%s8826_s5 + $0x30] sm:$0xff] }
 0x515   : > { %v1253_v19 = vadd.f32 1.0, %v6625_v2  ;;  %v8053_v2 = vld [vmem:[%s8826_s5 + $0x38] sm:$0xff] }
 0x516   : > { %6638 = vrcp.f32 %v1254_v5  ;;  %v8060_v5 = vld [vmem:[%s8826_s5] sm:$0xff] }
 0x517   : > { %v6627_v23 = vpop.eup %6626  ;;  %6640 = vrcp.f32 %v1253_v19 }
 0x518   : > { %v6629_v18 = vpop.eup %6628  ;;  %v1256_v8 = vadd.f32 1.0, %v6627_v23 }
 0x519   : > { %v6631_v11 = vpop.eup %6630  ;;  %v1274_v4 = vmul.f32 %v6629_v18, %v1192_v27 }
 0x51a   : > { %v6633_v28 = vpop.eup %6632  ;;  %v1273_v22 = vmul.f32 %v6631_v11, %v1187_v50  ;;  %6642 = vrcp.f32 %v1256_v8 }
 0x51b   : > { %v1255_v17 = vadd.f32 1.0, %v6633_v28 }
 0x51c   : > { %v6635_v30 = vpop.eup %6634  ;;  %v6317_v29 = vpack.c.bf16 %v1274_v4, %v1273_v22 }
 0x51d   : > { %v6637_v31 = vpop.eup %6636  ;;  %v1276_v32 = vmul.f32 %v6635_v30, %v1202_v13  ;;  %6644 = vrcp.f32 %v1255_v17 }
 0x51e   : > { %v1275_v38 = vmul.f32 %v6637_v31, %v1197_v43  ;;  %6318 = vmatpush3.bf16.msra.mxu1 %v6317_v29 }
 0x51f   : > { %6319 = vmatprep.subr.bf16.mxu1 %v7218_v16 }
 0x520   : > { %v6639_v62 = vpop.eup %6638  ;;  %v6320_v40 = vpack.c.bf16 %v1276_v32, %v1275_v38 }
 0x521   : > { %v6641_v37 = vpop.eup %6640  ;;  %v1278_v42 = vmul.f32 %v6639_v62, %v1212_v60  ;;  %v1364_v60 = vstv %s5178_s0  ;;  %s5198_s0 = sld [smem:[#allocation2 + $0x31]] }
 0x522   : > { %v1277_v1 = vmul.f32 %v6641_v37, %v1207_v24  ;;  %6321 = vmatpush3.bf16.msra.mxu1 %v6320_v40  ;;  %v1365_v24 = vmul.f32 %v5179_v54, %v1364_v60 }
 0x523   : > { %6322 = vmatprep.subr.bf16.mxu1 %v7218_v16 }
 0x524   : > { %v6643_v27 = vpop.eup %6642  ;;  %v6323_v50 = vpack.c.bf16 %v1278_v42, %v1277_v1  ;;  %v1366_v33 = vadd.f32 %v1365_v24, %v1361_v20 }
 0x525   : > { %v1280_v39 = vmul.f32 %v6643_v27, %v1222_v55 }
 0x526   : > { %6324 = vmatpush3.bf16.msra.mxu1 %v6323_v50 }
 0x527   : > { %v6645_v25 = vpop.eup %6644  ;;  %6325 = vmatprep.subr.bf16.mxu1 %v7218_v16 }
 0x528   : > { %v1279_v13 = vmul.f32 %v6645_v25, %v1217_v52  ;;  %v1356_v52 = vmul.f32 %v1355_v9, %v7947_v34  ;;  %v8018_v34 = vld [vmem:[%s8826_s5 + $0x10] sm:$0xff] }
 0x52a   : > { %v6326_v43 = vpack.c.bf16 %v1280_v39, %v1279_v13 }
 0x52c   : > { %6327 = vmatpush3.bf16.msra.mxu1 %v6326_v43 }
 0x52d   : > { %6328 = vmatprep.subr.bf16.mxu1 %v7218_v16 }
 0x52f   : > { %5861 = vmatmul.mubr.msk.f32.vlgmr.msra.gmra.mrb[4].mxu1 %vm720_vm2, %v7874_v14 }
 0x530   : > { %5893 = vmatprep.mubr.msk.f32.mxu1 %vm7219_vm1, %v7220_v0 }
 0x602   : > { %v1347_v26 = vpop.f32.mrb[4].mxu1 }
 0x603   : > { %v1348_v55 = vadd.f32 %v1347_v26, %v7892_v12  ;;  %v5862_v44 = vpop.f32.mrb[5].mxu1 }
 0x605   : > { %v1358_v51 = vmul.f32 %v1357_v61, %v1348_v55 }
 0x607   : > { %v1359_v36 = vadd.f32 %v1358_v51, %v1356_v52 }
 0x609   : > { %v1367_v3 = vsub.f32 %v1366_v33, %v1359_v36 }
 0x60b   : > { %v1368_v47 = vmul.f32 %v1367_v3, %v7903_v57 }
 0x60d   : > { %v8004_v56 = vadd.f32 %v1368_v47, %v1359_v36 }
 0x60f   : > { %5863 = vmatprep.subr.mxu0 %v8004_v56 }
 0x610   : > { %5864 = vmatpush3.msra.mxu0 %v8004_v56 }
 0x611   : > { %5866 = vmatmul.mubr.msk.f32.vlgmr.msra.gmra.mrb[24].mxu0 %vm529_vm0, %v8011_v58 }
 0x612   : > { %5868 = vmatprep.mubr.msk.f32.mxu0 %vm529_vm0, %v8018_v34 }
 0x615   : > { %5869 = vmatmul.mubr.msk.f32.gmra.mrb[26].mxu0 %vm529_vm0, %v8025_v41 }
 0x616   : > { %5871 = vmatprep.mubr.msk.f32.mxu0 %vm529_vm0, %v8032_v63 }
 0x619   : > { %5872 = vmatmul.mubr.msk.f32.gmra.mrb[28].mxu0 %vm529_vm0, %v8039_v48 }
 0x61a   : > { %5874 = vmatprep.mubr.msk.f32.mxu0 %vm529_vm0, %v8046_v10 }
 0x61d   : > { %5875 = vmatmul.mubr.msk.f32.gmra.mrb[30].mxu0 %vm529_vm0, %v8053_v2 }
 0x61e   : > { %5898 = vmatprep.mubr.msk.f32.mxu0 %vm529_vm0, %v8060_v5 }
 0x6e4   : > { %v5867_v19 = vpop.f32.mrb[24].mxu0 }
 0x6e5   : > { %v1442_v23 = vadd.f32 %v5867_v19, %v7967_v7  ;;  %v1436_v18 = vpop.f32.mrb[25].mxu0 }
 0x6e6   : > { %v1437_v8 = vadd.f32 %v1436_v18, %v7969_v59 }
 0x6e7   : > { %v5189_v11 = vmul.f32 -1.442695, %v1442_v23 }
 0x6e8   : > { %v5188_v4 = vmul.f32 -1.442695, %v1437_v8  ;;  %v5870_v28 = vpop.f32.mrb[26].mxu0 }
 0x6e9   : > { %6646 = vpow2.f32 %v5189_v11  ;;  %v1452_v22 = vadd.f32 %v5870_v28, %v7971_v6  ;;  %v1446_v17 = vpop.f32.mrb[27].mxu0 }
 0x6ea   : > { %6648 = vpow2.f32 %v5188_v4  ;;  %v1447_v30 = vadd.f32 %v1446_v17, %v7973_v21 }
 0x6eb   : > { %v5191_v29 = vmul.f32 -1.442695, %v1452_v22 }
 0x6ec   : > { %v5190_v31 = vmul.f32 -1.442695, %v1447_v30  ;;  %v5873_v32 = vpop.f32.mrb[28].mxu0 }
 0x6ed   : > { %6650 = vpow2.f32 %v5191_v29  ;;  %v1462_v38 = vadd.f32 %v5873_v32, %v7978_v15  ;;  %v1456_v7 = vpop.f32.mrb[29].mxu0  ;;  %v5201_v32 = vld [vmem:[%s7412_s23 + $0x18] sm:$0xff] }
 0x6ee   : > { %6652 = vpow2.f32 %v5190_v31  ;;  %v1457_v59 = vadd.f32 %v1456_v7, %v7981_v45  ;;  %v1610_v31 = vstv %s5199_s22  ;;  %s5245_s22 = sld [smem:[#allocation2 + $0x42]] }
 0x6ef   : > { %v5193_v62 = vmul.f32 -1.442695, %v1462_v38  ;;  %v1611_v7 = vmul.f32 %v1610_v31, %v7888_v35 }
 0x6f0   : > { %v5192_v40 = vmul.f32 -1.442695, %v1457_v59  ;;  %v5876_v37 = vpop.f32.mrb[30].mxu0 }
 0x6f1   : > { %6654 = vpow2.f32 %v5193_v62  ;;  %v1472_v6 = vadd.f32 %v5876_v37, %v7985_v49  ;;  %v1466_v42 = vpop.f32.mrb[31].mxu0  ;;  %v1607_v37 = vstv %s5198_s0  ;;  %s5267_s0 = sld [smem:[#allocation2 + $0x1b]] }
 0x6f2   : > { %6656 = vpow2.f32 %v5192_v40  ;;  %v1467_v21 = vadd.f32 %v1466_v42, %v7987_v53  ;;  %v1605_v40 = vstv %s5197_s12  ;;  %s5243_s12 = sld [smem:[#allocation2 + $0x32]] }
 0x6f3   : > { %v6647_v1 = vpop.eup %6646  ;;  %v5195_v27 = vmul.f32 -1.442695, %v1472_v6 }
 0x6f4   : > { %v6649_v50 = vpop.eup %6648  ;;  %v1500_v39 = vadd.f32 1.0, %v6647_v1  ;;  %v5194_v25 = vmul.f32 -1.442695, %v1467_v21 }
 0x6f5   : > { %v1499_v15 = vadd.f32 1.0, %v6649_v50  ;;  %6658 = vpow2.f32 %v5195_v27 }
 0x6f6   : > { %6660 = vrcp.f32 %v1500_v39 }
 0x6f7   : > { %v6651_v13 = vpop.eup %6650  ;;  %6662 = vrcp.f32 %v1499_v15 }
 0x6f8   : > { %v6653_v45 = vpop.eup %6652  ;;  %v1502_v43 = vadd.f32 1.0, %v6651_v13  ;;  %6664 = vpow2.f32 %v5194_v25  ;;  %v8107_v13 = vpop.permute.xlu1 %1640 }
 0x6f9   : > { %v1501_v46 = vadd.f32 1.0, %v6653_v45 }
 0x6fa   : > { %6666 = vrcp.f32 %v1502_v43 }
 0x6fb   : > { %v6655_v49 = vpop.eup %6654  ;;  %6668 = vrcp.f32 %v1501_v46 }
 0x6fc   : > { %v6657_v54 = vpop.eup %6656  ;;  %v1504_v60 = vadd.f32 1.0, %v6655_v49  ;;  %v8111_v46 = vpop.permute.xlu1 %1650 }
 0x6fd   : > { %v1503_v53 = vadd.f32 1.0, %v6657_v54 }
 0x6fe   : > { %6670 = vrcp.f32 %v1504_v60 }
 0x6ff   : > { %v6659_v20 = vpop.eup %6658  ;;  %6672 = vrcp.f32 %v1503_v53 }
 0x700   : > { %v6661_v24 = vpop.eup %6660  ;;  %v1506_v26 = vadd.f32 1.0, %v6659_v20 }
 0x701   : > { %v6663_v9 = vpop.eup %6662  ;;  %v1524_v61 = vmul.f32 %v6661_v24, %v1442_v23 }
 0x702   : > { %v6665_v55 = vpop.eup %6664  ;;  %v1523_v44 = vmul.f32 %v6663_v9, %v1437_v8  ;;  %6674 = vrcp.f32 %v1506_v26 }
 0x703   : > { %v1505_v52 = vadd.f32 1.0, %v6665_v55 }
 0x704   : > { %v6667_v51 = vpop.eup %6666  ;;  %v6329_v33 = vpack.c.bf16 %v1524_v61, %v1523_v44  ;;  %v8119_v44 = vpop.permute.xlu1 %1660 }
 0x705   : > { %v6669_v36 = vpop.eup %6668  ;;  %v1526_v3 = vmul.f32 %v6667_v51, %v1452_v22  ;;  %6676 = vrcp.f32 %v1505_v52 }
 0x706   : > { %v1525_v47 = vmul.f32 %v6669_v36, %v1447_v30  ;;  %6330 = vmatpush3.bf16.msra.mxu1 %v6329_v33 }
 0x707   : > { %6331 = vmatprep.subr.bf16.mxu1 %v7218_v16 }
 0x708   : > { %v6671_v19 = vpop.eup %6670  ;;  %v6332_v18 = vpack.c.bf16 %v1526_v3, %v1525_v47 }
 0x709   : > { %v6673_v11 = vpop.eup %6672  ;;  %v1528_v4 = vmul.f32 %v6671_v19, %v1462_v38  ;;  %v1614_v38 = vstv %s5200_s15  ;;  %s5242_s15 = sld [smem:[#allocation2 + $0x2a]] }
 0x70a   : > { %v1527_v28 = vmul.f32 %v6673_v11, %v1457_v59  ;;  %6333 = vmatpush3.bf16.msra.mxu1 %v6332_v18  ;;  %v1615_v59 = vmul.f32 %v5201_v32, %v1614_v38 }
 0x70b   : > { %6334 = vmatprep.subr.bf16.mxu1 %v7218_v16 }
 0x70c   : > { %v6675_v23 = vpop.eup %6674  ;;  %v6335_v8 = vpack.c.bf16 %v1528_v4, %v1527_v28  ;;  %v1616_v27 = vadd.f32 %v1615_v59, %v1611_v7  ;;  %v8125_v28 = vpop.permute.xlu1 %1670 }
 0x70d   : > { %v1530_v17 = vmul.f32 %v6675_v23, %v1472_v6 }
 0x70e   : > { %6336 = vmatpush3.bf16.msra.mxu1 %v6335_v8 }
 0x70f   : > { %v6677_v29 = vpop.eup %6676  ;;  %6337 = vmatprep.subr.bf16.mxu1 %v7218_v16 }
 0x710   : > { %v1529_v22 = vmul.f32 %v6677_v29, %v1467_v21  ;;  %v1606_v21 = vmul.f32 %v1605_v40, %v8004_v56  ;;  %v8105_v56 = vpop.permute.xlu0 %1645 }
 0x712   : > { %v6338_v30 = vpack.c.bf16 %v1530_v17, %v1529_v22 }
 0x714   : > { %6339 = vmatpush3.bf16.msra.mxu1 %v6338_v30  ;;  %v8109_v45 = vpop.permute.xlu0 %1655 }
 0x715   : > { %6340 = vmatprep.subr.bf16.mxu1 %v7218_v16 }
 0x717   : > { %5894 = vmatmul.mubr.msk.f32.vlgmr.msra.gmra.mrb[6].mxu1 %vm720_vm2, %v7874_v14 }
 0x718   : > { %5926 = vmatprep.mubr.msk.f32.mxu1 %vm7219_vm1, %v7220_v0  ;;  %v8116_v61 = vpop.permute.xlu0 %1665 }
 0x71c   : > { %v8123_v18 = vpop.permute.xlu0 %1675 }
 0x7ea   : > { %v1597_v62 = vpop.f32.mrb[6].mxu1 }
 0x7eb   : > { %v1598_v6 = vadd.f32 %v1597_v62, %v7892_v12  ;;  %v5895_v42 = vpop.f32.mrb[7].mxu1 }
 0x7ed   : > { %v1608_v1 = vmul.f32 %v1607_v37, %v1598_v6 }
 0x7ef   : > { %v1609_v50 = vadd.f32 %v1608_v1, %v1606_v21 }
 0x7f1   : > { %v1617_v39 = vsub.f32 %v1616_v27, %v1609_v50 }
 0x7f3   : > { %v1618_v25 = vmul.f32 %v1617_v39, %v7903_v57 }
 0x7f5   : > { %v8085_v15 = vadd.f32 %v1618_v25, %v1609_v50 }
 0x7f7   : > { %5896 = vmatprep.subr.mxu0 %v8085_v15 }
 0x7f8   : > { %5897 = vmatpush3.msra.mxu0 %v8085_v15 }
 0x7f9   : > { %5899 = vmatmul.mubr.msk.f32.vlgmr.msra.gmra.mrb[32].mxu0 %vm529_vm0, %v8011_v58 }
 0x7fa   : > { %5901 = vmatprep.mubr.msk.f32.mxu0 %vm529_vm0, %v8018_v34 }
 0x7fd   : > { %5902 = vmatmul.mubr.msk.f32.gmra.mrb[34].mxu0 %vm529_vm0, %v8025_v41 }
 0x7fe   : > { %5904 = vmatprep.mubr.msk.f32.mxu0 %vm529_vm0, %v8032_v63 }
 0x801   : > { %5905 = vmatmul.mubr.msk.f32.gmra.mrb[36].mxu0 %vm529_vm0, %v8039_v48 }
 0x802   : > { %5907 = vmatprep.mubr.msk.f32.mxu0 %vm529_vm0, %v8046_v10 }
 0x805   : > { %5908 = vmatmul.mubr.msk.f32.gmra.mrb[38].mxu0 %vm529_vm0, %v8053_v2 }
 0x806   : > { %5931 = vmatprep.mubr.msk.f32.mxu0 %vm529_vm0, %v8060_v5 }
 0x8cc   : > { %v5900_v43 = vpop.f32.mrb[32].mxu0 }
 0x8cd   : > { %v1750_v49 = vadd.f32 %v5900_v43, %v8105_v56  ;;  %v1744_v54 = vpop.f32.mrb[33].mxu0 }
 0x8ce   : > { %v1745_v60 = vadd.f32 %v1744_v54, %v8107_v13 }
 0x8cf   : > { %v5212_v53 = vmul.f32 -1.442695, %v1750_v49 }
 0x8d0   : > { %v5211_v20 = vmul.f32 -1.442695, %v1745_v60  ;;  %v5903_v24 = vpop.f32.mrb[34].mxu0 }
 0x8d1   : > { %6678 = vpow2.f32 %v5212_v53  ;;  %v1760_v26 = vadd.f32 %v5903_v24, %v8109_v45  ;;  %v1754_v9 = vpop.f32.mrb[35].mxu0 }
 0x8d2   : > { %6680 = vpow2.f32 %v5211_v20  ;;  %v1755_v55 = vadd.f32 %v1754_v9, %v8111_v46 }
 0x8d3   : > { %v5214_v52 = vmul.f32 -1.442695, %v1760_v26 }
 0x8d4   : > { %v5213_v51 = vmul.f32 -1.442695, %v1755_v55  ;;  %v5906_v33 = vpop.f32.mrb[36].mxu0 }
 0x8d5   : > { %6682 = vpow2.f32 %v5214_v52  ;;  %v1770_v36 = vadd.f32 %v5906_v33, %v8116_v61  ;;  %v1764_v3 = vpop.f32.mrb[37].mxu0 }
 0x8d6   : > { %6684 = vpow2.f32 %v5213_v51  ;;  %v1765_v47 = vadd.f32 %v1764_v3, %v8119_v44 }
 0x8d7   : > { %v5216_v19 = vmul.f32 -1.442695, %v1770_v36 }
 0x8d8   : > { %v5215_v11 = vmul.f32 -1.442695, %v1765_v47  ;;  %v5909_v4 = vpop.f32.mrb[38].mxu0 }
 0x8d9   : > { %6686 = vpow2.f32 %v5216_v19  ;;  %v1780_v23 = vadd.f32 %v5909_v4, %v8123_v18  ;;  %v1774_v8 = vpop.f32.mrb[39].mxu0 }
 0x8da   : > { %6688 = vpow2.f32 %v5215_v11  ;;  %v1775_v17 = vadd.f32 %v1774_v8, %v8125_v28 }
 0x8db   : > { %v6679_v29 = vpop.eup %6678  ;;  %v5218_v22 = vmul.f32 -1.442695, %v1780_v23 }
 0x8dc   : > { %v6681_v30 = vpop.eup %6680  ;;  %v1808_v31 = vadd.f32 1.0, %v6679_v29  ;;  %v5217_v32 = vmul.f32 -1.442695, %v1775_v17 }
 0x8dd   : > { %v1807_v38 = vadd.f32 1.0, %v6681_v30  ;;  %6690 = vpow2.f32 %v5218_v22 }
 0x8de   : > { %6692 = vrcp.f32 %v1808_v31  ;;  %v1913_v31 = vstv %s5220_s28  ;;  %s5266_s28 = sld [smem:[#allocation2 + $0x13]] }
 0x8df   : > { %v6683_v7 = vpop.eup %6682  ;;  %6694 = vrcp.f32 %v1807_v38 }
 0x8e0   : > { %v6685_v59 = vpop.eup %6684  ;;  %v1810_v62 = vadd.f32 1.0, %v6683_v7  ;;  %6696 = vpow2.f32 %v5217_v32  ;;  %v1915_v32 = vstv %s5221_s18  ;;  %s5289_s18 = sld [smem:[#allocation2 + $0x3b]] }
 0x8e1   : > { %v1809_v40 = vadd.f32 1.0, %v6685_v59 }
 0x8e2   : > { %6698 = vrcp.f32 %v1810_v62 }
 0x8e3   : > { %v6687_v37 = vpop.eup %6686  ;;  %6700 = vrcp.f32 %v1809_v40 }
 0x8e4   : > { %v6689_v6 = vpop.eup %6688  ;;  %v1812_v42 = vadd.f32 1.0, %v6687_v37 }
 0x8e5   : > { %v1811_v21 = vadd.f32 1.0, %v6689_v6 }
 0x8e6   : > { %6702 = vrcp.f32 %v1812_v42 }
 0x8e7   : > { %v6691_v1 = vpop.eup %6690  ;;  %6704 = vrcp.f32 %v1811_v21 }
 0x8e8   : > { %v6693_v27 = vpop.eup %6692  ;;  %v1814_v50 = vadd.f32 1.0, %v6691_v1 }
 0x8e9   : > { %v6695_v39 = vpop.eup %6694  ;;  %v1832_v25 = vmul.f32 %v6693_v27, %v1750_v49 }
 0x8ea   : > { %v6697_v43 = vpop.eup %6696  ;;  %v1831_v54 = vmul.f32 %v6695_v39, %v1745_v60  ;;  %6706 = vrcp.f32 %v1814_v50 }
 0x8eb   : > { %v1813_v53 = vadd.f32 1.0, %v6697_v43 }
 0x8ec   : > { %v6699_v20 = vpop.eup %6698  ;;  %v6341_v24 = vpack.c.bf16 %v1832_v25, %v1831_v54 }
 0x8ed   : > { %v6701_v9 = vpop.eup %6700  ;;  %v1834_v52 = vmul.f32 %v6699_v20, %v1760_v26  ;;  %6708 = vrcp.f32 %v1813_v53 }
 0x8ee   : > { %v1833_v51 = vmul.f32 %v6701_v9, %v1755_v55  ;;  %6342 = vmatpush3.bf16.msra.mxu1 %v6341_v24 }
 0x8ef   : > { %6343 = vmatprep.subr.bf16.mxu1 %v7218_v16 }
 0x8f0   : > { %v6703_v33 = vpop.eup %6702  ;;  %v6344_v3 = vpack.c.bf16 %v1834_v52, %v1833_v51 }
 0x8f1   : > { %v6705_v19 = vpop.eup %6704  ;;  %v1836_v11 = vmul.f32 %v6703_v33, %v1770_v36  ;;  %v1918_v36 = vstv %s5222_s27  ;;  %s5268_s27 = sld [smem:[#allocation2 + $0x23]] }
 0x8f2   : > { %v1835_v4 = vmul.f32 %v6705_v19, %v1765_v47  ;;  %6345 = vmatpush3.bf16.msra.mxu1 %v6344_v3  ;;  %v5224_v47 = vld [vmem:[%s7412_s23 + $0x20] sm:$0xff]  ;;  %v1919_v22 = vmul.f32 %v1918_v36, %v7888_v35 }
 0x8f3   : > { %6346 = vmatprep.subr.bf16.mxu1 %v7218_v16 }
 0x8f4   : > { %v6707_v49 = vpop.eup %6706  ;;  %v6347_v60 = vpack.c.bf16 %v1836_v11, %v1835_v4 }
 0x8f5   : > { %v1838_v8 = vmul.f32 %v6707_v49, %v1780_v23  ;;  %v1922_v23 = vstv %s5223_s19  ;;  %s5265_s19 = sld [smem:[#allocation2 + $0xb]] }
 0x8f6   : > { %6348 = vmatpush3.bf16.msra.mxu1 %v6347_v60 }
 0x8f7   : > { %v6709_v29 = vpop.eup %6708  ;;  %6349 = vmatprep.subr.bf16.mxu1 %v7218_v16 }
 0x8f8   : > { %v1837_v26 = vmul.f32 %v6709_v29, %v1775_v17  ;;  %v1923_v17 = vmul.f32 %v5224_v47, %v1922_v23 }
 0x8fa   : > { %v6350_v55 = vpack.c.bf16 %v1838_v8, %v1837_v26  ;;  %v1924_v62 = vadd.f32 %v1923_v17, %v1919_v22 }
 0x8fc   : > { %6351 = vmatpush3.bf16.msra.mxu1 %v6350_v55 }
 0x8fd   : > { %6352 = vmatprep.subr.bf16.mxu1 %v7218_v16 }
 0x8ff   : > { %5927 = vmatmul.mubr.msk.f32.vlgmr.msra.gmra.mrb[8].mxu1 %vm720_vm2, %v7874_v14  ;;  %v1914_v14 = vmul.f32 %v1913_v31, %v8085_v15 }
 0x900   : > { %5959 = vmatprep.mubr.msk.f32.mxu1 %vm7219_vm1, %v7220_v0 }
 0x9d2   : > { %v1905_v30 = vpop.f32.mrb[8].mxu1 }
 0x9d3   : > { %v1906_v38 = vadd.f32 %v1905_v30, %v7892_v12  ;;  %v5928_v7 = vpop.f32.mrb[9].mxu1 }
 0x9d5   : > { %v1916_v59 = vmul.f32 %v1915_v32, %v1906_v38 }
 0x9d7   : > { %v1917_v40 = vadd.f32 %v1916_v59, %v1914_v14 }
 0x9d9   : > { %v1925_v37 = vsub.f32 %v1924_v62, %v1917_v40 }
 0x9db   : > { %v1926_v6 = vmul.f32 %v1925_v37, %v7903_v57 }
 0x9dd   : > { %v8142_v42 = vadd.f32 %v1926_v6, %v1917_v40 }
 0x9df   : > { %5929 = vmatprep.subr.mxu0 %v8142_v42 }
 0x9e0   : > { %5930 = vmatpush3.msra.mxu0 %v8142_v42 }
 0x9e1   : > { %5932 = vmatmul.mubr.msk.f32.vlgmr.msra.gmra.mrb[40].mxu0 %vm529_vm0, %v8011_v58 }
 0x9e2   : > { %5934 = vmatprep.mubr.msk.f32.mxu0 %vm529_vm0, %v8018_v34 }
 0x9e5   : > { %5935 = vmatmul.mubr.msk.f32.gmra.mrb[42].mxu0 %vm529_vm0, %v8025_v41 }
 0x9e6   : > { %5937 = vmatprep.mubr.msk.f32.mxu0 %vm529_vm0, %v8032_v63 }
 0x9e9   : > { %5938 = vmatmul.mubr.msk.f32.gmra.mrb[44].mxu0 %vm529_vm0, %v8039_v48 }
 0x9ea   : > { %5940 = vmatprep.mubr.msk.f32.mxu0 %vm529_vm0, %v8046_v10 }
 0x9ed   : > { %5941 = vmatmul.mubr.msk.f32.gmra.mrb[46].mxu0 %vm529_vm0, %v8053_v2 }
 0x9ee   : > { %5964 = vmatprep.mubr.msk.f32.mxu0 %vm529_vm0, %v8060_v5 }
 0xab4   : > { %v5933_v35 = vpop.f32.mrb[40].mxu0 }
 0xab5   : > { %v2000_v57 = vadd.f32 %v5933_v35, %v8105_v56  ;;  %v1994_v15 = vpop.f32.mrb[41].mxu0 }
 0xab6   : > { %v1995_v21 = vadd.f32 %v1994_v15, %v8107_v13 }
 0xab7   : > { %v5234_v1 = vmul.f32 -1.442695, %v2000_v57 }
 0xab8   : > { %v5233_v27 = vmul.f32 -1.442695, %v1995_v21  ;;  %v5936_v50 = vpop.f32.mrb[42].mxu0 }
 0xab9   : > { %6710 = vpow2.f32 %v5234_v1  ;;  %v2010_v39 = vadd.f32 %v5936_v50, %v8109_v45  ;;  %v2004_v25 = vpop.f32.mrb[43].mxu0 }
 0xaba   : > { %6712 = vpow2.f32 %v5233_v27  ;;  %v2005_v43 = vadd.f32 %v2004_v25, %v8111_v46  ;;  %v8177_v25 = vld [vmem:[%s8829_s8] sm:$0xff] }
 0xabb   : > { %v5236_v54 = vmul.f32 -1.442695, %v2010_v39 }
 0xabc   : > { %v5235_v53 = vmul.f32 -1.442695, %v2005_v43  ;;  %v5939_v20 = vpop.f32.mrb[44].mxu0 }
 0xabd   : > { %6714 = vpow2.f32 %v5236_v54  ;;  %v2020_v24 = vadd.f32 %v5939_v20, %v8116_v61  ;;  %v2014_v56 = vpop.f32.mrb[45].mxu0  ;;  %v5246_v54 = vld [vmem:[%s7412_s23 + $0x28] sm:$0xff]  ;;  %v8185_v20 = vld [vmem:[%s7885_s29] sm:$0xff] }
 0xabe   : > { %6716 = vpow2.f32 %v5235_v53  ;;  %v2015_v13 = vadd.f32 %v2014_v56, %v8119_v44  ;;  %v2172_v53 = vstv %s5245_s22  ;;  %s5332_s22 = sld [smem:[#allocation2 + $0x2c]] }
 0xabf   : > { %v5238_v9 = vmul.f32 -1.442695, %v2020_v24  ;;  %v2173_v56 = vmul.f32 %v5246_v54, %v2172_v53 }
 0xac0   : > { %v5237_v52 = vmul.f32 -1.442695, %v2015_v13  ;;  %v5942_v51 = vpop.f32.mrb[46].mxu0 }
 0xac1   : > { %6718 = vpow2.f32 %v5238_v9  ;;  %v2030_v45 = vadd.f32 %v5942_v51, %v8123_v18  ;;  %v2024_v33 = vpop.f32.mrb[47].mxu0  ;;  %v2163_v9 = vstv %s5242_s15  ;;  %s5333_s15 = sld [smem:[#allocation2 + $0x34]] }
 0xac2   : > { %6720 = vpow2.f32 %v5237_v52  ;;  %v2025_v46 = vadd.f32 %v2024_v33, %v8125_v28  ;;  %v2165_v52 = vstv %s5243_s12  ;;  %v2164_v33 = vmul.f32 %v2163_v9, %v8142_v42  ;;  %v8214_v42 = vpop.permute.xlu0 %2203  ;;  %s5403_s12 = sld [smem:[#allocation2 + $0x26]] }
 0xac3   : > { %v6711_v3 = vpop.eup %6710  ;;  %v5240_v19 = vmul.f32 -1.442695, %v2030_v45 }
 0xac4   : > { %v6713_v11 = vpop.eup %6712  ;;  %v2058_v4 = vadd.f32 1.0, %v6711_v3  ;;  %v5239_v49 = vmul.f32 -1.442695, %v2025_v46 }
 0xac5   : > { %v2057_v61 = vadd.f32 1.0, %v6713_v11  ;;  %6722 = vpow2.f32 %v5240_v19 }
 0xac6   : > { %6724 = vrcp.f32 %v2058_v4  ;;  %v8191_v4 = vld [vmem:[%s7900_s30] sm:$0xff] }
 0xac7   : > { %v6715_v60 = vpop.eup %6714  ;;  %6726 = vrcp.f32 %v2057_v61 }
 0xac8   : > { %v6717_v44 = vpop.eup %6716  ;;  %v2060_v8 = vadd.f32 1.0, %v6715_v60  ;;  %6728 = vpow2.f32 %v5239_v49  ;;  %v8216_v60 = vpop.permute.xlu1 %2198 }
 0xac9   : > { %v2059_v29 = vadd.f32 1.0, %v6717_v44  ;;  %v8218_v44 = vpop.permute.xlu0 %2213 }
 0xaca   : > { %6730 = vrcp.f32 %v2060_v8 }
 0xacb   : > { %v6719_v18 = vpop.eup %6718  ;;  %6732 = vrcp.f32 %v2059_v29 }
 0xacc   : > { %v6721_v26 = vpop.eup %6720  ;;  %v2062_v55 = vadd.f32 1.0, %v6719_v18  ;;  %v8220_v29 = vpop.permute.xlu1 %2208 }
 0xacd   : > { %v2061_v28 = vadd.f32 1.0, %v6721_v26 }
 0xace   : > { %6734 = vrcp.f32 %v2062_v55 }
 0xacf   : > { %v6723_v36 = vpop.eup %6722  ;;  %6736 = vrcp.f32 %v2061_v28 }
 0xad0   : > { %v6725_v47 = vpop.eup %6724  ;;  %v2064_v23 = vadd.f32 1.0, %v6723_v36 }
 0xad1   : > { %v6727_v22 = vpop.eup %6726  ;;  %v2082_v17 = vmul.f32 %v6725_v47, %v2000_v57 }
 0xad2   : > { %v6729_v30 = vpop.eup %6728  ;;  %v2081_v31 = vmul.f32 %v6727_v22, %v1995_v21  ;;  %6738 = vrcp.f32 %v2064_v23 }
 0xad3   : > { %v2063_v32 = vadd.f32 1.0, %v6729_v30 }
 0xad4   : > { %v6731_v38 = vpop.eup %6730  ;;  %v6353_v7 = vpack.c.bf16 %v2082_v17, %v2081_v31  ;;  %v8225_v17 = vpop.permute.xlu0 %2223 }
 0xad5   : > { %v6733_v14 = vpop.eup %6732  ;;  %v2084_v59 = vmul.f32 %v6731_v38, %v2010_v39  ;;  %6740 = vrcp.f32 %v2063_v32  ;;  %v8228_v31 = vpop.permute.xlu1 %2218 }
 0xad6   : > { %v2083_v62 = vmul.f32 %v6733_v14, %v2005_v43  ;;  %6354 = vmatpush3.bf16.msra.mxu1 %v6353_v7  ;;  %v2168_v43 = vstv %s5244_s11  ;;  %s5288_s11 = sld [smem:[#allocation2 + $0x33]] }
 0xad7   : > { %6355 = vmatprep.subr.bf16.mxu1 %v7218_v16 }
 0xad8   : > { %v6735_v40 = vpop.eup %6734  ;;  %v6356_v37 = vpack.c.bf16 %v2084_v59, %v2083_v62 }
 0xad9   : > { %v6737_v6 = vpop.eup %6736  ;;  %v2086_v35 = vmul.f32 %v6735_v40, %v2020_v24  ;;  %v2169_v24 = vmul.f32 %v8185_v20, %v2168_v43 }
 0xada   : > { %v2085_v15 = vmul.f32 %v6737_v6, %v2015_v13  ;;  %6357 = vmatpush3.bf16.msra.mxu1 %v6356_v37  ;;  %v8232_v37 = vpop.permute.xlu0 %2233 }
 0xadb   : > { %6358 = vmatprep.subr.bf16.mxu1 %v7218_v16  ;;  %v2174_v3 = vadd.f32 %v2173_v56, %v2169_v24 }
 0xadc   : > { %v6739_v57 = vpop.eup %6738  ;;  %v6359_v21 = vpack.c.bf16 %v2086_v35, %v2085_v15  ;;  %v8234_v15 = vpop.permute.xlu1 %2228 }
 0xadd   : > { %v2088_v1 = vmul.f32 %v6739_v57, %v2030_v45 }
 0xade   : > { %6360 = vmatpush3.bf16.msra.mxu1 %v6359_v21 }
 0xadf   : > { %v6741_v27 = vpop.eup %6740  ;;  %6361 = vmatprep.subr.bf16.mxu1 %v7218_v16 }
 0xae0   : > { %v2087_v50 = vmul.f32 %v6741_v27, %v2025_v46 }
 0xae2   : > { %v6362_v39 = vpack.c.bf16 %v2088_v1, %v2087_v50 }
 0xae4   : > { %6363 = vmatpush3.bf16.msra.mxu1 %v6362_v39 }
 0xae5   : > { %6364 = vmatprep.subr.bf16.mxu1 %v7218_v16 }
 0xae7   : > { %5960 = vmatmul.mubr.msk.f32.vlgmr.msra.gmra.mrb[10].mxu1 %vm720_vm2, %v8177_v25 }
 0xae8   : > { %5992 = vmatprep.mubr.msk.f32.mxu1 %vm7219_vm1, %v7220_v0 }
 0xbba   : > { %v2155_v13 = vpop.f32.mrb[10].mxu1 }
 0xbbb   : > { %v2156_v51 = vadd.f32 %v2155_v13, %v7892_v12  ;;  %v5961_v45 = vpop.f32.mrb[11].mxu1 }
 0xbbd   : > { %v2166_v46 = vmul.f32 %v2165_v52, %v2156_v51 }
 0xbbf   : > { %v2167_v19 = vadd.f32 %v2166_v46, %v2164_v33 }
 0xbc1   : > { %v2175_v11 = vsub.f32 %v2174_v3, %v2167_v19 }
 0xbc3   : > { %v2176_v49 = vmul.f32 %v8191_v4, %v2175_v11 }
 0xbc5   : > { %v8194_v61 = vadd.f32 %v2176_v49, %v2167_v19 }
 0xbc7   : > { %5962 = vmatprep.subr.mxu0 %v8194_v61 }
 0xbc8   : > { %5963 = vmatpush3.msra.mxu0 %v8194_v61 }
 0xbc9   : > { %5965 = vmatmul.mubr.msk.f32.vlgmr.msra.gmra.mrb[48].mxu0 %vm529_vm0, %v8011_v58 }
 0xbca   : > { %5967 = vmatprep.mubr.msk.f32.mxu0 %vm529_vm0, %v8018_v34 }
 0xbcd   : > { %5968 = vmatmul.mubr.msk.f32.gmra.mrb[50].mxu0 %vm529_vm0, %v8025_v41 }
 0xbce   : > { %5970 = vmatprep.mubr.msk.f32.mxu0 %vm529_vm0, %v8032_v63 }
 0xbd1   : > { %5971 = vmatmul.mubr.msk.f32.gmra.mrb[52].mxu0 %vm529_vm0, %v8039_v48 }
 0xbd2   : > { %5973 = vmatprep.mubr.msk.f32.mxu0 %vm529_vm0, %v8046_v10 }
 0xbd5   : > { %5974 = vmatmul.mubr.msk.f32.gmra.mrb[54].mxu0 %vm529_vm0, %v8053_v2 }
 0xbd6   : > { %5997 = vmatprep.mubr.msk.f32.mxu0 %vm529_vm0, %v8060_v5 }
 0xc9c   : > { %v5966_v8 = vpop.f32.mrb[48].mxu0 }
 0xc9d   : > { %v2308_v18 = vadd.f32 %v5966_v8, %v8214_v42  ;;  %v2302_v26 = vpop.f32.mrb[49].mxu0 }
 0xc9e   : > { %v2303_v55 = vadd.f32 %v2302_v26, %v8216_v60 }
 0xc9f   : > { %v5257_v28 = vmul.f32 -1.442695, %v2308_v18 }
 0xca0   : > { %v5256_v36 = vmul.f32 -1.442695, %v2303_v55  ;;  %v5969_v47 = vpop.f32.mrb[50].mxu0 }
 0xca1   : > { %6742 = vpow2.f32 %v5257_v28  ;;  %v2318_v23 = vadd.f32 %v5969_v47, %v8218_v44  ;;  %v2312_v22 = vpop.f32.mrb[51].mxu0 }
 0xca2   : > { %6744 = vpow2.f32 %v5256_v36  ;;  %v2313_v30 = vadd.f32 %v2312_v22, %v8220_v29 }
 0xca3   : > { %v5259_v32 = vmul.f32 -1.442695, %v2318_v23 }
 0xca4   : > { %v5258_v38 = vmul.f32 -1.442695, %v2313_v30  ;;  %v5972_v7 = vpop.f32.mrb[52].mxu0 }
 0xca5   : > { %6746 = vpow2.f32 %v5259_v32  ;;  %v2328_v14 = vadd.f32 %v5972_v7, %v8225_v17  ;;  %v2322_v59 = vpop.f32.mrb[53].mxu0 }
 0xca6   : > { %6748 = vpow2.f32 %v5258_v38  ;;  %v2323_v62 = vadd.f32 %v2322_v59, %v8228_v31 }
 0xca7   : > { %v5261_v40 = vmul.f32 -1.442695, %v2328_v14 }
 0xca8   : > { %v5260_v6 = vmul.f32 -1.442695, %v2323_v62  ;;  %v5975_v35 = vpop.f32.mrb[54].mxu0 }
 0xca9   : > { %6750 = vpow2.f32 %v5261_v40  ;;  %v2338_v57 = vadd.f32 %v5975_v35, %v8232_v37  ;;  %v2332_v21 = vpop.f32.mrb[55].mxu0 }
 0xcaa   : > { %6752 = vpow2.f32 %v5260_v6  ;;  %v2333_v1 = vadd.f32 %v2332_v21, %v8234_v15 }
 0xcab   : > { %v6743_v27 = vpop.eup %6742  ;;  %v5263_v50 = vmul.f32 -1.442695, %v2338_v57 }
 0xcac   : > { %v6745_v39 = vpop.eup %6744  ;;  %v2366_v43 = vadd.f32 1.0, %v6743_v27  ;;  %v5262_v54 = vmul.f32 -1.442695, %v2333_v1 }
 0xcad   : > { %v2365_v53 = vadd.f32 1.0, %v6745_v39  ;;  %6754 = vpow2.f32 %v5263_v50 }
 0xcae   : > { %6756 = vrcp.f32 %v2366_v43  ;;  %v2471_v43 = vstv %s5265_s19  ;;  %s5312_s19 = sld [smem:[#allocation2 + $0x1c]] }
 0xcaf   : > { %v6747_v24 = vpop.eup %6746  ;;  %6758 = vrcp.f32 %v2365_v53 }
 0xcb0   : > { %v6749_v56 = vpop.eup %6748  ;;  %v2368_v13 = vadd.f32 1.0, %v6747_v24  ;;  %6760 = vpow2.f32 %v5262_v54  ;;  %v2473_v54 = vstv %s5266_s28  ;;  %s5313_s28 = sld [smem:[#allocation2 + $0x24]] }
 0xcb1   : > { %v2367_v9 = vadd.f32 1.0, %v6749_v56  ;;  %v2472_v56 = vmul.f32 %v2471_v43, %v8194_v61 }
 0xcb2   : > { %6762 = vrcp.f32 %v2368_v13 }
 0xcb3   : > { %v6751_v52 = vpop.eup %6750  ;;  %6764 = vrcp.f32 %v2367_v9 }
 0xcb4   : > { %v6753_v51 = vpop.eup %6752  ;;  %v2370_v45 = vadd.f32 1.0, %v6751_v52 }
 0xcb5   : > { %v2369_v33 = vadd.f32 1.0, %v6753_v51 }
 0xcb6   : > { %6766 = vrcp.f32 %v2370_v45 }
 0xcb7   : > { %v6755_v46 = vpop.eup %6754  ;;  %6768 = vrcp.f32 %v2369_v33 }
 0xcb8   : > { %v6757_v3 = vpop.eup %6756  ;;  %v2372_v19 = vadd.f32 1.0, %v6755_v46 }
 0xcb9   : > { %v6759_v11 = vpop.eup %6758  ;;  %v2390_v49 = vmul.f32 %v6757_v3, %v2308_v18 }
 0xcba   : > { %v6761_v8 = vpop.eup %6760  ;;  %v2389_v26 = vmul.f32 %v6759_v11, %v2303_v55  ;;  %6770 = vrcp.f32 %v2372_v19 }
 0xcbb   : > { %v2371_v28 = vadd.f32 1.0, %v6761_v8 }
 0xcbc   : > { %v6763_v36 = vpop.eup %6762  ;;  %v6365_v47 = vpack.c.bf16 %v2390_v49, %v2389_v26 }
 0xcbd   : > { %v6765_v22 = vpop.eup %6764  ;;  %v2392_v32 = vmul.f32 %v6763_v36, %v2318_v23  ;;  %6772 = vrcp.f32 %v2371_v28 }
 0xcbe   : > { %v2391_v38 = vmul.f32 %v6765_v22, %v2313_v30  ;;  %6366 = vmatpush3.bf16.msra.mxu1 %v6365_v47 }
 0xcbf   : > { %6367 = vmatprep.subr.bf16.mxu1 %v7218_v16 }
 0xcc0   : > { %v6767_v7 = vpop.eup %6766  ;;  %v6368_v59 = vpack.c.bf16 %v2392_v32, %v2391_v38 }
 0xcc1   : > { %v6769_v40 = vpop.eup %6768  ;;  %v2394_v6 = vmul.f32 %v6767_v7, %v2328_v14  ;;  %v2476_v14 = vstv %s5267_s0  ;;  %s5400_s0 = sld [smem:[#allocation2 + $0xe]] }
 0xcc2   : > { %v2393_v35 = vmul.f32 %v6769_v40, %v2323_v62  ;;  %6369 = vmatpush3.bf16.msra.mxu1 %v6368_v59  ;;  %v5269_v62 = vld [vmem:[%s7412_s23 + $0x30] sm:$0xff]  ;;  %v2477_v50 = vmul.f32 %v8185_v20, %v2476_v14 }
 0xcc3   : > { %6370 = vmatprep.subr.bf16.mxu1 %v7218_v16 }
 0xcc4   : > { %v6771_v18 = vpop.eup %6770  ;;  %v6371_v55 = vpack.c.bf16 %v2394_v6, %v2393_v35 }
 0xcc5   : > { %v2396_v21 = vmul.f32 %v6771_v18, %v2338_v57  ;;  %v2480_v57 = vstv %s5268_s27  ;;  %s5357_s27 = sld [smem:[#allocation2 + $0x1d]] }
 0xcc6   : > { %6372 = vmatpush3.bf16.msra.mxu1 %v6371_v55 }
 0xcc7   : > { %v6773_v27 = vpop.eup %6772  ;;  %6373 = vmatprep.subr.bf16.mxu1 %v7218_v16 }
 0xcc8   : > { %v2395_v23 = vmul.f32 %v6773_v27, %v2333_v1  ;;  %v2481_v1 = vmul.f32 %v5269_v62, %v2480_v57 }
 0xcca   : > { %v6374_v30 = vpack.c.bf16 %v2396_v21, %v2395_v23  ;;  %v2482_v9 = vadd.f32 %v2481_v1, %v2477_v50 }
 0xccc   : > { %6375 = vmatpush3.bf16.msra.mxu1 %v6374_v30 }
 0xccd   : > { %6376 = vmatprep.subr.bf16.mxu1 %v7218_v16 }
 0xccf   : > { %5993 = vmatmul.mubr.msk.f32.vlgmr.msra.gmra.mrb[12].mxu1 %vm720_vm2, %v8177_v25 }
 0xcd0   : > { %6025 = vmatprep.mubr.msk.f32.mxu1 %vm7219_vm1, %v7220_v0 }
 0xda2   : > { %v2463_v39 = vpop.f32.mrb[12].mxu1 }
 0xda3   : > { %v2464_v53 = vadd.f32 %v2463_v39, %v7892_v12  ;;  %v5994_v24 = vpop.f32.mrb[13].mxu1 }
 0xda5   : > { %v2474_v13 = vmul.f32 %v2473_v54, %v2464_v53 }
 0xda7   : > { %v2475_v52 = vadd.f32 %v2474_v13, %v2472_v56 }
 0xda9   : > { %v2483_v51 = vsub.f32 %v2482_v9, %v2475_v52 }
 0xdab   : > { %v2484_v45 = vmul.f32 %v8191_v4, %v2483_v51 }
 0xdad   : > { %v8251_v33 = vadd.f32 %v2484_v45, %v2475_v52 }
 0xdaf   : > { %5995 = vmatprep.subr.mxu0 %v8251_v33 }
 0xdb0   : > { %5996 = vmatpush3.msra.mxu0 %v8251_v33 }
 0xdb1   : > { %5998 = vmatmul.mubr.msk.f32.vlgmr.msra.gmra.mrb[56].mxu0 %vm529_vm0, %v8011_v58 }
 0xdb2   : > { %6000 = vmatprep.mubr.msk.f32.mxu0 %vm529_vm0, %v8018_v34 }
 0xdb5   : > { %6001 = vmatmul.mubr.msk.f32.gmra.mrb[58].mxu0 %vm529_vm0, %v8025_v41 }
 0xdb6   : > { %6003 = vmatprep.mubr.msk.f32.mxu0 %vm529_vm0, %v8032_v63 }
 0xdb9   : > { %6004 = vmatmul.mubr.msk.f32.gmra.mrb[60].mxu0 %vm529_vm0, %v8039_v48 }
 0xdba   : > { %6006 = vmatprep.mubr.msk.f32.mxu0 %vm529_vm0, %v8046_v10 }
 0xdbd   : > { %6007 = vmatmul.mubr.msk.f32.gmra.mrb[62].mxu0 %vm529_vm0, %v8053_v2 }
 0xdbe   : > { %6030 = vmatprep.mubr.msk.f32.mxu0 %vm529_vm0, %v8060_v5 }
 0xe84   : > { %v5999_v58 = vpop.f32.mrb[56].mxu0 }
 0xe85   : > { %v2558_v34 = vadd.f32 %v5999_v58, %v8214_v42  ;;  %v2552_v61 = vpop.f32.mrb[57].mxu0 }
 0xe86   : > { %v2553_v41 = vadd.f32 %v2552_v61, %v8216_v60 }
 0xe87   : > { %v5279_v46 = vmul.f32 -1.442695, %v2558_v34 }
 0xe88   : > { %v5278_v63 = vmul.f32 -1.442695, %v2553_v41  ;;  %v6002_v3 = vpop.f32.mrb[58].mxu0 }
 0xe89   : > { %6774 = vpow2.f32 %v5279_v46  ;;  %v2568_v48 = vadd.f32 %v6002_v3, %v8218_v44  ;;  %v2562_v19 = vpop.f32.mrb[59].mxu0  ;;  %v5291_v46 = vld [vmem:[%s7412_s23 + $0x38] sm:$0xff] }
 0xe8a   : > { %6776 = vpow2.f32 %v5278_v63  ;;  %v2563_v10 = vadd.f32 %v2562_v19, %v8220_v29  ;;  %v2730_v63 = vstv %s5290_s21  ;;  %s5311_s21 = sld [smem:[#allocation2 + $0x14]] }
 0xe8b   : > { %v5281_v2 = vmul.f32 -1.442695, %v2568_v48 }
 0xe8c   : > { %v5280_v11 = vmul.f32 -1.442695, %v2563_v10  ;;  %v6005_v49 = vpop.f32.mrb[60].mxu0 }
 0xe8d   : > { %6778 = vpow2.f32 %v5281_v2  ;;  %v2578_v5 = vadd.f32 %v6005_v49, %v8225_v17  ;;  %v2572_v42 = vpop.f32.mrb[61].mxu0  ;;  %v2723_v2 = vstv %s5288_s11  ;;  %s5335_s11 = sld [smem:[#allocation2 + $0x44]] }
 0xe8e   : > { %6780 = vpow2.f32 %v5280_v11  ;;  %v2573_v60 = vadd.f32 %v2572_v42, %v8228_v31 }
 0xe8f   : > { %v5283_v8 = vmul.f32 -1.442695, %v2578_v5 }
 0xe90   : > { %v5282_v26 = vmul.f32 -1.442695, %v2573_v60  ;;  %v6008_v28 = vpop.f32.mrb[62].mxu0 }
 0xe91   : > { %6782 = vpow2.f32 %v5283_v8  ;;  %v2588_v44 = vadd.f32 %v6008_v28, %v8232_v37  ;;  %v2582_v36 = vpop.f32.mrb[63].mxu0 }
 0xe92   : > { %6784 = vpow2.f32 %v5282_v26  ;;  %v2583_v29 = vadd.f32 %v2582_v36, %v8234_v15  ;;  %v8299_v36 = vld [vmem:[%s8826_s5 + $0x8] sm:$0xff] }
 0xe93   : > { %v6775_v47 = vpop.eup %6774  ;;  %v5285_v22 = vmul.f32 -1.442695, %v2588_v44 }
 0xe94   : > { %v6777_v32 = vpop.eup %6776  ;;  %v2616_v38 = vadd.f32 1.0, %v6775_v47  ;;  %v5284_v7 = vmul.f32 -1.442695, %v2583_v29  ;;  %v8320_v47 = vld [vmem:[%s8826_s5 + $0x20] sm:$0xff] }
 0xe95   : > { %v2615_v17 = vadd.f32 1.0, %v6777_v32  ;;  %6786 = vpow2.f32 %v5285_v22  ;;  %v8327_v22 = vld [vmem:[%s8826_s5 + $0x28] sm:$0xff]  ;;  %v8334_v32 = vld [vmem:[%s8826_s5 + $0x30] sm:$0xff] }
 0xe96   : > { %6788 = vrcp.f32 %v2616_v38  ;;  %v8341_v38 = vld [vmem:[%s8826_s5 + $0x38] sm:$0xff] }
 0xe97   : > { %v6779_v59 = vpop.eup %6778  ;;  %6790 = vrcp.f32 %v2615_v17  ;;  %v8352_v17 = vpop.permute.xlu0 %2761 }
 0xe98   : > { %v6781_v31 = vpop.eup %6780  ;;  %v2618_v40 = vadd.f32 1.0, %v6779_v59  ;;  %6792 = vpow2.f32 %v5284_v7  ;;  %v8348_v7 = vld [vmem:[%s8826_s5] sm:$0xff]  ;;  %v8354_v59 = vpop.permute.xlu1 %2756 }
 0xe99   : > { %v2617_v6 = vadd.f32 1.0, %v6781_v31 }
 0xe9a   : > { %6794 = vrcp.f32 %v2618_v40 }
 0xe9b   : > { %v6783_v37 = vpop.eup %6782  ;;  %6796 = vrcp.f32 %v2617_v6  ;;  %v8356_v31 = vpop.permute.xlu0 %2771 }
 0xe9c   : > { %v6785_v35 = vpop.eup %6784  ;;  %v2620_v18 = vadd.f32 1.0, %v6783_v37  ;;  %v8358_v6 = vpop.permute.xlu1 %2766 }
 0xe9d   : > { %v2619_v15 = vadd.f32 1.0, %v6785_v35 }
 0xe9e   : > { %6798 = vrcp.f32 %v2620_v18 }
 0xe9f   : > { %v6787_v55 = vpop.eup %6786  ;;  %6800 = vrcp.f32 %v2619_v15 }
 0xea0   : > { %v6789_v21 = vpop.eup %6788  ;;  %v2622_v27 = vadd.f32 1.0, %v6787_v55 }
 0xea1   : > { %v6791_v23 = vpop.eup %6790  ;;  %v2640_v30 = vmul.f32 %v6789_v21, %v2558_v34 }
 0xea2   : > { %v6793_v14 = vpop.eup %6792  ;;  %v2639_v62 = vmul.f32 %v6791_v23, %v2553_v41  ;;  %6802 = vrcp.f32 %v2622_v27  ;;  %v2726_v41 = vstv %s5289_s18  ;;  %s5310_s18 = sld [smem:[#allocation2 + $0xc]] }
 0xea3   : > { %v2621_v57 = vadd.f32 1.0, %v6793_v14  ;;  %v2727_v3 = vmul.f32 %v8185_v20, %v2726_v41 }
 0xea4   : > { %v6795_v50 = vpop.eup %6794  ;;  %v6377_v1 = vpack.c.bf16 %v2640_v30, %v2639_v62  ;;  %v8363_v30 = vpop.permute.xlu0 %2781 }
 0xea5   : > { %v6797_v39 = vpop.eup %6796  ;;  %v2642_v43 = vmul.f32 %v6795_v50, %v2568_v48  ;;  %6804 = vrcp.f32 %v2621_v57  ;;  %v2731_v48 = vmul.f32 %v5291_v46, %v2730_v63  ;;  %v8366_v62 = vpop.permute.xlu1 %2776 }
 0xea6   : > { %v2641_v54 = vmul.f32 %v6797_v39, %v2563_v10  ;;  %6378 = vmatpush3.bf16.msra.mxu1 %v6377_v1  ;;  %v2721_v10 = vstv %s5287_s24  ;;  %s5334_s24 = sld [smem:[#allocation2 + $0x3c]] }
 0xea7   : > { %6379 = vmatprep.subr.bf16.mxu1 %v7218_v16 }
 0xea8   : > { %v6799_v53 = vpop.eup %6798  ;;  %v6380_v24 = vpack.c.bf16 %v2642_v43, %v2641_v54 }
 0xea9   : > { %v6801_v56 = vpop.eup %6800  ;;  %v2644_v13 = vmul.f32 %v6799_v53, %v2578_v5  ;;  %v2722_v5 = vmul.f32 %v2721_v10, %v8251_v33  ;;  %v8306_v33 = vld [vmem:[%s8826_s5 + $0x10] sm:$0xff] }
 0xeaa   : > { %v2643_v9 = vmul.f32 %v6801_v56, %v2573_v60  ;;  %6381 = vmatpush3.bf16.msra.mxu1 %v6380_v24  ;;  %v2732_v60 = vadd.f32 %v2731_v48, %v2727_v3  ;;  %v8370_v24 = vpop.permute.xlu0 %2791 }
 0xeab   : > { %6382 = vmatprep.subr.bf16.mxu1 %v7218_v16 }
 0xeac   : > { %v6803_v52 = vpop.eup %6802  ;;  %v6383_v51 = vpack.c.bf16 %v2644_v13, %v2643_v9  ;;  %v8372_v9 = vpop.permute.xlu1 %2786 }
 0xead   : > { %v2646_v45 = vmul.f32 %v6803_v52, %v2588_v44 }
 0xeae   : > { %6384 = vmatpush3.bf16.msra.mxu1 %v6383_v51 }
 0xeaf   : > { %v6805_v58 = vpop.eup %6804  ;;  %6385 = vmatprep.subr.bf16.mxu1 %v7218_v16 }
 0xeb0   : > { %v2645_v34 = vmul.f32 %v6805_v58, %v2583_v29  ;;  %v8313_v29 = vld [vmem:[%s8826_s5 + $0x18] sm:$0xff] }
 0xeb2   : > { %v6386_v61 = vpack.c.bf16 %v2646_v45, %v2645_v34 }
 0xeb4   : > { %6387 = vmatpush3.bf16.msra.mxu1 %v6386_v61 }
 0xeb5   : > { %6388 = vmatprep.subr.bf16.mxu1 %v7218_v16 }
 0xeb7   : > { %6026 = vmatmul.mubr.msk.f32.vlgmr.msra.gmra.mrb[14].mxu1 %vm720_vm2, %v8177_v25 }
 0xeb8   : > { %6058 = vmatprep.mubr.msk.f32.mxu1 %vm7219_vm1, %v7220_v0 }
 0xf8a   : > { %v2713_v19 = vpop.f32.mrb[14].mxu1 }
 0xf8b   : > { %v2714_v11 = vadd.f32 %v2713_v19, %v7892_v12  ;;  %v6027_v49 = vpop.f32.mrb[15].mxu1 }
 0xf8d   : > { %v2724_v42 = vmul.f32 %v2723_v2, %v2714_v11 }
 0xf8f   : > { %v2725_v8 = vadd.f32 %v2724_v42, %v2722_v5 }
 0xf91   : > { %v2733_v26 = vsub.f32 %v2732_v60, %v2725_v8 }
 0xf93   : > { %v2734_v28 = vmul.f32 %v8191_v4, %v2733_v26 }
 0xf95   : > { %v8292_v44 = vadd.f32 %v2734_v28, %v2725_v8 }
 0xf97   : > { %6028 = vmatprep.subr.mxu0 %v8292_v44 }
 0xf98   : > { %6029 = vmatpush3.msra.mxu0 %v8292_v44 }
 0xf99   : > { %6031 = vmatmul.mubr.msk.f32.vlgmr.msra.gmra.mrb[64].mxu0 %vm529_vm0, %v8299_v36 }
 0xf9a   : > { %6033 = vmatprep.mubr.msk.f32.mxu0 %vm529_vm0, %v8306_v33 }
 0xf9d   : > { %6034 = vmatmul.mubr.msk.f32.gmra.mrb[66].mxu0 %vm529_vm0, %v8313_v29 }
 0xf9e   : > { %6036 = vmatprep.mubr.msk.f32.mxu0 %vm529_vm0, %v8320_v47 }
 0xfa1   : > { %6037 = vmatmul.mubr.msk.f32.gmra.mrb[68].mxu0 %vm529_vm0, %v8327_v22 }
 0xfa2   : > { %6039 = vmatprep.mubr.msk.f32.mxu0 %vm529_vm0, %v8334_v32 }
 0xfa5   : > { %6040 = vmatmul.mubr.msk.f32.gmra.mrb[70].mxu0 %vm529_vm0, %v8341_v38 }
 0xfa6   : > { %6063 = vmatprep.mubr.msk.f32.mxu0 %vm529_vm0, %v8348_v7 }
0x106c   : > { %v6032_v40 = vpop.f32.mrb[64].mxu0 }
0x106d   : > { %v2866_v37 = vadd.f32 %v6032_v40, %v8352_v17  ;;  %v2860_v35 = vpop.f32.mrb[65].mxu0 }
0x106e   : > { %v2861_v18 = vadd.f32 %v2860_v35, %v8354_v59 }
0x106f   : > { %v5302_v15 = vmul.f32 -1.442695, %v2866_v37 }
0x1070   : > { %v5301_v55 = vmul.f32 -1.442695, %v2861_v18  ;;  %v6035_v21 = vpop.f32.mrb[66].mxu0 }
0x1071   : > { %6806 = vpow2.f32 %v5302_v15  ;;  %v2876_v27 = vadd.f32 %v6035_v21, %v8356_v31  ;;  %v2870_v23 = vpop.f32.mrb[67].mxu0 }
0x1072   : > { %6808 = vpow2.f32 %v5301_v55  ;;  %v2871_v14 = vadd.f32 %v2870_v23, %v8358_v6 }
0x1073   : > { %v5304_v57 = vmul.f32 -1.442695, %v2876_v27 }
0x1074   : > { %v5303_v50 = vmul.f32 -1.442695, %v2871_v14  ;;  %v6038_v1 = vpop.f32.mrb[68].mxu0 }
0x1075   : > { %6810 = vpow2.f32 %v5304_v57  ;;  %v2886_v39 = vadd.f32 %v6038_v1, %v8363_v30  ;;  %v2880_v43 = vpop.f32.mrb[69].mxu0 }
0x1076   : > { %6812 = vpow2.f32 %v5303_v50  ;;  %v2881_v54 = vadd.f32 %v2880_v43, %v8366_v62 }
0x1077   : > { %v5306_v53 = vmul.f32 -1.442695, %v2886_v39 }
0x1078   : > { %v5305_v56 = vmul.f32 -1.442695, %v2881_v54  ;;  %v6041_v13 = vpop.f32.mrb[70].mxu0 }
0x1079   : > { %6814 = vpow2.f32 %v5306_v53  ;;  %v2896_v52 = vadd.f32 %v6041_v13, %v8370_v24  ;;  %v2890_v51 = vpop.f32.mrb[71].mxu0 }
0x107a   : > { %6816 = vpow2.f32 %v5305_v56  ;;  %v2891_v45 = vadd.f32 %v2890_v51, %v8372_v9 }
0x107b   : > { %v6807_v58 = vpop.eup %6806  ;;  %v5308_v34 = vmul.f32 -1.442695, %v2896_v52 }
0x107c   : > { %v6809_v61 = vpop.eup %6808  ;;  %v2924_v41 = vadd.f32 1.0, %v6807_v58  ;;  %v5307_v46 = vmul.f32 -1.442695, %v2891_v45 }
0x107d   : > { %v2923_v63 = vadd.f32 1.0, %v6809_v61  ;;  %6818 = vpow2.f32 %v5308_v34 }
0x107e   : > { %6820 = vrcp.f32 %v2924_v41  ;;  %v3029_v41 = vstv %s5310_s18  ;;  %s5356_s18 = sld [smem:[#allocation2 + $0x15]] }
0x107f   : > { %v6811_v3 = vpop.eup %6810  ;;  %6822 = vrcp.f32 %v2923_v63 }
0x1080   : > { %v6813_v48 = vpop.eup %6812  ;;  %v2926_v19 = vadd.f32 1.0, %v6811_v3  ;;  %6824 = vpow2.f32 %v5307_v46  ;;  %v3031_v46 = vstv %s5311_s21  ;;  %s5379_s21 = sld [smem:[#allocation2 + $0x3d]] }
0x1081   : > { %v2925_v10 = vadd.f32 1.0, %v6813_v48  ;;  %v3030_v48 = vmul.f32 %v3029_v41, %v8292_v44 }
0x1082   : > { %6826 = vrcp.f32 %v2926_v19 }
0x1083   : > { %v6815_v2 = vpop.eup %6814  ;;  %6828 = vrcp.f32 %v2925_v10 }
0x1084   : > { %v6817_v11 = vpop.eup %6816  ;;  %v2928_v49 = vadd.f32 1.0, %v6815_v2 }
0x1085   : > { %v2927_v5 = vadd.f32 1.0, %v6817_v11 }
0x1086   : > { %6830 = vrcp.f32 %v2928_v49 }
0x1087   : > { %v6819_v42 = vpop.eup %6818  ;;  %6832 = vrcp.f32 %v2927_v5 }
0x1088   : > { %v6821_v60 = vpop.eup %6820  ;;  %v2930_v8 = vadd.f32 1.0, %v6819_v42 }
0x1089   : > { %v6823_v26 = vpop.eup %6822  ;;  %v2948_v28 = vmul.f32 %v6821_v60, %v2866_v37 }
0x108a   : > { %v6825_v40 = vpop.eup %6824  ;;  %v2947_v35 = vmul.f32 %v6823_v26, %v2861_v18  ;;  %6834 = vrcp.f32 %v2930_v8 }
0x108b   : > { %v2929_v15 = vadd.f32 1.0, %v6825_v40 }
0x108c   : > { %v6827_v55 = vpop.eup %6826  ;;  %v6389_v21 = vpack.c.bf16 %v2948_v28, %v2947_v35 }
0x108d   : > { %v6829_v23 = vpop.eup %6828  ;;  %v2950_v57 = vmul.f32 %v6827_v55, %v2876_v27  ;;  %6836 = vrcp.f32 %v2929_v15 }
0x108e   : > { %v2949_v50 = vmul.f32 %v6829_v23, %v2871_v14  ;;  %6390 = vmatpush3.bf16.msra.mxu1 %v6389_v21 }
0x108f   : > { %6391 = vmatprep.subr.bf16.mxu1 %v7218_v16 }
0x1090   : > { %v6831_v1 = vpop.eup %6830  ;;  %v6392_v43 = vpack.c.bf16 %v2950_v57, %v2949_v50 }
0x1091   : > { %v6833_v53 = vpop.eup %6832  ;;  %v2952_v56 = vmul.f32 %v6831_v1, %v2886_v39  ;;  %v3034_v39 = vstv %s5312_s19  ;;  %s5358_s19 = sld [smem:[#allocation2 + $0x25]] }
0x1092   : > { %v2951_v13 = vmul.f32 %v6833_v53, %v2881_v54  ;;  %6393 = vmatpush3.bf16.msra.mxu1 %v6392_v43  ;;  %v5314_v54 = vld [vmem:[%s7412_s23 + $0x40] sm:$0xff]  ;;  %v3035_v34 = vmul.f32 %v8185_v20, %v3034_v39 }
0x1093   : > { %6394 = vmatprep.subr.bf16.mxu1 %v7218_v16 }
0x1094   : > { %v6835_v37 = vpop.eup %6834  ;;  %v6395_v18 = vpack.c.bf16 %v2952_v56, %v2951_v13 }
0x1095   : > { %v2954_v51 = vmul.f32 %v6835_v37, %v2896_v52  ;;  %v3038_v52 = vstv %s5313_s28  ;;  %s5355_s28 = sld [smem:[#allocation2 + $0xd]] }
0x1096   : > { %6396 = vmatpush3.bf16.msra.mxu1 %v6395_v18 }
0x1097   : > { %v6837_v58 = vpop.eup %6836  ;;  %6397 = vmatprep.subr.bf16.mxu1 %v7218_v16 }
0x1098   : > { %v2953_v27 = vmul.f32 %v6837_v58, %v2891_v45  ;;  %v3039_v45 = vmul.f32 %v5314_v54, %v3038_v52 }
0x109a   : > { %v6398_v14 = vpack.c.bf16 %v2954_v51, %v2953_v27  ;;  %v3040_v10 = vadd.f32 %v3039_v45, %v3035_v34 }
0x109c   : > { %6399 = vmatpush3.bf16.msra.mxu1 %v6398_v14 }
0x109d   : > { %6400 = vmatprep.subr.bf16.mxu1 %v7218_v16 }
0x109f   : > { %6059 = vmatmul.mubr.msk.f32.vlgmr.msra.gmra.mrb[16].mxu1 %vm720_vm2, %v8177_v25 }
0x10a0   : > { %6091 = vmatprep.mubr.msk.f32.mxu1 %vm7219_vm1, %v7220_v0 }
0x1172   : > { %v3021_v61 = vpop.f32.mrb[16].mxu1 }
0x1173   : > { %v3022_v63 = vadd.f32 %v3021_v61, %v7892_v12  ;;  %v6060_v3 = vpop.f32.mrb[17].mxu1 }
0x1175   : > { %v3032_v19 = vmul.f32 %v3031_v46, %v3022_v63 }
0x1177   : > { %v3033_v2 = vadd.f32 %v3032_v19, %v3030_v48 }
0x1179   : > { %v3041_v11 = vsub.f32 %v3040_v10, %v3033_v2 }
0x117b   : > { %v3042_v49 = vmul.f32 %v8191_v4, %v3041_v11 }
0x117d   : > { %v8389_v5 = vadd.f32 %v3042_v49, %v3033_v2 }
0x117f   : > { %6061 = vmatprep.subr.mxu0 %v8389_v5 }
0x1180   : > { %6062 = vmatpush3.msra.mxu0 %v8389_v5 }
0x1181   : > { %6064 = vmatmul.mubr.msk.f32.vlgmr.msra.gmra.mrb[72].mxu0 %vm529_vm0, %v8299_v36 }
0x1182   : > { %6066 = vmatprep.mubr.msk.f32.mxu0 %vm529_vm0, %v8306_v33 }
0x1185   : > { %6067 = vmatmul.mubr.msk.f32.gmra.mrb[74].mxu0 %vm529_vm0, %v8313_v29 }
0x1186   : > { %6069 = vmatprep.mubr.msk.f32.mxu0 %vm529_vm0, %v8320_v47 }
0x1189   : > { %6070 = vmatmul.mubr.msk.f32.gmra.mrb[76].mxu0 %vm529_vm0, %v8327_v22 }
0x118a   : > { %6072 = vmatprep.mubr.msk.f32.mxu0 %vm529_vm0, %v8334_v32 }
0x118d   : > { %6073 = vmatmul.mubr.msk.f32.gmra.mrb[78].mxu0 %vm529_vm0, %v8341_v38 }
0x118e   : > { %6096 = vmatprep.mubr.msk.f32.mxu0 %vm529_vm0, %v8348_v7 }
0x1254   : > { %v6065_v44 = vpop.f32.mrb[72].mxu0 }
0x1255   : > { %v3116_v42 = vadd.f32 %v6065_v44, %v8352_v17  ;;  %v3110_v60 = vpop.f32.mrb[73].mxu0 }
0x1256   : > { %v3111_v8 = vadd.f32 %v3110_v60, %v8354_v59 }
0x1257   : > { %v5324_v26 = vmul.f32 -1.442695, %v3116_v42 }
0x1258   : > { %v5323_v28 = vmul.f32 -1.442695, %v3111_v8  ;;  %v6068_v40 = vpop.f32.mrb[74].mxu0 }
0x1259   : > { %6838 = vpow2.f32 %v5324_v26  ;;  %v3126_v35 = vadd.f32 %v6068_v40, %v8356_v31  ;;  %v3120_v15 = vpop.f32.mrb[75].mxu0 }
0x125a   : > { %6840 = vpow2.f32 %v5323_v28  ;;  %v3121_v55 = vadd.f32 %v3120_v15, %v8358_v6 }
0x125b   : > { %v5326_v21 = vmul.f32 -1.442695, %v3126_v35 }
0x125c   : > { %v5325_v23 = vmul.f32 -1.442695, %v3121_v55  ;;  %v6071_v57 = vpop.f32.mrb[76].mxu0 }
0x125d   : > { %6842 = vpow2.f32 %v5326_v21  ;;  %v3136_v50 = vadd.f32 %v6071_v57, %v8363_v30  ;;  %v3130_v17 = vpop.f32.mrb[77].mxu0  ;;  %v5336_v57 = vld [vmem:[%s7412_s23 + $0x48] sm:$0xff] }
0x125e   : > { %6844 = vpow2.f32 %v5325_v23  ;;  %v3131_v59 = vadd.f32 %v3130_v17, %v8366_v62  ;;  %v3284_v23 = vstv %s5334_s24  ;;  %s5380_s24 = sld [smem:[#allocation2 + $0x45]] }
0x125f   : > { %v5328_v1 = vmul.f32 -1.442695, %v3136_v50  ;;  %v3285_v17 = vmul.f32 %v8185_v20, %v3284_v23  ;;  %v8450_v20 = vpop.permute.xlu0 %3319 }
0x1260   : > { %v5327_v43 = vmul.f32 -1.442695, %v3131_v59  ;;  %v6074_v53 = vpop.f32.mrb[78].mxu0 }
0x1261   : > { %6846 = vpow2.f32 %v5328_v1  ;;  %v3146_v31 = vadd.f32 %v6074_v53, %v8370_v24  ;;  %v3140_v56 = vpop.f32.mrb[79].mxu0  ;;  %v3281_v53 = vstv %s5333_s15  ;;  %s5402_s15 = sld [smem:[#allocation2 + $0x1e]] }
0x1262   : > { %6848 = vpow2.f32 %v5327_v43  ;;  %v3141_v6 = vadd.f32 %v3140_v56, %v8372_v9  ;;  %v3279_v43 = vstv %s5332_s22  ;;  %s5378_s22 = sld [smem:[#allocation2 + $0x35]] }
0x1263   : > { %v6839_v13 = vpop.eup %6838  ;;  %v5330_v37 = vmul.f32 -1.442695, %v3146_v31 }
0x1264   : > { %v6841_v18 = vpop.eup %6840  ;;  %v3174_v51 = vadd.f32 1.0, %v6839_v13  ;;  %v5329_v58 = vmul.f32 -1.442695, %v3141_v6 }
0x1265   : > { %v3173_v30 = vadd.f32 1.0, %v6841_v18  ;;  %6850 = vpow2.f32 %v5330_v37 }
0x1266   : > { %6852 = vrcp.f32 %v3174_v51 }
0x1267   : > { %v6843_v27 = vpop.eup %6842  ;;  %6854 = vrcp.f32 %v3173_v30 }
0x1268   : > { %v6845_v62 = vpop.eup %6844  ;;  %v3176_v14 = vadd.f32 1.0, %v6843_v27  ;;  %6856 = vpow2.f32 %v5329_v58 }
0x1269   : > { %v3175_v39 = vadd.f32 1.0, %v6845_v62 }
0x126a   : > { %6858 = vrcp.f32 %v3176_v14 }
0x126b   : > { %v6847_v24 = vpop.eup %6846  ;;  %6860 = vrcp.f32 %v3175_v39 }
0x126c   : > { %v6849_v54 = vpop.eup %6848  ;;  %v3178_v52 = vadd.f32 1.0, %v6847_v24 }
0x126d   : > { %v3177_v9 = vadd.f32 1.0, %v6849_v54 }
0x126e   : > { %6862 = vrcp.f32 %v3178_v52 }
0x126f   : > { %v6851_v34 = vpop.eup %6850  ;;  %6864 = vrcp.f32 %v3177_v9 }
0x1270   : > { %v6853_v45 = vpop.eup %6852  ;;  %v3180_v61 = vadd.f32 1.0, %v6851_v34 }
0x1271   : > { %v6855_v41 = vpop.eup %6854  ;;  %v3198_v46 = vmul.f32 %v6853_v45, %v3116_v42 }
0x1272   : > { %v6857_v63 = vpop.eup %6856  ;;  %v3197_v3 = vmul.f32 %v6855_v41, %v3111_v8  ;;  %6866 = vrcp.f32 %v3180_v61 }
0x1273   : > { %v3179_v48 = vadd.f32 1.0, %v6857_v63 }
0x1274   : > { %v6859_v19 = vpop.eup %6858  ;;  %v6401_v10 = vpack.c.bf16 %v3198_v46, %v3197_v3 }
0x1275   : > { %v6861_v2 = vpop.eup %6860  ;;  %v3200_v11 = vmul.f32 %v6859_v19, %v3126_v35  ;;  %6868 = vrcp.f32 %v3179_v48 }
0x1276   : > { %v3199_v49 = vmul.f32 %v6861_v2, %v3121_v55  ;;  %6402 = vmatpush3.bf16.msra.mxu1 %v6401_v10 }
0x1277   : > { %6403 = vmatprep.subr.bf16.mxu1 %v7218_v16 }
0x1278   : > { %v6863_v44 = vpop.eup %6862  ;;  %v6404_v60 = vpack.c.bf16 %v3200_v11, %v3199_v49 }
0x1279   : > { %v6865_v26 = vpop.eup %6864  ;;  %v3202_v28 = vmul.f32 %v6863_v44, %v3136_v50  ;;  %v3288_v50 = vstv %s5335_s11  ;;  %s5377_s11 = sld [smem:[#allocation2 + $0x2d]] }
0x127a   : > { %v3201_v40 = vmul.f32 %v6865_v26, %v3131_v59  ;;  %6405 = vmatpush3.bf16.msra.mxu1 %v6404_v60  ;;  %v3289_v59 = vmul.f32 %v5336_v57, %v3288_v50 }
0x127b   : > { %6406 = vmatprep.subr.bf16.mxu1 %v7218_v16 }
0x127c   : > { %v6867_v42 = vpop.eup %6866  ;;  %v6407_v8 = vpack.c.bf16 %v3202_v28, %v3201_v40  ;;  %v3290_v13 = vadd.f32 %v3289_v59, %v3285_v17 }
0x127d   : > { %v3204_v15 = vmul.f32 %v6867_v42, %v3146_v31 }
0x127e   : > { %6408 = vmatpush3.bf16.msra.mxu1 %v6407_v8 }
0x127f   : > { %v6869_v21 = vpop.eup %6868  ;;  %6409 = vmatprep.subr.bf16.mxu1 %v7218_v16 }
0x1280   : > { %v3203_v35 = vmul.f32 %v6869_v21, %v3141_v6 }
0x1282   : > { %v6410_v55 = vpack.c.bf16 %v3204_v15, %v3203_v35 }
0x1284   : > { %6411 = vmatpush3.bf16.msra.mxu1 %v6410_v55 }
0x1285   : > { %6412 = vmatprep.subr.bf16.mxu1 %v7218_v16 }
0x1287   : > { %6092 = vmatmul.mubr.msk.f32.vlgmr.msra.gmra.mrb[18].mxu1 %vm720_vm2, %v8177_v25  ;;  %v3280_v25 = vmul.f32 %v3279_v43, %v8389_v5  ;;  %v8454_v5 = vpop.permute.xlu0 %3329 }
0x1288   : > { %6124 = vmatprep.mubr.msk.f32.mxu1 %vm7219_vm1, %v7220_v0 }
0x128b   : > { %v8461_v45 = vpop.permute.xlu0 %3339 }
0x128f   : > { %v8468_v11 = vpop.permute.xlu0 %3349 }
0x135a   : > { %v3271_v1 = vpop.f32.mrb[18].mxu1 }
0x135b   : > { %v3272_v31 = vadd.f32 %v3271_v1, %v7892_v12  ;;  %v6093_v56 = vpop.f32.mrb[19].mxu1 }
0x135d   : > { %v3282_v6 = vmul.f32 %v3281_v53, %v3272_v31 }
0x135f   : > { %v3283_v37 = vadd.f32 %v3282_v6, %v3280_v25 }
0x1361   : > { %v3291_v18 = vsub.f32 %v3290_v13, %v3283_v37 }
0x1363   : > { %v3292_v51 = vmul.f32 %v8191_v4, %v3291_v18  ;;  %v8452_v4 = vpop.permute.xlu1 %3314 }
0x1365   : > { %v8430_v58 = vadd.f32 %v3292_v51, %v3283_v37 }
0x1367   : > { %6094 = vmatprep.subr.mxu0 %v8430_v58  ;;  %v8456_v27 = vpop.permute.xlu1 %3324 }
0x1368   : > { %6095 = vmatpush3.msra.mxu0 %v8430_v58 }
0x1369   : > { %6097 = vmatmul.mubr.msk.f32.vlgmr.msra.gmra.mrb[80].mxu0 %vm529_vm0, %v8299_v36 }
0x136a   : > { %6099 = vmatprep.mubr.msk.f32.mxu0 %vm529_vm0, %v8306_v33 }
0x136b   : > { %v8464_v41 = vpop.permute.xlu1 %3334 }
0x136d   : > { %6100 = vmatmul.mubr.msk.f32.gmra.mrb[82].mxu0 %vm529_vm0, %v8313_v29 }
0x136e   : > { %6102 = vmatprep.mubr.msk.f32.mxu0 %vm529_vm0, %v8320_v47 }
0x136f   : > { %v8470_v60 = vpop.permute.xlu1 %3344 }
0x1371   : > { %6103 = vmatmul.mubr.msk.f32.gmra.mrb[84].mxu0 %vm529_vm0, %v8327_v22 }
0x1372   : > { %6105 = vmatprep.mubr.msk.f32.mxu0 %vm529_vm0, %v8334_v32 }
0x1375   : > { %6106 = vmatmul.mubr.msk.f32.gmra.mrb[86].mxu0 %vm529_vm0, %v8341_v38 }
0x1376   : > { %6129 = vmatprep.mubr.msk.f32.mxu0 %vm529_vm0, %v8348_v7 }
0x143c   : > { %v6098_v30 = vpop.f32.mrb[80].mxu0 }
0x143d   : > { %v3424_v62 = vadd.f32 %v6098_v30, %v8450_v20  ;;  %v3418_v14 = vpop.f32.mrb[81].mxu0 }
0x143e   : > { %v3419_v39 = vadd.f32 %v3418_v14, %v8452_v4 }
0x143f   : > { %v5347_v24 = vmul.f32 -1.442695, %v3424_v62 }
0x1440   : > { %v5346_v54 = vmul.f32 -1.442695, %v3419_v39  ;;  %v6101_v52 = vpop.f32.mrb[82].mxu0 }
0x1441   : > { %6870 = vpow2.f32 %v5347_v24  ;;  %v3434_v9 = vadd.f32 %v6101_v52, %v8454_v5  ;;  %v3428_v34 = vpop.f32.mrb[83].mxu0 }
0x1442   : > { %6872 = vpow2.f32 %v5346_v54  ;;  %v3429_v61 = vadd.f32 %v3428_v34, %v8456_v27 }
0x1443   : > { %v5349_v46 = vmul.f32 -1.442695, %v3434_v9 }
0x1444   : > { %v5348_v63 = vmul.f32 -1.442695, %v3429_v61  ;;  %v6104_v3 = vpop.f32.mrb[84].mxu0 }
0x1445   : > { %6874 = vpow2.f32 %v5349_v46  ;;  %v3444_v48 = vadd.f32 %v6104_v3, %v8461_v45  ;;  %v3438_v19 = vpop.f32.mrb[85].mxu0 }
0x1446   : > { %6876 = vpow2.f32 %v5348_v63  ;;  %v3439_v10 = vadd.f32 %v3438_v19, %v8464_v41 }
0x1447   : > { %v5351_v2 = vmul.f32 -1.442695, %v3444_v48 }
0x1448   : > { %v5350_v49 = vmul.f32 -1.442695, %v3439_v10  ;;  %v6107_v44 = vpop.f32.mrb[86].mxu0 }
0x1449   : > { %6878 = vpow2.f32 %v5351_v2  ;;  %v3454_v26 = vadd.f32 %v6107_v44, %v8468_v11  ;;  %v3448_v28 = vpop.f32.mrb[87].mxu0  ;;  %v5359_v44 = vld [vmem:[%s7412_s23 + $0x50] sm:$0xff] }
0x144a   : > { %6880 = vpow2.f32 %v5350_v49  ;;  %v3449_v40 = vadd.f32 %v3448_v28, %v8470_v60  ;;  %v8489_v28 = vld [vmem:[%s7885_s29] sm:$0xff] }
0x144b   : > { %v6871_v42 = vpop.eup %6870  ;;  %v5353_v8 = vmul.f32 -1.442695, %v3454_v26 }
0x144c   : > { %v6873_v15 = vpop.eup %6872  ;;  %v3482_v21 = vadd.f32 1.0, %v6871_v42  ;;  %v5352_v35 = vmul.f32 -1.442695, %v3449_v40 }
0x144d   : > { %v3481_v55 = vadd.f32 1.0, %v6873_v15  ;;  %6882 = vpow2.f32 %v5353_v8  ;;  %v3587_v15 = vstv %s5355_s28  ;;  %s5446_s28 = sld [smem:[#allocation2 + $0x17]] }
0x144e   : > { %6884 = vrcp.f32 %v3482_v21  ;;  %v3589_v21 = vstv %s5356_s18  ;;  %s4970_s18 = scalar_lea.sflag [#allocation4], %s7408_s20 }
0x144f   : > { %v6875_v23 = vpop.eup %6874  ;;  %6886 = vrcp.f32 %v3481_v55 }
0x1450   : > { %v6877_v57 = vpop.eup %6876  ;;  %v3484_v50 = vadd.f32 1.0, %v6875_v23  ;;  %6888 = vpow2.f32 %v5352_v35  ;;  %v3588_v23 = vmul.f32 %v3587_v15, %v8430_v58 }
0x1451   : > { %v3483_v17 = vadd.f32 1.0, %v6877_v57 }
0x1452   : > { %6890 = vrcp.f32 %v3484_v50 }
0x1453   : > { %v6879_v59 = vpop.eup %6878  ;;  %6892 = vrcp.f32 %v3483_v17 }
0x1454   : > { %v6881_v1 = vpop.eup %6880  ;;  %v3486_v43 = vadd.f32 1.0, %v6879_v59 }
0x1455   : > { %v3485_v53 = vadd.f32 1.0, %v6881_v1  ;;  %v8495_v1 = vld [vmem:[%s7900_s30] sm:$0xff] }
0x1456   : > { %6894 = vrcp.f32 %v3486_v43 }
0x1457   : > { %v6883_v31 = vpop.eup %6882  ;;  %6896 = vrcp.f32 %v3485_v53 }
0x1458   : > { %v6885_v56 = vpop.eup %6884  ;;  %v3488_v25 = vadd.f32 1.0, %v6883_v31 }
0x1459   : > { %v6887_v6 = vpop.eup %6886  ;;  %v3506_v13 = vmul.f32 %v6885_v56, %v3424_v62 }
0x145a   : > { %v6889_v37 = vpop.eup %6888  ;;  %v3505_v18 = vmul.f32 %v6887_v6, %v3419_v39  ;;  %6898 = vrcp.f32 %v3488_v25 }
0x145b   : > { %v3487_v51 = vadd.f32 1.0, %v6889_v37 }
0x145c   : > { %v6891_v30 = vpop.eup %6890  ;;  %v6413_v14 = vpack.c.bf16 %v3506_v13, %v3505_v18 }
0x145d   : > { %v6893_v24 = vpop.eup %6892  ;;  %v3508_v54 = vmul.f32 %v6891_v30, %v3434_v9  ;;  %6900 = vrcp.f32 %v3487_v51 }
0x145e   : > { %v3507_v52 = vmul.f32 %v6893_v24, %v3429_v61  ;;  %6414 = vmatpush3.bf16.msra.mxu1 %v6413_v14 }
0x145f   : > { %6415 = vmatprep.subr.bf16.mxu1 %v7218_v16 }
0x1460   : > { %v6895_v34 = vpop.eup %6894  ;;  %v6416_v46 = vpack.c.bf16 %v3508_v54, %v3507_v52 }
0x1461   : > { %v6897_v63 = vpop.eup %6896  ;;  %v3510_v3 = vmul.f32 %v6895_v34, %v3444_v48  ;;  %v8481_v48 = vld [vmem:[%s8829_s8] sm:$0xff] }
0x1462   : > { %v3509_v19 = vmul.f32 %v6897_v63, %v3439_v10  ;;  %6417 = vmatpush3.bf16.msra.mxu1 %v6416_v46  ;;  %v3592_v10 = vstv %s5357_s27  ;;  %s5401_s27 = sld [smem:[#allocation2 + $0x16]] }
0x1463   : > { %6418 = vmatprep.subr.bf16.mxu1 %v7218_v16 }
0x1464   : > { %v6899_v62 = vpop.eup %6898  ;;  %v6419_v39 = vpack.c.bf16 %v3510_v3, %v3509_v19 }
0x1465   : > { %v3512_v2 = vmul.f32 %v6899_v62, %v3454_v26  ;;  %v3596_v26 = vstv %s5358_s19  ;;  %s5445_s19 = sld [smem:[#allocation2 + $0xf]] }
0x1466   : > { %6420 = vmatpush3.bf16.msra.mxu1 %v6419_v39  ;;  %v3597_v42 = vmul.f32 %v5359_v44, %v3596_v26 }
0x1467   : > { %v6901_v49 = vpop.eup %6900  ;;  %6421 = vmatprep.subr.bf16.mxu1 %v7218_v16 }
0x1468   : > { %v3511_v9 = vmul.f32 %v6901_v49, %v3449_v40  ;;  %v3593_v40 = vmul.f32 %v8489_v28, %v3592_v10 }
0x146a   : > { %v6422_v61 = vpack.c.bf16 %v3512_v2, %v3511_v9  ;;  %v3598_v50 = vadd.f32 %v3597_v42, %v3593_v40 }
0x146c   : > { %6423 = vmatpush3.bf16.msra.mxu1 %v6422_v61 }
0x146d   : > { %6424 = vmatprep.subr.bf16.mxu1 %v7218_v16 }
0x146f   : > { %6125 = vmatmul.mubr.msk.f32.vlgmr.msra.gmra.mrb[20].mxu1 %vm720_vm2, %v8481_v48 }
0x1470   : > { %6157 = vmatprep.mubr.msk.f32.mxu1 %vm7219_vm1, %v7220_v0 }
0x1542   : > { %v3579_v8 = vpop.f32.mrb[20].mxu1 }
0x1543   : > { %v3580_v35 = vadd.f32 %v3579_v8, %v7892_v12  ;;  %v6126_v55 = vpop.f32.mrb[21].mxu1 }
0x1545   : > { %v3590_v57 = vmul.f32 %v3589_v21, %v3580_v35 }
0x1547   : > { %v3591_v17 = vadd.f32 %v3590_v57, %v3588_v23 }
0x1549   : > { %v3599_v59 = vsub.f32 %v3598_v50, %v3591_v17 }
0x154b   : > { %v3600_v43 = vmul.f32 %v8495_v1, %v3599_v59 }
0x154d   : > { %v8498_v53 = vadd.f32 %v3600_v43, %v3591_v17 }
0x154f   : > { %6127 = vmatprep.subr.mxu0 %v8498_v53 }
0x1550   : > { %6128 = vmatpush3.msra.mxu0 %v8498_v53 }
0x1551   : > { %6130 = vmatmul.mubr.msk.f32.vlgmr.msra.gmra.mrb[88].mxu0 %vm529_vm0, %v8299_v36 }
0x1552   : > { %6132 = vmatprep.mubr.msk.f32.mxu0 %vm529_vm0, %v8306_v33 }
0x1555   : > { %6133 = vmatmul.mubr.msk.f32.gmra.mrb[90].mxu0 %vm529_vm0, %v8313_v29 }
0x1556   : > { %6135 = vmatprep.mubr.msk.f32.mxu0 %vm529_vm0, %v8320_v47 }
0x1559   : > { %6136 = vmatmul.mubr.msk.f32.gmra.mrb[92].mxu0 %vm529_vm0, %v8327_v22 }
0x155a   : > { %6138 = vmatprep.mubr.msk.f32.mxu0 %vm529_vm0, %v8334_v32 }
0x155d   : > { %6139 = vmatmul.mubr.msk.f32.gmra.mrb[94].mxu0 %vm529_vm0, %v8341_v38 }
0x155e   : > { %6162 = vmatprep.mubr.msk.f32.mxu0 %vm529_vm0, %v8348_v7 }
0x1624   : > { %v6131_v58 = vpop.f32.mrb[88].mxu0 }
0x1625   : > { %v3674_v31 = vadd.f32 %v6131_v58, %v8450_v20  ;;  %v3668_v56 = vpop.f32.mrb[89].mxu0 }
0x1626   : > { %v3669_v25 = vadd.f32 %v3668_v56, %v8452_v4 }
0x1627   : > { %v5369_v6 = vmul.f32 -1.442695, %v3674_v31 }
0x1628   : > { %v5368_v13 = vmul.f32 -1.442695, %v3669_v25  ;;  %v6134_v37 = vpop.f32.mrb[90].mxu0 }
0x1629   : > { %6902 = vpow2.f32 %v5369_v6  ;;  %v3684_v18 = vadd.f32 %v6134_v37, %v8454_v5  ;;  %v3678_v51 = vpop.f32.mrb[91].mxu0 }
0x162a   : > { %6904 = vpow2.f32 %v5368_v13  ;;  %v3679_v30 = vadd.f32 %v3678_v51, %v8456_v27 }
0x162b   : > { %v5371_v14 = vmul.f32 -1.442695, %v3684_v18 }
0x162c   : > { %v5370_v24 = vmul.f32 -1.442695, %v3679_v30  ;;  %v6137_v54 = vpop.f32.mrb[92].mxu0 }
0x162d   : > { %6906 = vpow2.f32 %v5371_v14  ;;  %v3694_v52 = vadd.f32 %v6137_v54, %v8461_v45  ;;  %v3688_v20 = vpop.f32.mrb[93].mxu0  ;;  %v5381_v54 = vld [vmem:[%s7412_s23 + $0x58] sm:$0xff] }
0x162e   : > { %6908 = vpow2.f32 %v5370_v24  ;;  %v3689_v4 = vadd.f32 %v3688_v20, %v8464_v41  ;;  %v3842_v24 = vstv %s5379_s21 }
0x162f   : > { %v5373_v34 = vmul.f32 -1.442695, %v3694_v52  ;;  %v3843_v20 = vmul.f32 %v8489_v28, %v3842_v24 }
0x1630   : > { %v5372_v46 = vmul.f32 -1.442695, %v3689_v4  ;;  %v6140_v63 = vpop.f32.mrb[94].mxu0 }
0x1631   : > { %6910 = vpow2.f32 %v5373_v34  ;;  %v3704_v5 = vadd.f32 %v6140_v63, %v8468_v11  ;;  %v3698_v3 = vpop.f32.mrb[95].mxu0  ;;  %v3839_v63 = vstv %s5378_s22  ;;  %s5425_s22 = sld [smem:[#allocation2 + $0x46]] }
0x1632   : > { %6912 = vpow2.f32 %v5372_v46  ;;  %v3699_v27 = vadd.f32 %v3698_v3, %v8470_v60  ;;  %v3837_v46 = vstv %s5377_s11  ;;  %s5424_s11 = sld [smem:[#allocation2 + $0x3e]] }
0x1633   : > { %v6903_v19 = vpop.eup %6902  ;;  %v5375_v62 = vmul.f32 -1.442695, %v3704_v5 }
0x1634   : > { %v6905_v39 = vpop.eup %6904  ;;  %v3732_v2 = vadd.f32 1.0, %v6903_v19  ;;  %v5374_v49 = vmul.f32 -1.442695, %v3699_v27 }
0x1635   : > { %v3731_v45 = vadd.f32 1.0, %v6905_v39  ;;  %6914 = vpow2.f32 %v5375_v62 }
0x1636   : > { %6916 = vrcp.f32 %v3732_v2 }
0x1637   : > { %v6907_v9 = vpop.eup %6906  ;;  %6918 = vrcp.f32 %v3731_v45 }
0x1638   : > { %v6909_v41 = vpop.eup %6908  ;;  %v3734_v61 = vadd.f32 1.0, %v6907_v9  ;;  %6920 = vpow2.f32 %v5374_v49 }
0x1639   : > { %v3733_v10 = vadd.f32 1.0, %v6909_v41 }
0x163a   : > { %6922 = vrcp.f32 %v3734_v61 }
0x163b   : > { %v6911_v11 = vpop.eup %6910  ;;  %6924 = vrcp.f32 %v3733_v10 }
0x163c   : > { %v6913_v44 = vpop.eup %6912  ;;  %v3736_v26 = vadd.f32 1.0, %v6911_v11 }
0x163d   : > { %v3735_v60 = vadd.f32 1.0, %v6913_v44 }
0x163e   : > { %6926 = vrcp.f32 %v3736_v26 }
0x163f   : > { %v6915_v40 = vpop.eup %6914  ;;  %6928 = vrcp.f32 %v3735_v60 }
0x1640   : > { %v6917_v42 = vpop.eup %6916  ;;  %v3738_v8 = vadd.f32 1.0, %v6915_v40 }
0x1641   : > { %v6919_v15 = vpop.eup %6918  ;;  %v3756_v21 = vmul.f32 %v6917_v42, %v3674_v31 }
0x1642   : > { %v6921_v35 = vpop.eup %6920  ;;  %v3755_v55 = vmul.f32 %v6919_v15, %v3669_v25  ;;  %6930 = vrcp.f32 %v3738_v8 }
0x1643   : > { %v3737_v23 = vadd.f32 1.0, %v6921_v35 }
0x1644   : > { %v6923_v57 = vpop.eup %6922  ;;  %v6425_v50 = vpack.c.bf16 %v3756_v21, %v3755_v55 }
0x1645   : > { %v6925_v17 = vpop.eup %6924  ;;  %v3758_v59 = vmul.f32 %v6923_v57, %v3684_v18  ;;  %6932 = vrcp.f32 %v3737_v23 }
0x1646   : > { %v3757_v43 = vmul.f32 %v6925_v17, %v3679_v30  ;;  %6426 = vmatpush3.bf16.msra.mxu1 %v6425_v50 }
0x1647   : > { %6427 = vmatprep.subr.bf16.mxu1 %v7218_v16 }
0x1648   : > { %v6927_v58 = vpop.eup %6926  ;;  %v6428_v56 = vpack.c.bf16 %v3758_v59, %v3757_v43 }
0x1649   : > { %v6929_v6 = vpop.eup %6928  ;;  %v3760_v13 = vmul.f32 %v6927_v58, %v3694_v52  ;;  %v3846_v52 = vstv %s5380_s24  ;;  %s5469_s24 = sld [smem:[#allocation2 + $0x3f]] }
0x164a   : > { %v3759_v37 = vmul.f32 %v6929_v6, %v3689_v4  ;;  %6429 = vmatpush3.bf16.msra.mxu1 %v6428_v56  ;;  %v3847_v4 = vmul.f32 %v5381_v54, %v3846_v52 }
0x164b   : > { %6430 = vmatprep.subr.bf16.mxu1 %v7218_v16 }
0x164c   : > { %v6931_v31 = vpop.eup %6930  ;;  %v6431_v25 = vpack.c.bf16 %v3760_v13, %v3759_v37  ;;  %v3848_v62 = vadd.f32 %v3847_v4, %v3843_v20 }
0x164d   : > { %v3762_v51 = vmul.f32 %v6931_v31, %v3704_v5 }
0x164e   : > { %6432 = vmatpush3.bf16.msra.mxu1 %v6431_v25 }
0x164f   : > { %v6933_v14 = vpop.eup %6932  ;;  %6433 = vmatprep.subr.bf16.mxu1 %v7218_v16 }
0x1650   : > { %v3761_v18 = vmul.f32 %v6933_v14, %v3699_v27  ;;  %v3838_v27 = vmul.f32 %v3837_v46, %v8498_v53 }
0x1652   : > { %v6434_v30 = vpack.c.bf16 %v3762_v51, %v3761_v18 }
0x1654   : > { %6435 = vmatpush3.bf16.msra.mxu1 %v6434_v30 }
0x1655   : > { %6436 = vmatprep.subr.bf16.mxu1 %v7218_v16 }
0x1657   : > { %6158 = vmatmul.mubr.msk.f32.vlgmr.msra.gmra.mrb[22].mxu1 %vm720_vm2, %v8481_v48 }
0x1658   : > { %6190 = vmatprep.mubr.msk.f32.mxu1 %vm7219_vm1, %v7220_v0 }
0x172a   : > { %v3829_v34 = vpop.f32.mrb[22].mxu1 }
0x172b   : > { %v3830_v5 = vadd.f32 %v3829_v34, %v7892_v12  ;;  %v6159_v3 = vpop.f32.mrb[23].mxu1 }
0x172d   : > { %v3840_v19 = vmul.f32 %v3839_v63, %v3830_v5 }
0x172f   : > { %v3841_v39 = vadd.f32 %v3840_v19, %v3838_v27 }
0x1731   : > { %v3849_v2 = vsub.f32 %v3848_v62, %v3841_v39 }
0x1733   : > { %v3850_v49 = vmul.f32 %v8495_v1, %v3849_v2 }
0x1735   : > { %v8539_v45 = vadd.f32 %v3850_v49, %v3841_v39 }
0x1737   : > { %6160 = vmatprep.subr.mxu0 %v8539_v45 }
0x1738   : > { %6161 = vmatpush3.msra.mxu0 %v8539_v45 }
0x1739   : > { %6163 = vmatmul.mubr.msk.f32.vlgmr.msra.gmra.mrb[96].mxu0 %vm529_vm0, %v8299_v36  ;;  %v8559_v36 = vpop.permute.xlu0 %3877 }
0x173a   : > { %6165 = vmatprep.mubr.msk.f32.mxu0 %vm529_vm0, %v8306_v33  ;;  %v8561_v33 = vpop.permute.xlu1 %3872 }
0x173d   : > { %6166 = vmatmul.mubr.msk.f32.gmra.mrb[98].mxu0 %vm529_vm0, %v8313_v29  ;;  %v8563_v29 = vpop.permute.xlu0 %3887 }
0x173e   : > { %6168 = vmatprep.mubr.msk.f32.mxu0 %vm529_vm0, %v8320_v47  ;;  %v8565_v47 = vpop.permute.xlu1 %3882 }
0x1741   : > { %6169 = vmatmul.mubr.msk.f32.gmra.mrb[100].mxu0 %vm529_vm0, %v8327_v22  ;;  %v8570_v11 = vpop.permute.xlu0 %3897 }
0x1742   : > { %6171 = vmatprep.mubr.msk.f32.mxu0 %vm529_vm0, %v8334_v32  ;;  %v8573_v26 = vpop.permute.xlu1 %3892 }
0x1745   : > { %6172 = vmatmul.mubr.msk.f32.gmra.mrb[102].mxu0 %vm529_vm0, %v8341_v38  ;;  %v8577_v55 = vpop.permute.xlu0 %3907 }
0x1746   : > { %6195 = vmatprep.mubr.msk.f32.mxu0 %vm529_vm0, %v8348_v7  ;;  %v8579_v50 = vpop.permute.xlu1 %3902 }
0x180c   : > { %v6164_v53 = vpop.f32.mrb[96].mxu0 }
0x180d   : > { %v3982_v22 = vadd.f32 %v6164_v53, %v8559_v36  ;;  %v3976_v9 = vpop.f32.mrb[97].mxu0 }
0x180e   : > { %v3977_v32 = vadd.f32 %v3976_v9, %v8561_v33 }
0x180f   : > { %v5392_v41 = vmul.f32 -1.442695, %v3982_v22 }
0x1810   : > { %v5391_v61 = vmul.f32 -1.442695, %v3977_v32  ;;  %v6167_v38 = vpop.f32.mrb[98].mxu0 }
0x1811   : > { %6934 = vpow2.f32 %v5392_v41  ;;  %v3992_v7 = vadd.f32 %v6167_v38, %v8563_v29  ;;  %v3986_v10 = vpop.f32.mrb[99].mxu0 }
0x1812   : > { %6936 = vpow2.f32 %v5391_v61  ;;  %v3987_v44 = vadd.f32 %v3986_v10, %v8565_v47 }
0x1813   : > { %v5394_v60 = vmul.f32 -1.442695, %v3992_v7 }
0x1814   : > { %v5393_v40 = vmul.f32 -1.442695, %v3987_v44  ;;  %v6170_v42 = vpop.f32.mrb[100].mxu0 }
0x1815   : > { %6938 = vpow2.f32 %v5394_v60  ;;  %v4002_v8 = vadd.f32 %v6170_v42, %v8570_v11  ;;  %v3996_v15 = vpop.f32.mrb[101].mxu0  ;;  %v5404_v42 = vld [vmem:[%s7412_s23 + $0x60] sm:$0xff] }
0x1816   : > { %6940 = vpow2.f32 %v5393_v40  ;;  %v3997_v21 = vadd.f32 %v3996_v15, %v8573_v26  ;;  %v4150_v40 = vstv %s5402_s15  ;;  %s5422_s15 = sld [smem:[#allocation2 + $0x2e]] }
0x1817   : > { %v5396_v35 = vmul.f32 -1.442695, %v4002_v8  ;;  %v4151_v15 = vmul.f32 %v8489_v28, %v4150_v40 }
0x1818   : > { %v5395_v23 = vmul.f32 -1.442695, %v3997_v21  ;;  %v6173_v57 = vpop.f32.mrb[102].mxu0 }
0x1819   : > { %6942 = vpow2.f32 %v5396_v35  ;;  %v4012_v17 = vadd.f32 %v6173_v57, %v8577_v55  ;;  %v4006_v59 = vpop.f32.mrb[103].mxu0  ;;  %v4147_v57 = vstv %s5401_s27  ;;  %s5448_s27 = sld [smem:[#allocation2 + $0x27]] }
0x181a   : > { %6944 = vpow2.f32 %v5395_v23  ;;  %v4007_v43 = vadd.f32 %v4006_v59, %v8579_v50  ;;  %v4145_v23 = vstv %s5400_s0  ;;  %s5447_s0 = sld [smem:[#allocation2 + $0x1f]] }
0x181b   : > { %v6935_v58 = vpop.eup %6934  ;;  %v5398_v56 = vmul.f32 -1.442695, %v4012_v17 }
0x181c   : > { %v6937_v6 = vpop.eup %6936  ;;  %v4040_v13 = vadd.f32 1.0, %v6935_v58  ;;  %v5397_v37 = vmul.f32 -1.442695, %v4007_v43 }
0x181d   : > { %v4039_v31 = vadd.f32 1.0, %v6937_v6  ;;  %6946 = vpow2.f32 %v5398_v56 }
0x181e   : > { %6948 = vrcp.f32 %v4040_v13 }
0x181f   : > { %v6939_v25 = vpop.eup %6938  ;;  %6950 = vrcp.f32 %v4039_v31 }
0x1820   : > { %v6941_v51 = vpop.eup %6940  ;;  %v4042_v14 = vadd.f32 1.0, %v6939_v25  ;;  %6952 = vpow2.f32 %v5397_v37  ;;  %v8603_v25 = vld [vmem:[%s8826_s5 + $0x8] sm:$0xff] }
0x1821   : > { %v4041_v18 = vadd.f32 1.0, %v6941_v51  ;;  %v8617_v51 = vld [vmem:[%s8826_s5 + $0x18] sm:$0xff] }
0x1822   : > { %6954 = vrcp.f32 %v4042_v14  ;;  %v8624_v14 = vld [vmem:[%s8826_s5 + $0x20] sm:$0xff] }
0x1823   : > { %v6943_v30 = vpop.eup %6942  ;;  %6956 = vrcp.f32 %v4041_v18  ;;  %v8631_v18 = vld [vmem:[%s8826_s5 + $0x28] sm:$0xff] }
0x1824   : > { %v6945_v24 = vpop.eup %6944  ;;  %v4044_v54 = vadd.f32 1.0, %v6943_v30  ;;  %v8638_v30 = vld [vmem:[%s8826_s5 + $0x30] sm:$0xff] }
0x1825   : > { %v4043_v52 = vadd.f32 1.0, %v6945_v24  ;;  %v8645_v24 = vld [vmem:[%s8826_s5 + $0x38] sm:$0xff] }
0x1826   : > { %6958 = vrcp.f32 %v4044_v54  ;;  %v8652_v54 = vld [vmem:[%s8826_s5] sm:$0xff] }
0x1827   : > { %v6947_v20 = vpop.eup %6946  ;;  %6960 = vrcp.f32 %v4043_v52 }
0x1828   : > { %v6949_v4 = vpop.eup %6948  ;;  %v4046_v34 = vadd.f32 1.0, %v6947_v20 }
0x1829   : > { %v6951_v46 = vpop.eup %6950  ;;  %v4064_v63 = vmul.f32 %v6949_v4, %v3982_v22 }
0x182a   : > { %v6953_v5 = vpop.eup %6952  ;;  %v4063_v3 = vmul.f32 %v6951_v46, %v3977_v32  ;;  %6962 = vrcp.f32 %v4046_v34 }
0x182b   : > { %v4045_v27 = vadd.f32 1.0, %v6953_v5 }
0x182c   : > { %v6955_v19 = vpop.eup %6954  ;;  %v6437_v62 = vpack.c.bf16 %v4064_v63, %v4063_v3 }
0x182d   : > { %v6957_v39 = vpop.eup %6956  ;;  %v4066_v2 = vmul.f32 %v6955_v19, %v3992_v7  ;;  %6964 = vrcp.f32 %v4045_v27 }
0x182e   : > { %v4065_v49 = vmul.f32 %v6957_v39, %v3987_v44  ;;  %6438 = vmatpush3.bf16.msra.mxu1 %v6437_v62 }
0x182f   : > { %6439 = vmatprep.subr.bf16.mxu1 %v7218_v16 }
0x1830   : > { %v6959_v53 = vpop.eup %6958  ;;  %v6440_v9 = vpack.c.bf16 %v4066_v2, %v4065_v49 }
0x1831   : > { %v6961_v41 = vpop.eup %6960  ;;  %v4068_v61 = vmul.f32 %v6959_v53, %v4002_v8  ;;  %v4154_v8 = vstv %s5403_s12  ;;  %s5423_s12 = sld [smem:[#allocation2 + $0x36]] }
0x1832   : > { %v4067_v38 = vmul.f32 %v6961_v41, %v3997_v21  ;;  %6441 = vmatpush3.bf16.msra.mxu1 %v6440_v9  ;;  %v4155_v21 = vmul.f32 %v5404_v42, %v4154_v8 }
0x1833   : > { %6442 = vmatprep.subr.bf16.mxu1 %v7218_v16 }
0x1834   : > { %v6963_v22 = vpop.eup %6962  ;;  %v6443_v32 = vpack.c.bf16 %v4068_v61, %v4067_v38  ;;  %v4156_v56 = vadd.f32 %v4155_v21, %v4151_v15 }
0x1835   : > { %v4070_v10 = vmul.f32 %v6963_v22, %v4012_v17 }
0x1836   : > { %6444 = vmatpush3.bf16.msra.mxu1 %v6443_v32 }
0x1837   : > { %v6965_v60 = vpop.eup %6964  ;;  %6445 = vmatprep.subr.bf16.mxu1 %v7218_v16 }
0x1838   : > { %v4069_v7 = vmul.f32 %v6965_v60, %v4007_v43  ;;  %v4146_v43 = vmul.f32 %v4145_v23, %v8539_v45  ;;  %v8610_v45 = vld [vmem:[%s8826_s5 + $0x10] sm:$0xff] }
0x183a   : > { %v6446_v44 = vpack.c.bf16 %v4070_v10, %v4069_v7 }
0x183c   : > { %6447 = vmatpush3.bf16.msra.mxu1 %v6446_v44 }
0x183d   : > { %6448 = vmatprep.subr.bf16.mxu1 %v7218_v16 }
0x183f   : > { %6191 = vmatmul.mubr.msk.f32.vlgmr.msra.gmra.mrb[24].mxu1 %vm720_vm2, %v8481_v48 }
0x1840   : > { %6223 = vmatprep.mubr.msk.f32.mxu1 %vm7219_vm1, %v7220_v0 }
0x1912   : > { %v4137_v35 = vpop.f32.mrb[24].mxu1 }
0x1913   : > { %v4138_v17 = vadd.f32 %v4137_v35, %v7892_v12  ;;  %v6192_v59 = vpop.f32.mrb[25].mxu1 }
0x1915   : > { %v4148_v58 = vmul.f32 %v4147_v57, %v4138_v17 }
0x1917   : > { %v4149_v6 = vadd.f32 %v4148_v58, %v4146_v43 }
0x1919   : > { %v4157_v13 = vsub.f32 %v4156_v56, %v4149_v6 }
0x191b   : > { %v4158_v37 = vmul.f32 %v8495_v1, %v4157_v13 }
0x191d   : > { %v8596_v31 = vadd.f32 %v4158_v37, %v4149_v6 }
0x191f   : > { %6193 = vmatprep.subr.mxu0 %v8596_v31 }
0x1920   : > { %6194 = vmatpush3.msra.mxu0 %v8596_v31 }
0x1921   : > { %6196 = vmatmul.mubr.msk.f32.vlgmr.msra.gmra.mrb[104].mxu0 %vm529_vm0, %v8603_v25 }
0x1922   : > { %6198 = vmatprep.mubr.msk.f32.mxu0 %vm529_vm0, %v8610_v45 }
0x1925   : > { %6199 = vmatmul.mubr.msk.f32.gmra.mrb[106].mxu0 %vm529_vm0, %v8617_v51 }
0x1926   : > { %6201 = vmatprep.mubr.msk.f32.mxu0 %vm529_vm0, %v8624_v14 }
0x1929   : > { %6202 = vmatmul.mubr.msk.f32.gmra.mrb[108].mxu0 %vm529_vm0, %v8631_v18 }
0x192a   : > { %6204 = vmatprep.mubr.msk.f32.mxu0 %vm529_vm0, %v8638_v30 }
0x192d   : > { %6205 = vmatmul.mubr.msk.f32.gmra.mrb[110].mxu0 %vm529_vm0, %v8645_v24 }
0x192e   : > { %6228 = vmatprep.mubr.msk.f32.mxu0 %vm529_vm0, %v8652_v54 }
0x19f4   : > { %v6197_v52 = vpop.f32.mrb[104].mxu0 }
0x19f5   : > { %v4232_v20 = vadd.f32 %v6197_v52, %v8559_v36  ;;  %v4226_v4 = vpop.f32.mrb[105].mxu0 }
0x19f6   : > { %v4227_v34 = vadd.f32 %v4226_v4, %v8561_v33 }
0x19f7   : > { %v5414_v46 = vmul.f32 -1.442695, %v4232_v20 }
0x19f8   : > { %v5413_v63 = vmul.f32 -1.442695, %v4227_v34  ;;  %v6200_v5 = vpop.f32.mrb[106].mxu0 }
0x19f9   : > { %6966 = vpow2.f32 %v5414_v46  ;;  %v4242_v3 = vadd.f32 %v6200_v5, %v8563_v29  ;;  %v4236_v27 = vpop.f32.mrb[107].mxu0 }
0x19fa   : > { %6968 = vpow2.f32 %v5413_v63  ;;  %v4237_v19 = vadd.f32 %v4236_v27, %v8565_v47 }
0x19fb   : > { %v5416_v62 = vmul.f32 -1.442695, %v4242_v3 }
0x19fc   : > { %v5415_v39 = vmul.f32 -1.442695, %v4237_v19  ;;  %v6203_v2 = vpop.f32.mrb[108].mxu0 }
0x19fd   : > { %6970 = vpow2.f32 %v5416_v62  ;;  %v4252_v49 = vadd.f32 %v6203_v2, %v8570_v11  ;;  %v4246_v36 = vpop.f32.mrb[109].mxu0  ;;  %v5426_v2 = vld [vmem:[%s7412_s23 + $0x68] sm:$0xff] }
0x19fe   : > { %6972 = vpow2.f32 %v5415_v39  ;;  %v4247_v33 = vadd.f32 %v4246_v36, %v8573_v26  ;;  %v4400_v39 = vstv %s5424_s11  ;;  %s5470_s11 = sld [smem:[#allocation2 + $0x47]] }
0x19ff   : > { %v5418_v53 = vmul.f32 -1.442695, %v4252_v49  ;;  %v4401_v36 = vmul.f32 %v8489_v28, %v4400_v39 }
0x1a00   : > { %v5417_v9 = vmul.f32 -1.442695, %v4247_v33  ;;  %v6206_v41 = vpop.f32.mrb[110].mxu0 }
0x1a01   : > { %6974 = vpow2.f32 %v5418_v53  ;;  %v4262_v29 = vadd.f32 %v6206_v41, %v8577_v55  ;;  %v4256_v61 = vpop.f32.mrb[111].mxu0  ;;  %v4397_v41 = vstv %s5423_s12  ;;  %s5110_s12 = sshll.u32 %s7408_s20, 3 }
0x1a02   : > { %6976 = vpow2.f32 %v5417_v9  ;;  %v4257_v47 = vadd.f32 %v4256_v61, %v8579_v50  ;;  %v4395_v9 = vstv %s5422_s15  ;;  %s5468_s15 = sld [smem:[#allocation2 + $0x37]] }
0x1a03   : > { %v6967_v38 = vpop.eup %6966  ;;  %v5420_v22 = vmul.f32 -1.442695, %v4262_v29 }
0x1a04   : > { %v6969_v32 = vpop.eup %6968  ;;  %v4290_v10 = vadd.f32 1.0, %v6967_v38  ;;  %v5419_v60 = vmul.f32 -1.442695, %v4257_v47 }
0x1a05   : > { %v4289_v11 = vadd.f32 1.0, %v6969_v32  ;;  %6978 = vpow2.f32 %v5420_v22 }
0x1a06   : > { %6980 = vrcp.f32 %v4290_v10 }
0x1a07   : > { %v6971_v7 = vpop.eup %6970  ;;  %6982 = vrcp.f32 %v4289_v11 }
0x1a08   : > { %v6973_v26 = vpop.eup %6972  ;;  %v4292_v44 = vadd.f32 1.0, %v6971_v7  ;;  %6984 = vpow2.f32 %v5419_v60  ;;  %v8699_v7 = vpop.permute.xlu1 %4430 }
0x1a09   : > { %v4291_v40 = vadd.f32 1.0, %v6973_v26 }
0x1a0a   : > { %6986 = vrcp.f32 %v4292_v44 }
0x1a0b   : > { %v6975_v55 = vpop.eup %6974  ;;  %6988 = vrcp.f32 %v4291_v40 }
0x1a0c   : > { %v6977_v42 = vpop.eup %6976  ;;  %v4294_v8 = vadd.f32 1.0, %v6975_v55  ;;  %v8703_v40 = vpop.permute.xlu1 %4440 }
0x1a0d   : > { %v4293_v50 = vadd.f32 1.0, %v6977_v42 }
0x1a0e   : > { %6990 = vrcp.f32 %v4294_v8 }
0x1a0f   : > { %v6979_v15 = vpop.eup %6978  ;;  %6992 = vrcp.f32 %v4293_v50 }
0x1a10   : > { %v6981_v21 = vpop.eup %6980  ;;  %v4296_v35 = vadd.f32 1.0, %v6979_v15 }
0x1a11   : > { %v6983_v23 = vpop.eup %6982  ;;  %v4314_v57 = vmul.f32 %v6981_v21, %v4232_v20 }
0x1a12   : > { %v6985_v17 = vpop.eup %6984  ;;  %v4313_v59 = vmul.f32 %v6983_v23, %v4227_v34  ;;  %6994 = vrcp.f32 %v4296_v35 }
0x1a13   : > { %v4295_v43 = vadd.f32 1.0, %v6985_v17  ;;  %v8711_v17 = vpop.permute.xlu1 %4450 }
0x1a14   : > { %v6987_v58 = vpop.eup %6986  ;;  %v6449_v56 = vpack.c.bf16 %v4314_v57, %v4313_v59 }
0x1a15   : > { %v6989_v6 = vpop.eup %6988  ;;  %v4316_v13 = vmul.f32 %v6987_v58, %v4242_v3  ;;  %6996 = vrcp.f32 %v4295_v43 }
0x1a16   : > { %v4315_v37 = vmul.f32 %v6989_v6, %v4237_v19  ;;  %6450 = vmatpush3.bf16.msra.mxu1 %v6449_v56 }
0x1a17   : > { %6451 = vmatprep.subr.bf16.mxu1 %v7218_v16 }
0x1a18   : > { %v6991_v52 = vpop.eup %6990  ;;  %v6452_v4 = vpack.c.bf16 %v4316_v13, %v4315_v37 }
0x1a19   : > { %v6993_v46 = vpop.eup %6992  ;;  %v4318_v63 = vmul.f32 %v6991_v52, %v4252_v49  ;;  %v4404_v49 = vstv %s5425_s22  ;;  %s5467_s22 = sld [smem:[#allocation2 + $0x2f]] }
0x1a1a   : > { %v4317_v5 = vmul.f32 %v6993_v46, %v4247_v33  ;;  %6453 = vmatpush3.bf16.msra.mxu1 %v6452_v4  ;;  %v4405_v33 = vmul.f32 %v5426_v2, %v4404_v49 }
0x1a1b   : > { %6454 = vmatprep.subr.bf16.mxu1 %v7218_v16 }
0x1a1c   : > { %v6995_v20 = vpop.eup %6994  ;;  %v6455_v34 = vpack.c.bf16 %v4318_v63, %v4317_v5  ;;  %v4406_v22 = vadd.f32 %v4405_v33, %v4401_v36  ;;  %v8717_v63 = vpop.permute.xlu1 %4460 }
0x1a1d   : > { %v4320_v27 = vmul.f32 %v6995_v20, %v4262_v29 }
0x1a1e   : > { %6456 = vmatpush3.bf16.msra.mxu1 %v6455_v34 }
0x1a1f   : > { %v6997_v62 = vpop.eup %6996  ;;  %6457 = vmatprep.subr.bf16.mxu1 %v7218_v16 }
0x1a20   : > { %v4319_v3 = vmul.f32 %v6997_v62, %v4257_v47  ;;  %v4396_v47 = vmul.f32 %v4395_v9, %v8596_v31  ;;  %v8697_v31 = vpop.permute.xlu0 %4435 }
0x1a22   : > { %v6458_v19 = vpack.c.bf16 %v4320_v27, %v4319_v3 }
0x1a24   : > { %6459 = vmatpush3.bf16.msra.mxu1 %v6458_v19  ;;  %v8701_v26 = vpop.permute.xlu0 %4445 }
0x1a25   : > { %6460 = vmatprep.subr.bf16.mxu1 %v7218_v16 }
0x1a27   : > { %6224 = vmatmul.mubr.msk.f32.vlgmr.msra.gmra.mrb[26].mxu1 %vm720_vm2, %v8481_v48 }
0x1a28   : > { %6256 = vmatprep.mubr.msk.f32.mxu1 %vm7219_vm1, %v7220_v0  ;;  %v8708_v23 = vpop.permute.xlu0 %4455 }
0x1a2c   : > { %v8715_v52 = vpop.permute.xlu0 %4465 }
0x1afa   : > { %v4387_v53 = vpop.f32.mrb[26].mxu1 }
0x1afb   : > { %v4388_v29 = vadd.f32 %v4387_v53, %v7892_v12  ;;  %v6225_v61 = vpop.f32.mrb[27].mxu1 }
0x1afd   : > { %v4398_v38 = vmul.f32 %v4397_v41, %v4388_v29 }
0x1aff   : > { %v4399_v32 = vadd.f32 %v4398_v38, %v4396_v47 }
0x1b01   : > { %v4407_v10 = vsub.f32 %v4406_v22, %v4399_v32 }
0x1b03   : > { %v4408_v60 = vmul.f32 %v8495_v1, %v4407_v10 }
0x1b05   : > { %v8677_v11 = vadd.f32 %v4408_v60, %v4399_v32 }
0x1b07   : > { %6226 = vmatprep.subr.mxu0 %v8677_v11 }
0x1b08   : > { %6227 = vmatpush3.msra.mxu0 %v8677_v11 }
0x1b09   : > { %6229 = vmatmul.mubr.msk.f32.vlgmr.msra.gmra.mrb[112].mxu0 %vm529_vm0, %v8603_v25 }
0x1b0a   : > { %6231 = vmatprep.mubr.msk.f32.mxu0 %vm529_vm0, %v8610_v45 }
0x1b0d   : > { %6232 = vmatmul.mubr.msk.f32.gmra.mrb[114].mxu0 %vm529_vm0, %v8617_v51 }
0x1b0e   : > { %6234 = vmatprep.mubr.msk.f32.mxu0 %vm529_vm0, %v8624_v14 }
0x1b11   : > { %6235 = vmatmul.mubr.msk.f32.gmra.mrb[116].mxu0 %vm529_vm0, %v8631_v18 }
0x1b12   : > { %6237 = vmatprep.mubr.msk.f32.mxu0 %vm529_vm0, %v8638_v30 }
0x1b15   : > { %6238 = vmatmul.mubr.msk.f32.gmra.mrb[118].mxu0 %vm529_vm0, %v8645_v24 }
0x1b16   : > { %6261 = vmatprep.mubr.msk.f32.mxu0 %vm529_vm0, %v8652_v54 }
0x1bdc   : > { %v6230_v44 = vpop.f32.mrb[112].mxu0 }
0x1bdd   : > { %v4540_v55 = vadd.f32 %v6230_v44, %v8697_v31  ;;  %v4534_v42 = vpop.f32.mrb[113].mxu0 }
0x1bde   : > { %v4535_v8 = vadd.f32 %v4534_v42, %v8699_v7 }
0x1bdf   : > { %v5437_v50 = vmul.f32 -1.442695, %v4540_v55 }
0x1be0   : > { %v5436_v15 = vmul.f32 -1.442695, %v4535_v8  ;;  %v6233_v21 = vpop.f32.mrb[114].mxu0 }
0x1be1   : > { %6998 = vpow2.f32 %v5437_v50  ;;  %v4550_v54 = vadd.f32 %v6233_v21, %v8701_v26  ;;  %v4544_v35 = vpop.f32.mrb[115].mxu0 }
0x1be2   : > { %7000 = vpow2.f32 %v5436_v15  ;;  %v4545_v57 = vadd.f32 %v4544_v35, %v8703_v40 }
0x1be3   : > { %v5439_v59 = vmul.f32 -1.442695, %v4550_v54 }
0x1be4   : > { %v5438_v43 = vmul.f32 -1.442695, %v4545_v57  ;;  %v6236_v58 = vpop.f32.mrb[116].mxu0 }
0x1be5   : > { %7002 = vpow2.f32 %v5439_v59  ;;  %v4560_v56 = vadd.f32 %v6236_v58, %v8708_v23  ;;  %v4554_v6 = vpop.f32.mrb[117].mxu0 }
0x1be6   : > { %7004 = vpow2.f32 %v5438_v43  ;;  %v4555_v13 = vadd.f32 %v4554_v6, %v8711_v17 }
0x1be7   : > { %v5441_v37 = vmul.f32 -1.442695, %v4560_v56 }
0x1be8   : > { %v5440_v4 = vmul.f32 -1.442695, %v4555_v13  ;;  %v6239_v46 = vpop.f32.mrb[118].mxu0 }
0x1be9   : > { %7006 = vpow2.f32 %v5441_v37  ;;  %v4570_v5 = vadd.f32 %v6239_v46, %v8715_v52  ;;  %v4564_v20 = vpop.f32.mrb[119].mxu0 }
0x1bea   : > { %7008 = vpow2.f32 %v5440_v4  ;;  %v4565_v34 = vadd.f32 %v4564_v20, %v8717_v63 }
0x1beb   : > { %v6999_v27 = vpop.eup %6998  ;;  %v5443_v62 = vmul.f32 -1.442695, %v4570_v5 }
0x1bec   : > { %v7001_v3 = vpop.eup %7000  ;;  %v4598_v19 = vadd.f32 1.0, %v6999_v27  ;;  %v5442_v39 = vmul.f32 -1.442695, %v4565_v34 }
0x1bed   : > { %v4597_v2 = vadd.f32 1.0, %v7001_v3  ;;  %7010 = vpow2.f32 %v5443_v62  ;;  %v4703_v3 = vstv %s5445_s19 }
0x1bee   : > { %7012 = vrcp.f32 %v4598_v19  ;;  %v4705_v19 = vstv %s5446_s28 }
0x1bef   : > { %v7003_v49 = vpop.eup %7002  ;;  %7014 = vrcp.f32 %v4597_v2 }
0x1bf0   : > { %v7005_v36 = vpop.eup %7004  ;;  %v4600_v33 = vadd.f32 1.0, %v7003_v49  ;;  %7016 = vpow2.f32 %v5442_v39 }
0x1bf1   : > { %v4599_v53 = vadd.f32 1.0, %v7005_v36 }
0x1bf2   : > { %7018 = vrcp.f32 %v4600_v33 }
0x1bf3   : > { %v7007_v9 = vpop.eup %7006  ;;  %7020 = vrcp.f32 %v4599_v53 }
0x1bf4   : > { %v7009_v41 = vpop.eup %7008  ;;  %v4602_v29 = vadd.f32 1.0, %v7007_v9 }
0x1bf5   : > { %v4601_v61 = vadd.f32 1.0, %v7009_v41 }
0x1bf6   : > { %7022 = vrcp.f32 %v4602_v29 }
0x1bf7   : > { %v7011_v47 = vpop.eup %7010  ;;  %7024 = vrcp.f32 %v4601_v61 }
0x1bf8   : > { %v7013_v38 = vpop.eup %7012  ;;  %v4604_v22 = vadd.f32 1.0, %v7011_v47 }
0x1bf9   : > { %v7015_v32 = vpop.eup %7014  ;;  %v4622_v10 = vmul.f32 %v7013_v38, %v4540_v55 }
0x1bfa   : > { %v7017_v60 = vpop.eup %7016  ;;  %v4621_v44 = vmul.f32 %v7015_v32, %v4535_v8  ;;  %7026 = vrcp.f32 %v4604_v22 }
0x1bfb   : > { %v4603_v42 = vadd.f32 1.0, %v7017_v60 }
0x1bfc   : > { %v7019_v50 = vpop.eup %7018  ;;  %v6461_v15 = vpack.c.bf16 %v4622_v10, %v4621_v44 }
0x1bfd   : > { %v7021_v21 = vpop.eup %7020  ;;  %v4624_v35 = vmul.f32 %v7019_v50, %v4550_v54  ;;  %7028 = vrcp.f32 %v4603_v42 }
0x1bfe   : > { %v4623_v59 = vmul.f32 %v7021_v21, %v4545_v57  ;;  %6462 = vmatpush3.bf16.msra.mxu1 %v6461_v15 }
0x1bff   : > { %6463 = vmatprep.subr.bf16.mxu1 %v7218_v16 }
0x1c00   : > { %v7023_v43 = vpop.eup %7022  ;;  %v6464_v58 = vpack.c.bf16 %v4624_v35, %v4623_v59 }
0x1c01   : > { %v7025_v6 = vpop.eup %7024  ;;  %v4626_v37 = vmul.f32 %v7023_v43, %v4560_v56  ;;  %v4708_v56 = vstv %s5447_s0 }
0x1c02   : > { %v4625_v4 = vmul.f32 %v7025_v6, %v4555_v13  ;;  %6465 = vmatpush3.bf16.msra.mxu1 %v6464_v58  ;;  %v5449_v13 = vld [vmem:[%s7412_s23 + $0x70] sm:$0xff]  ;;  %v4709_v27 = vmul.f32 %v8489_v28, %v4708_v56 }
0x1c03   : > { %6466 = vmatprep.subr.bf16.mxu1 %v7218_v16 }
0x1c04   : > { %v7027_v55 = vpop.eup %7026  ;;  %v6467_v8 = vpack.c.bf16 %v4626_v37, %v4625_v4 }
0x1c05   : > { %v4628_v46 = vmul.f32 %v7027_v55, %v4570_v5  ;;  %v4712_v5 = vstv %s5448_s27 }
0x1c06   : > { %6468 = vmatpush3.bf16.msra.mxu1 %v6467_v8 }
0x1c07   : > { %v7029_v20 = vpop.eup %7028  ;;  %6469 = vmatprep.subr.bf16.mxu1 %v7218_v16 }
0x1c08   : > { %v4627_v54 = vmul.f32 %v7029_v20, %v4565_v34  ;;  %v4713_v34 = vmul.f32 %v5449_v13, %v4712_v5 }
0x1c0a   : > { %v6470_v57 = vpack.c.bf16 %v4628_v46, %v4627_v54 }
0x1c0c   : > { %6471 = vmatpush3.bf16.msra.mxu1 %v6470_v57 }
0x1c0d   : > { %6472 = vmatprep.subr.bf16.mxu1 %v7218_v16 }
0x1c0f   : > { %6257 = vmatmul.mubr.msk.f32.vlgmr.msra.gmra.mrb[28].mxu1 %vm720_vm2, %v8481_v48  ;;  %v4704_v48 = vmul.f32 %v4703_v3, %v8677_v11 }
0x1c10   : > { %6289 = vmatprep.mubr.msk.f32.mxu1 %vm7219_vm1, %v7220_v0  ;;  %v4714_v0 = vadd.f32 %v4713_v34, %v4709_v27 }
0x1ce2   : > { %v4695_v62 = vpop.f32.mrb[28].mxu1 }
0x1ce3   : > { %v4696_v39 = vadd.f32 %v4695_v62, %v7892_v12  ;;  %v6258_v2 = vpop.f32.mrb[29].mxu1 }
0x1ce5   : > { %v4706_v49 = vmul.f32 %v4705_v19, %v4696_v39 }
0x1ce7   : > { %v4707_v36 = vadd.f32 %v4706_v49, %v4704_v48 }
0x1ce9   : > { %v4715_v33 = vsub.f32 %v4714_v0, %v4707_v36 }
0x1ceb   : > { %v4716_v53 = vmul.f32 %v8495_v1, %v4715_v33 }
0x1ced   : > { %v8734_v9 = vadd.f32 %v4716_v53, %v4707_v36  ;;  %v7092_v53 = vld [vmem:[%s8829_s8] sm:$0xff] }
0x1cef   : > { %6259 = vmatprep.subr.mxu0 %v8734_v9 }
0x1cf0   : > { %6260 = vmatpush3.msra.mxu0 %v8734_v9 }
0x1cf1   : > { %6262 = vmatmul.mubr.msk.f32.vlgmr.msra.gmra.mrb[120].mxu0 %vm529_vm0, %v8603_v25 }
0x1cf2   : > { %6264 = vmatprep.mubr.msk.f32.mxu0 %vm529_vm0, %v8610_v45 }
0x1cf5   : > { %6265 = vmatmul.mubr.msk.f32.gmra.mrb[122].mxu0 %vm529_vm0, %v8617_v51 }
0x1cf6   : > { %6267 = vmatprep.mubr.msk.f32.mxu0 %vm529_vm0, %v8624_v14 }
0x1cf9   : > { %6268 = vmatmul.mubr.msk.f32.gmra.mrb[124].mxu0 %vm529_vm0, %v8631_v18 }
0x1cfa   : > { %6270 = vmatprep.mubr.msk.f32.mxu0 %vm529_vm0, %v8638_v30 }
0x1cfd   : > { %6271 = vmatmul.mubr.msk.f32.gmra.mrb[126].mxu0 %vm529_vm0, %v8645_v24 }
0x1dc4   : > { %v6263_v28 = vpop.f32.mrb[120].mxu0 }
0x1dc5   : > { %v4790_v1 = vadd.f32 %v6263_v28, %v8697_v31  ;;  %v4784_v25 = vpop.f32.mrb[121].mxu0  ;;  %v4958_v28 = vstv %s5469_s24 }
0x1dc6   : > { %v4785_v45 = vadd.f32 %v4784_v25, %v8699_v7  ;;  %v4962_v25 = vstv %s5470_s11 }
0x1dc7   : > { %v5459_v11 = vmul.f32 -1.442695, %v4790_v1 }
0x1dc8   : > { %v5458_v51 = vmul.f32 -1.442695, %v4785_v45  ;;  %v6266_v41 = vpop.f32.mrb[122].mxu0 }
0x1dc9   : > { %7030 = vpow2.f32 %v5459_v11  ;;  %v4800_v14 = vadd.f32 %v6266_v41, %v8701_v26  ;;  %v4794_v29 = vpop.f32.mrb[123].mxu0  ;;  %v4953_v41 = vstv %s5467_s22 }
0x1dca   : > { %7032 = vpow2.f32 %v5458_v51  ;;  %v4795_v18 = vadd.f32 %v4794_v29, %v8703_v40 }
0x1dcb   : > { %v5461_v30 = vmul.f32 -1.442695, %v4800_v14 }
0x1dcc   : > { %v5460_v61 = vmul.f32 -1.442695, %v4795_v18  ;;  %v6269_v47 = vpop.f32.mrb[124].mxu0 }
0x1dcd   : > { %7034 = vpow2.f32 %v5461_v30  ;;  %v4810_v24 = vadd.f32 %v6269_v47, %v8708_v23  ;;  %v4804_v31 = vpop.f32.mrb[125].mxu0  ;;  %v4954_v30 = vmul.f32 %v4953_v41, %v8734_v9 }
0x1dce   : > { %7036 = vpow2.f32 %v5460_v61  ;;  %v4805_v7 = vadd.f32 %v4804_v31, %v8711_v17 }
0x1dcf   : > { %v5463_v38 = vmul.f32 -1.442695, %v4810_v24 }
0x1dd0   : > { %v5462_v22 = vmul.f32 -1.442695, %v4805_v7  ;;  %v6272_v32 = vpop.f32.mrb[126].mxu0 }
0x1dd1   : > { %7038 = vpow2.f32 %v5463_v38  ;;  %v4820_v26 = vadd.f32 %v6272_v32, %v8715_v52  ;;  %v4814_v10 = vpop.f32.mrb[127].mxu0 }
0x1dd2   : > { %7040 = vpow2.f32 %v5462_v22  ;;  %v4815_v40 = vadd.f32 %v4814_v10, %v8717_v63 }
0x1dd3   : > { %v7031_v60 = vpop.eup %7030  ;;  %v5465_v44 = vmul.f32 -1.442695, %v4820_v26 }
0x1dd4   : > { %v7033_v42 = vpop.eup %7032  ;;  %v4848_v50 = vadd.f32 1.0, %v7031_v60  ;;  %v5464_v15 = vmul.f32 -1.442695, %v4815_v40 }
0x1dd5   : > { %v4847_v23 = vadd.f32 1.0, %v7033_v42  ;;  %7042 = vpow2.f32 %v5465_v44 }
0x1dd6   : > { %7044 = vrcp.f32 %v4848_v50 }
0x1dd7   : > { %v7035_v21 = vpop.eup %7034  ;;  %7046 = vrcp.f32 %v4847_v23 }
0x1dd8   : > { %v7037_v17 = vpop.eup %7036  ;;  %v4850_v35 = vadd.f32 1.0, %v7035_v21  ;;  %7048 = vpow2.f32 %v5464_v15 }
0x1dd9   : > { %v4849_v59 = vadd.f32 1.0, %v7037_v17 }
0x1dda   : > { %7050 = vrcp.f32 %v4850_v35 }
0x1ddb   : > { %v7039_v52 = vpop.eup %7038  ;;  %7052 = vrcp.f32 %v4849_v59 }
0x1ddc   : > { %v7041_v43 = vpop.eup %7040  ;;  %v4852_v58 = vadd.f32 1.0, %v7039_v52 }
0x1ddd   : > { %v4851_v63 = vadd.f32 1.0, %v7041_v43 }
0x1dde   : > { %7054 = vrcp.f32 %v4852_v58 }
0x1ddf   : > { %v7043_v6 = vpop.eup %7042  ;;  %7056 = vrcp.f32 %v4851_v63 }
0x1de0   : > { %v7045_v37 = vpop.eup %7044  ;;  %v4854_v4 = vadd.f32 1.0, %v7043_v6 }
0x1de1   : > { %v7047_v55 = vpop.eup %7046  ;;  %v4872_v8 = vmul.f32 %v7045_v37, %v4790_v1  ;;  %v5471_v1 = vld [vmem:[%s7412_s23 + $0x78] sm:$0xff]  ;;  %s5473_s23 = sshll.u32 %s7298_s17, 7  ;;  %s7221_s17 = smov [#allocation7]  }
0x1de2   : > { %v7049_v46 = vpop.eup %7048  ;;  %v4871_v20 = vmul.f32 %v7047_v55, %v4785_v45  ;;  %7058 = vrcp.f32 %v4854_v4  ;;  %v7093_v45 = vld [vmem:[%s7885_s29] sm:$0xff]  ;;  %v4963_v11 = vmul.f32 %v5471_v1, %v4962_v25  ;;  %s429_s29 = scalar_lea.vmem [#allocation7], %s5110_s12  ;;  %s8777_s28 = scalar_lea.hbm %s8831_s10, %s5473_s23 }
0x1de3   : > { %v4853_v54 = vadd.f32 1.0, %v7049_v46  ;;  %s4983_s0 = sshll.u32 %s429_s29, 4  ;;  %s8779_s0 = int_to_ptr.vmem [resolvable:$true] %s4983_s0 }
0x1de4   : > { %v7051_v57 = vpop.eup %7050  ;;  %v6473_v56 = vpack.c.bf16 %v4872_v8, %v4871_v20  ;;  %s7140_s21 = scalar_lea.vmem %s8779_s0, 128 }
0x1de5   : > { %v7053_v13 = vpop.eup %7052  ;;  %v4874_v5 = vmul.f32 %v7051_v57, %v4800_v14  ;;  %7060 = vrcp.f32 %v4853_v54  ;;  %v4955_v14 = vstv %s5468_s15  ;;  %p7141_p3 = scmp.ne.s32.totalorder %s8779_s0, %s7140_s21 }
0x1de6   : > { %v4873_v27 = vmul.f32 %v7053_v13, %v4795_v18  ;;  %6474 = vmatpush3.bf16.msra.mxu1 %v6473_v56 }
0x1de7   : > { %6475 = vmatprep.subr.bf16.mxu1 %v7218_v16  ;;  %p7142_p9 = pnand %p7141_p3, %p8881_p8 }
0x1de8   : > { %v7055_v34 = vpop.eup %7054  ;;  %v6476_v62 = vpack.c.bf16 %v4874_v5, %v4873_v27 }
0x1de9   : > { %v7057_v3 = vpop.eup %7056  ;;  %v4876_v19 = vmul.f32 %v7055_v34, %v4810_v24  ;;  %p7143_p10 = pneg %p7142_p9 }
0x1dea   : > { %v4875_v39 = vmul.f32 %v7057_v3, %v4805_v7  ;;  %6477 = vmatpush3.bf16.msra.mxu1 %v6476_v62  ;;  %v7094_v7 = vld [vmem:[%s7900_s30] sm:$0xff]  ;;  %s7144_s30 = sshll.u32 %s7221_s17, 4  ;;  %s7145_s30 = int_to_ptr.vmem [resolvable:$false] %s7144_s30 }
0x1deb   : > { %6478 = vmatprep.subr.bf16.mxu1 %v7218_v16  ;;  %s7146_s24 = scalar_lea.vmem %s7145_s30, 256  ;;  %p7147_p1 = scmp.lt.s32.totalorder %s8779_s0, %s7145_s30 }
0x1dec   : > { %v7059_v2 = vpop.eup %7058  ;;  %v6479_v48 = vpack.c.bf16 %v4876_v19, %v4875_v39  ;;  %p7148_p4 = scmp.lt.s32.totalorder %s7146_s24, %s7140_s21 }
0x1ded   : > { %v4878_v49 = vmul.f32 %v7059_v2, %v4820_v26 }
0x1dee   : > { %6480 = vmatpush3.bf16.msra.mxu1 %v6479_v48  ;;  %p7149_p11 = por %p7148_p4, %p7147_p1 }
0x1def   : > { %v7061_v0 = vpop.eup %7060  ;;  %6481 = vmatprep.subr.bf16.mxu1 %v7218_v16  ;;  %v4959_v16 = vmul.f32 %v7093_v45, %v4958_v28 }
0x1df0   : > { %v4877_v36 = vmul.f32 %v7061_v0, %v4815_v40  ;;  %p7150_p0 = pnand %p7149_p11, %p7143_p10 }
0x1df1   : > { %v4964_v47 = vadd.f32 %v4963_v11, %v4959_v16 }
0x1df2   : > { %v6482_v33 = vpack.c.bf16 %v4878_v49, %v4877_v36 }
0x1df4   : > { %6483 = vmatpush3.bf16.msra.mxu1 %v6482_v33 }
0x1df7   : > { %6290 = vmatmul.mubr.msk.f32.vlgmr.msra.gmra.mrb[30].mxu1 %vm720_vm2, %v7092_v53 }
0x1eca   : > { %v4945_v51 = vpop.f32.mrb[30].mxu1 }
0x1ecb   : > { %v4946_v29 = vadd.f32 %v4945_v51, %v7892_v12  ;;  %v6291_v18 = vpop.f32.mrb[31].mxu1 }
0x1ecd   : > { %v4956_v61 = vmul.f32 %v4955_v14, %v4946_v29 }
0x1ecf   : > { %v4957_v24 = vadd.f32 %v4956_v61, %v4954_v30 }
0x1ed1   : > { %v4965_v31 = vsub.f32 %v4964_v47, %v4957_v24 }
0x1ed3   : > { %v4966_v38 = vmul.f32 %v7094_v7, %v4965_v31 }
0x1ed5   : > { %v4967_v22 = vadd.f32 %v4966_v38, %v4957_v24 }
0x1ed7   : > { %4968 = vst [vmem:[%s429_s29] sm:$0xff] %v4967_v22 }
0x1ed8   : > { %7153 = shalt.err (!%p7150_p0)
}
0x1ed9   : > { %s7154_s20 = scalar_lea.hbm %s8777_s28, 128  ;;  %s7158_s15 = scalar_lea.hbm %s8831_s10, 256 }
0x1eda   : > { %p7155_p2 = scmp.ne.s32.totalorder %s8777_s28, %s7154_s20  ;;  %p7159_p12 = scmp.lt.u32.totalorder %s8777_s28, %s8831_s10 }
0x1edb   : > { %p7160_p6 = scmp.lt.u32.totalorder %s7158_s15, %s7154_s20  ;;  %p7162_p3 = scmp.lt.u32.totalorder %s7154_s20, %s8777_s28 }
0x1edc   : > { %p7156_p7 = pnand %p7155_p2, %p8881_p8 }
0x1edd   : > { %p7161_p13 = por %p7160_p6, %p7159_p12 }
0x1ede   : > { %p7157_p5 = pneg %p7156_p7 }
0x1edf   : > { %p7163_p9 = por %p7162_p3, %p7161_p13 }
0x1ee1   : > { %p7164_p10 = pnand %p7163_p9, %p7157_p5 }
0x1ee3   : > { %7167 = shalt.err (!%p7164_p10)
}
0x1ee4   : > { %6490 = dma.vmem_to_hbm [thread:$0]  (%p8881_p8), %s8779_s0, 128, %s8777_s28, %s4970_s18  }
0x1ee5 PF: > { %s4995_s29 = sand.u32 1, %s7198_s13   ;;  %p8882_p1 = scmp.ne.s32.totalorder %s8859_s26, 0 }
0x1ee6   : > { %p8883_p4 = scmp.ge.s32.totalorder %s7210_s16, 2  ;;  %s4996_s27 = scalar_lea.sflag [#allocation4], %s4995_s29 }
0x1ee8   : > { %p6501_p11 = pnand %p8883_p4, %p8882_p1 }
0x1eea   : > { %7193 = dma.done.wait (!%p6501_p11), %s4996_s27, 128  }
0x1eeb   : > { %7195 = vsyncadd (!%p6501_p11), %s4996_s27, 4294967168  ;;  %s8884_s16 = sld [smem:[#allocation12_spill]]  ;;  %s8885_s19 = sld [smem:[#allocation11_spill]] }
0x1eec   : > { %s8886_s15 = sld [smem:[#allocation13_spill]]  ;;  %s8887_s13 = smov %s7202_s14 }
0x1ef1   : > { %p24_p0 = scmp.ge.s32.totalorder %s8884_s16, 4   ;;  %s8888_s14 = smov %s8885_s19 }
0x1ef3   :  { %26 = sbr.rel (!%p24_p0) target bundleno = 8 (0x8), region = 134 }
0x1efa   :  { %5001 = vsyncpa [#allocation3], 1 }
0x1efb   :  { %5003 = vsyncpa [#allocation3 + $0x1], 1 }
0x1efc   :  { %5004 = vsyncpa [#allocation4], 1 }
0x1efd   :  { %5006 = vsyncpa [#allocation4 + $0x1], 1 }
0x1efe   :  { %5007 = vsyncpa [#allocation5], 1 }
0x1eff   :  { %5009 = vsyncpa [#allocation5 + $0x1], 1 }

</bundles_post_ra>
